<compile_context>
chip_gen: v6e
topology: v6e:2x2x1
jax: 0.10.0
libtpu: 0.0.40
codegen_flags: <defaults>
</compile_context>

<pallas_src>
import functools
from typing import NamedTuple

import jax
import jax.numpy as jnp
import numpy as np
from jax.experimental import pallas as pl
from jax.experimental.pallas import tpu as pltpu


class SADecoderConfig(NamedTuple):
    input_dim: int
    hid_dim: int
    n_layers: int
    n_heads: int
    pf_dim: int
    source_size: int
    target_size: int
    output_dim: int


LANES = 128   # all activations / slab tiles are 128 lanes wide (lane-dense)
SLOT = 128    # every weight matrix gets a zero-padded 128-row slot

_MAT_NAMES = ("wqkv_s", "wo_s", "wq_e", "wkv_e", "wo_e", "wff1", "wff2")
_VEC_NAMES = ("b_qkv_s", "b_o_s", "b_q_e", "b_kv_e", "b_o_e", "b_ff1", "b_ff2",
              "ln1_g", "ln1_b", "ln2_g", "ln2_b", "ln3_g", "ln3_b")
_MAT_OFF = {n: i * SLOT for i, n in enumerate(_MAT_NAMES)}
_VEC0 = len(_MAT_NAMES) * SLOT
_VEC_OFF = {n: _VEC0 + i for i, n in enumerate(_VEC_NAMES)}
_LAYER_ROWS = _VEC0 + 16

# global slab: tok-embedding weight | rearranged fc_out weight | col-pool | vec rows
_G_WTOK, _G_WFC, _G_COLP, _G_VEC = 0, SLOT, 2 * SLOT, 3 * SLOT
_G_ROWS = 3 * SLOT + 8


def _round_up(x, m=8):
    return (x + m - 1) // m * m


def _out_layout(B, T, nh):
    """Row offsets inside the single lane-dense (rows, 128) output slab."""
    trg_off = _round_up(B)
    att_off = trg_off + _round_up(B * T)
    rows = att_off + _round_up(nh * B * T)
    return trg_off, att_off, rows


# -----------------------------------------------------------------------------
# Host-side parameter packing
# -----------------------------------------------------------------------------
def pack_params(cfg, params):
    H, Pf, L, I = cfg.hid_dim, cfg.pf_dim, cfg.n_layers, cfg.input_dim
    T = cfg.source_size
    O = cfg.target_size * cfg.output_dim
    assert H % cfg.n_heads == 0
    assert 3 * H <= LANES and Pf <= LANES and T * O <= LANES
    assert I <= SLOT and H <= SLOT and Pf <= SLOT

    lslab = np.zeros((L, _LAYER_ROWS, LANES), np.float32)
    for l, lp_in in enumerate(params["layers"]):
        lp = {k: np.asarray(v, np.float32) for k, v in lp_in.items()}
        mats = {
            "wqkv_s": np.concatenate([lp["w_q_s"], lp["w_k_s"], lp["w_v_s"]], axis=1),
            "wo_s": lp["w_o_s"],
            "wq_e": lp["w_q_e"],
            "wkv_e": np.concatenate([lp["w_k_e"], lp["w_v_e"]], axis=1),
            "wo_e": lp["w_o_e"],
            "wff1": lp["w_ff1"],
            "wff2": lp["w_ff2"],
        }
        for name, w in mats.items():
            r0 = _MAT_OFF[name]
            lslab[l, r0:r0 + w.shape[0], :w.shape[1]] = w
        vecs = {
            "b_qkv_s": np.concatenate([lp["b_q_s"], lp["b_k_s"], lp["b_v_s"]]),
            "b_o_s": lp["b_o_s"],
            "b_q_e": lp["b_q_e"],
            "b_kv_e": np.concatenate([lp["b_k_e"], lp["b_v_e"]]),
            "b_o_e": lp["b_o_e"],
            "b_ff1": lp["b_ff1"],
            "b_ff2": lp["b_ff2"],
            "ln1_g": lp["ln1_g"], "ln1_b": lp["ln1_b"],
            "ln2_g": lp["ln2_g"], "ln2_b": lp["ln2_b"],
            "ln3_g": lp["ln3_g"], "ln3_b": lp["ln3_b"],
        }
        for name, v in vecs.items():
            lslab[l, _VEC_OFF[name], :v.shape[0]] = v

    gslab = np.zeros((_G_ROWS, LANES), np.float32)
    w_tok = np.asarray(params["w_tok"], np.float32)            # (I, H)
    gslab[_G_WTOK:_G_WTOK + I, :H] = w_tok
    w_fc = np.asarray(params["w_fc"], np.float32)              # (T*H, O)
    # wfc_re[h, t*O + o] = w_fc[t*H + h, o]
    wfc_re = w_fc.reshape(T, H, O).transpose(1, 0, 2).reshape(H, T * O)
    gslab[_G_WFC:_G_WFC + H, :T * O] = wfc_re
    colpool = np.zeros((T * O, O), np.float32)                 # [c, o] = [c % O == o]
    colpool[np.arange(T * O), np.arange(T * O) % O] = 1.0
    gslab[_G_COLP:_G_COLP + T * O, :O] = colpool
    gslab[_G_VEC + 0, :H] = np.asarray(params["b_tok"], np.float32)
    gslab[_G_VEC + 1, :O] = np.asarray(params["b_fc"], np.float32)
    gslab[_G_VEC + 2, :H] = 1.0                                # valid-lane mask for LN
    return jnp.asarray(gslab), jnp.asarray(lslab)


def _block_bias_np(nh, Nq, Lq, Nk, Lk):
    """Additive mask keeping only (query, key) pairs of the same (batch, head)."""
    r = np.arange(nh * Nq)[:, None]
    c = np.arange(nh * Nk)[None, :]
    gq = ((r % Nq) * nh + r // Nq) // Lq
    gk = ((c % Nk) * nh + c // Nk) // Lk
    return np.where(gq == gk, 0.0, -1e30).astype(np.float32)


# -----------------------------------------------------------------------------
# Kernel: whole SADecoder forward, fused, grid=()
# -----------------------------------------------------------------------------
def _sadecoder_kernel(trg_ref, enc_ref, g_ref, l_ref, bias_s_ref, bias_e_ref,
                      fcmask_ref, rowpool_ref, out_ref, *, cfg):
    f32 = jnp.float32
    H, nh = cfg.hid_dim, cfg.n_heads
    hd = H // nh
    T = cfg.source_size
    I = cfg.input_dim
    n_layers = cfg.n_layers

    BT = trg_ref.shape[0]
    assert BT % T == 0
    B = BT // T
    trg_off, att_off, _ = _out_layout(B, T, nh)

    def dot(a, b):                        # (M, K) @ (K, N), f32 MXU accumulate
        return jax.lax.dot_general(a, b, (((1,), (0,)), ((), ())),
                                   preferred_element_type=f32)

    def dot_t(a, b):                      # (M, K) x (N, K) -> (M, N)
        return jax.lax.dot_general(a, b, (((1,), (1,)), ((), ())),
                                   preferred_element_type=f32)

    def lw(l, name, rows):                # (rows, 128) weight tile
        r0 = _MAT_OFF[name]
        return l_ref[l, r0:r0 + rows, :]

    def lv(l, name):                      # (1, 128) bias / LN row
        r0 = _VEC_OFF[name]
        return l_ref[l, r0:r0 + 1, :]

    hmask = g_ref[_G_VEC + 2:_G_VEC + 3, :]      # ones on lanes [0, H)

    def layer_norm(x, l, gname, bname):
        # x is 128 lanes wide with zeros beyond H; hmask keeps var exact and the
        # zero-padded gamma/beta keep the padding lanes at exactly zero.
        g = lv(l, gname)
        b = lv(l, bname)
        mu = jnp.sum(x, axis=-1, keepdims=True) * (1.0 / H)
        xc = (x - mu) * hmask
        var = jnp.sum(xc * xc, axis=-1, keepdims=True) * (1.0 / H)
        return xc * jax.lax.rsqrt(var + 1e-5) * g + b

    def split_heads(x, base):
        # PyTorch's raw `.view(B, nh, -1, hd)` split, realised as a
        # column-block-major row stack: (N, 128) -> (nh*N, hd).
        return jnp.concatenate(
            [x[:, base + cb * hd: base + (cb + 1) * hd] for cb in range(nh)], axis=0)

    def merge_heads(xa, N):
        # Inverse raw-view merge: (nh*N, hd) -> (N, H) lane concat, so the
        # output projection is ONE K=H dot (not nh accumulated K=hd dots).
        return jnp.concatenate(
            [xa[cb * N:(cb + 1) * N, :] for cb in range(nh)], axis=1)

    inv_scale = 1.0 / float(np.sqrt(hd))

    def attention_core(qa, ka, va, bias):
        e = dot_t(qa, ka) * inv_scale + bias          # bias: host-precomputed mask
        m = jnp.max(e, axis=-1, keepdims=True)
        ex = jnp.exp(e - m)
        den = jnp.sum(ex, axis=-1, keepdims=True)
        att = ex * pl.reciprocal(den, approx=True)    # EUP vrcp
        xa = dot(att, va)
        return xa, att

    # ---- token embedding * sqrt(H); dropout == identity in eval mode ----
    w_tok = g_ref[_G_WTOK:_G_WTOK + I, :]
    b_tok = g_ref[_G_VEC:_G_VEC + 1, :]
    trg = (dot(trg_ref[...], w_tok) + b_tok) * float(np.sqrt(H))   # (BT, 128)
    enc = enc_ref[...]                                             # (BS, H)
    # TODO(synk): train-mode dropout would need a pltpu.prng_* mask here.

    bias_s = bias_s_ref[...]
    bias_e = bias_e_ref[...]
    att_store = None

    for l in range(n_layers):
        # ---- self attention + residual + LayerNorm ----
        qkv = dot(trg, lw(l, "wqkv_s", SLOT)) + lv(l, "b_qkv_s")   # fused QKV
        xa, _ = attention_core(split_heads(qkv, 0), split_heads(qkv, H),
                               split_heads(qkv, 2 * H), bias_s)
        sa = dot(merge_heads(xa, BT), lw(l, "wo_s", H)) + lv(l, "b_o_s")
        trg = layer_norm(trg + sa, l, "ln1_g", "ln1_b")

        # ---- encoder (cross) attention + residual + LayerNorm ----
        q = dot(trg, lw(l, "wq_e", SLOT)) + lv(l, "b_q_e")
        kv = dot(enc, lw(l, "wkv_e", H)) + lv(l, "b_kv_e")         # fused KV
        xa, att = attention_core(split_heads(q, 0), split_heads(kv, 0),
                                 split_heads(kv, H), bias_e)
        if l == n_layers - 1:                      # last layer's attention map
            pad = LANES - att.shape[1]
            att_store = att if pad == 0 else jnp.concatenate(
                [att, jnp.zeros((att.shape[0], pad), f32)], axis=1)
        ea = dot(merge_heads(xa, BT), lw(l, "wo_e", H)) + lv(l, "b_o_e")
        trg = layer_norm(trg + ea, l, "ln2_g", "ln2_b")

        # ---- position-wise feed forward + residual + LayerNorm ----
        h1 = jnp.maximum(dot(trg, lw(l, "wff1", SLOT)) + lv(l, "b_ff1"), 0.0)
        ff = dot(h1, lw(l, "wff2", SLOT)) + lv(l, "b_ff2")
        trg = layer_norm(trg + ff, l, "ln3_g", "ln3_b")

    # ---- lane-dense (128-wide) stores into the single output slab ----
    out_ref[trg_off:trg_off + BT, :] = trg
    out_ref[att_off:att_off + att_store.shape[0], :] = att_store

    # ---- fc_out on the flattened (B, T*H) activation, via precomputed
    #      rearranged weight + diagonal select + pooling matmuls ----
    p = dot(trg, g_ref[_G_WFC:_G_WFC + SLOT, :]) * fcmask_ref[...]   # (BT, 128)
    y = dot(p, g_ref[_G_COLP:_G_COLP + SLOT, :])                     # (BT, 128)
    b_fc = g_ref[_G_VEC + 1:_G_VEC + 2, :]
    out_ref[0:B, :] = dot(rowpool_ref[...], y) + b_fc                # (B, 128)


# -----------------------------------------------------------------------------
# Wrapper
# -----------------------------------------------------------------------------
def build_forward(cfg, params):
    assert cfg.hid_dim % cfg.n_heads == 0
    assert cfg.n_layers >= 1
    gslab, lslab = pack_params(cfg, params)
    kernel = functools.partial(_sadecoder_kernel, cfg=cfg)
    vmem = pl.BlockSpec(memory_space=pltpu.MemorySpace.VMEM)
    # NOTE(scale): at this toy size the kernel is latency-bound; for larger
    # B/T/S/n_layers add a batch grid axis (dimension_semantics=("parallel",...))
    # and tile the layer slab over a grid axis to respect v7x's 32 MiB scoped VMEM.

    @jax.jit
    def fwd(trg, enc_src):
        B, T, I = trg.shape
        S = enc_src.shape[1]
        assert T == cfg.source_size, "fc_out requires trg_len == source_size"
        H, nh = cfg.hid_dim, cfg.n_heads
        O_out = cfg.target_size * cfg.output_dim
        BT, BS = B * T, B * S
        NQ, NK = nh * BT, nh * BS
        trg_off, att_off, slab_rows = _out_layout(B, T, nh)

        # Shape-dependent static constants, built at trace time (not in-kernel).
        bias_s = _block_bias_np(nh, BT, T, BT, T)
        bias_e = _block_bias_np(nh, BT, T, BS, S)
        ci = np.arange(LANES)[None, :]
        ri = np.arange(BT)[:, None]
        fcmask = ((ci < T * O_out) &
                  ((ci // O_out) == (ri % T))).astype(np.float32)    # (BT, 128)
        rowpool = (np.arange(BT)[None, :] // T ==
                   np.arange(B)[:, None]).astype(np.float32)         # (B, BT)

        slab = pl.pallas_call(
            kernel,
            out_shape=jax.ShapeDtypeStruct((slab_rows, LANES), jnp.float32),
            in_specs=[vmem] * 8,
            out_specs=vmem,
        )(trg.reshape(BT, I), enc_src.reshape(BS, H), gslab, lslab,
          jnp.asarray(bias_s), jnp.asarray(bias_e),
          jnp.asarray(fcmask), jnp.asarray(rowpool))

        # Wrapper-side (cheap) slices / reshapes to the PyTorch output layouts.
        output = slab[0:B, :O_out].reshape(B, cfg.target_size, cfg.output_dim)
        trg_flat = slab[trg_off:trg_off + BT, :H].reshape(B, T * H)
        att_big = slab[att_off:att_off + NQ, :NK]
        # Map the raw-view (column-block-major) rows/cols back to (b, head, q, k).
        bn = np.arange(B)[:, None, None] * nh + np.arange(nh)[None, :, None]
        mq = bn * T + np.arange(T)[None, None, :]
        mk = bn * S + np.arange(S)[None, None, :]
        r_idx = (mq % nh) * BT + mq // nh                  # (B, nh, T)
        c_idx = (mk % nh) * BS + mk // nh                  # (B, nh, S)
        attention = att_big[r_idx[:, :, :, None], c_idx[:, :, None, :]]
        return output, trg_flat, attention

    return fwd


# -----------------------------------------------------------------------------
# Pure-JAX reference (mirrors the PyTorch forward exactly, incl. the raw .view())
# -----------------------------------------------------------------------------
def _mha_ref(q_in, k_in, v_in, lp, tag, n_heads):
    B, _, H = q_in.shape
    hd = H // n_heads
    Q = q_in @ lp[f"w_q_{tag}"] + lp[f"b_q_{tag}"]
    K = k_in @ lp[f"w_k_{tag}"] + lp[f"b_k_{tag}"]
    V = v_in @ lp[f"w_v_{tag}"] + lp[f"b_v_{tag}"]
    Q = Q.reshape(B, n_heads, -1, hd)     # == torch .view(B, nh, -1, hd)
    K = K.reshape(B, n_heads, -1, hd)
    V = V.reshape(B, n_heads, -1, hd)
    energy = jnp.einsum("bnid,bnjd->bnij", Q, K) / jnp.sqrt(jnp.float32(hd))
    attention = jax.nn.softmax(energy, axis=-1)
    x = jnp.einsum("bnij,bnjd->bnid", attention, V)
    x = x.reshape(B, -1, H)               # == .contiguous().view(B, -1, H)
    return x @ lp[f"w_o_{tag}"] + lp[f"b_o_{tag}"], attention


def _layer_norm_ref(x, g, b, eps=1e-5):
    mu = x.mean(-1, keepdims=True)
    var = ((x - mu) ** 2).mean(-1, keepdims=True)
    return (x - mu) / jnp.sqrt(var + eps) * g + b


def sadecoder_reference(trg, enc_src, params, cfg):
    B = trg.shape[0]
    H = cfg.hid_dim
    x = (trg @ params["w_tok"] + params["b_tok"]) * jnp.sqrt(jnp.float32(H))
    attention = None
    for lp in params["layers"]:
        _x, _ = _mha_ref(x, x, x, lp, "s", cfg.n_heads)
        x = _layer_norm_ref(x + _x, lp["ln1_g"], lp["ln1_b"])
        _x, attention = _mha_ref(x, enc_src, enc_src, lp, "e", cfg.n_heads)
        x = _layer_norm_ref(x + _x, lp["ln2_g"], lp["ln2_b"])
        _x = jnp.maximum(x @ lp["w_ff1"] + lp["b_ff1"], 0.0) @ lp["w_ff2"] + lp["b_ff2"]
        x = _layer_norm_ref(x + _x, lp["ln3_g"], lp["ln3_b"])
    x_flat = x.reshape(B, -1)
    out = (x_flat @ params["w_fc"] + params["b_fc"]).reshape(
        -1, cfg.target_size, cfg.output_dim)
    return out, x_flat, attention


# -----------------------------------------------------------------------------
# Deterministic parameter init (PyTorch-style uniform(-1/sqrt(fan_in), +))
# -----------------------------------------------------------------------------
def init_params(key, cfg):
    keys = iter(jax.random.split(key, 128))

    def lin(in_f, out_f):
        bound = 1.0 / np.sqrt(in_f)
        w = jax.random.uniform(next(keys), (in_f, out_f), jnp.float32, -bound, bound)
        b = jax.random.uniform(next(keys), (out_f,), jnp.float32, -bound, bound)
        return w, b

    H = cfg.hid_dim
    P = {}
    P["w_tok"], P["b_tok"] = lin(cfg.input_dim, H)
    P["w_fc"], P["b_fc"] = lin(cfg.source_size * H,
                               cfg.target_size * cfg.output_dim)
    layers = []
    for _ in range(cfg.n_layers):
        lp = {}
        for nm in ("q_s", "k_s", "v_s", "o_s", "q_e", "k_e", "v_e", "o_e"):
            lp[f"w_{nm}"], lp[f"b_{nm}"] = lin(H, H)
        lp["w_ff1"], lp["b_ff1"] = lin(H, cfg.pf_dim)
        lp["w_ff2"], lp["b_ff2"] = lin(cfg.pf_dim, H)
        for nm in ("ln1", "ln2", "ln3"):
            lp[f"{nm}_g"] = 1.0 + 0.1 * jax.random.normal(next(keys), (H,), jnp.float32)
            lp[f"{nm}_b"] = 0.1 * jax.random.normal(next(keys), (H,), jnp.float32)
        layers.append(lp)
    P["layers"] = layers
    return P


if __name__ == "__main__":
    cfg = SADecoderConfig(input_dim=16, hid_dim=32, n_layers=2, n_heads=4,
                          pf_dim=64, source_size=8, target_size=4, output_dim=3)
    B, S = 2, 8
    T = cfg.source_size            # trg_len must equal source_size (fc_out fan-in)

    key = jax.random.PRNGKey(0)
    k_p, k_t, k_e = jax.random.split(key, 3)
    params = init_params(k_p, cfg)
    trg = jax.random.normal(k_t, (B, T, cfg.input_dim), jnp.float32)
    enc_src = jax.random.normal(k_e, (B, S, cfg.hid_dim), jnp.float32)

    fwd = build_forward(cfg, params)
    out, trg_flat, attention = jax.block_until_ready(fwd(trg, enc_src))

    with jax.default_matmul_precision("highest"):
        out_r, trg_r, att_r = sadecoder_reference(trg, enc_src, params, cfg)

    assert out.shape == (B, cfg.target_size, cfg.output_dim), out.shape
    assert trg_flat.shape == (B, T * cfg.hid_dim), trg_flat.shape
    assert attention.shape == (B, cfg.n_heads, T, S), attention.shape
    np.testing.assert_allclose(np.asarray(out), np.asarray(out_r),
                               rtol=2e-3, atol=2e-3)
    np.testing.assert_allclose(np.asarray(trg_flat), np.asarray(trg_r),
                               rtol=2e-3, atol=2e-3)
    np.testing.assert_allclose(np.asarray(attention), np.asarray(att_r),
                               rtol=2e-3, atol=2e-3)

    print("KERNEL_OK")
</pallas_src>

<mosaic_0001>
module attributes {stable_mosaic.version = 11 : i64} {
  func.func @_sadecoder_kernel(%arg0: memref<16x16xf32, #tpu.memory_space<vmem>>, %arg1: memref<16x32xf32, #tpu.memory_space<vmem>>, %arg2: memref<392x128xf32, #tpu.memory_space<vmem>>, %arg3: memref<2x912x128xf32, #tpu.memory_space<vmem>>, %arg4: memref<64x64xf32, #tpu.memory_space<vmem>>, %arg5: memref<64x64xf32, #tpu.memory_space<vmem>>, %arg6: memref<16x128xf32, #tpu.memory_space<vmem>>, %arg7: memref<2x16xf32, #tpu.memory_space<vmem>>, %arg8: memref<88x128xf32, #tpu.memory_space<vmem>>) attributes {dimension_semantics = [], scalar_prefetch = 0 : i64, scratch_operands = 0 : i64, tpu.core_type = #tpu.core_type<tc>} {
    %c386 = arith.constant 386 : index
    %c0 = arith.constant 0 : index
    %0 = vector.load %arg2[%c386, %c0] : memref<392x128xf32, #tpu.memory_space<vmem>>, vector<1x128xf32>
    %c0_0 = arith.constant 0 : index
    %c0_1 = arith.constant 0 : index
    %1 = vector.load %arg2[%c0_0, %c0_1] : memref<392x128xf32, #tpu.memory_space<vmem>>, vector<16x128xf32>
    %c384 = arith.constant 384 : index
    %c0_2 = arith.constant 0 : index
    %2 = vector.load %arg2[%c384, %c0_2] : memref<392x128xf32, #tpu.memory_space<vmem>>, vector<1x128xf32>
    %c0_3 = arith.constant 0 : index
    %c0_4 = arith.constant 0 : index
    %3 = vector.load %arg0[%c0_3, %c0_4] : memref<16x16xf32, #tpu.memory_space<vmem>>, vector<16x16xf32>
    %cst = arith.constant dense<0.000000e+00> : vector<16x128xf32>
    %4 = tpu.matmul %3, %1, %cst {dimension_numbers = #tpu.dot_dimension_numbers<[1], [0], [0], [1], [0, 0, 1, 1], [], []>} : vector<16x16xf32>, vector<16x128xf32>, vector<16x128xf32> -> vector<16x128xf32>
    %5 = vector.broadcast %2 : vector<1x128xf32> to vector<16x128xf32>
    %6 = arith.addf %4, %5 : vector<16x128xf32>
    %cst_5 = arith.constant 5.65685415 : f32
    %7 = vector.broadcast %cst_5 : f32 to vector<16x128xf32>
    %8 = arith.mulf %6, %7 : vector<16x128xf32>
    %c0_6 = arith.constant 0 : index
    %c0_7 = arith.constant 0 : index
    %9 = vector.load %arg1[%c0_6, %c0_7] : memref<16x32xf32, #tpu.memory_space<vmem>>, vector<16x32xf32>
    %c0_8 = arith.constant 0 : index
    %c0_9 = arith.constant 0 : index
    %10 = vector.load %arg4[%c0_8, %c0_9] : memref<64x64xf32, #tpu.memory_space<vmem>>, vector<64x64xf32>
    %c0_10 = arith.constant 0 : index
    %c0_11 = arith.constant 0 : index
    %11 = vector.load %arg5[%c0_10, %c0_11] : memref<64x64xf32, #tpu.memory_space<vmem>>, vector<64x64xf32>
    %c0_12 = arith.constant 0 : index
    %c0_13 = arith.constant 0 : index
    %c0_14 = arith.constant 0 : index
    %12 = vector.load %arg3[%c0_12, %c0_13, %c0_14] : memref<2x912x128xf32, #tpu.memory_space<vmem>>, vector<1x128x128xf32>
    %13 = vector.shape_cast %12 : vector<1x128x128xf32> to vector<128x128xf32>
    %cst_15 = arith.constant dense<0.000000e+00> : vector<16x128xf32>
    %14 = tpu.matmul %8, %13, %cst_15 {dimension_numbers = #tpu.dot_dimension_numbers<[1], [0], [0], [1], [0, 0, 1, 1], [], []>} : vector<16x128xf32>, vector<128x128xf32>, vector<16x128xf32> -> vector<16x128xf32>
    %c0_16 = arith.constant 0 : index
    %c896 = arith.constant 896 : index
    %c0_17 = arith.constant 0 : index
    %15 = vector.load %arg3[%c0_16, %c896, %c0_17] : memref<2x912x128xf32, #tpu.memory_space<vmem>>, vector<1x1x128xf32>
    %16 = vector.shape_cast %15 : vector<1x1x128xf32> to vector<1x128xf32>
    %17 = vector.broadcast %16 : vector<1x128xf32> to vector<16x128xf32>
    %18 = arith.addf %14, %17 : vector<16x128xf32>
    %19 = vector.extract_strided_slice %18 {offsets = [0, 0], sizes = [16, 8], strides = [1, 1]} : vector<16x128xf32> to vector<16x8xf32>
    %20 = vector.extract_strided_slice %18 {offsets = [0, 8], sizes = [16, 8], strides = [1, 1]} : vector<16x128xf32> to vector<16x8xf32>
    %21 = vector.extract_strided_slice %18 {offsets = [0, 16], sizes = [16, 8], strides = [1, 1]} : vector<16x128xf32> to vector<16x8xf32>
    %22 = vector.extract_strided_slice %18 {offsets = [0, 24], sizes = [16, 8], strides = [1, 1]} : vector<16x128xf32> to vector<16x8xf32>
    %23 = tpu.concatenate %19, %20, %21, %22 in 0 : vector<16x8xf32>, vector<16x8xf32>, vector<16x8xf32>, vector<16x8xf32> -> vector<64x8xf32>
    %24 = vector.extract_strided_slice %18 {offsets = [0, 32], sizes = [16, 8], strides = [1, 1]} : vector<16x128xf32> to vector<16x8xf32>
    %25 = vector.extract_strided_slice %18 {offsets = [0, 40], sizes = [16, 8], strides = [1, 1]} : vector<16x128xf32> to vector<16x8xf32>
    %26 = vector.extract_strided_slice %18 {offsets = [0, 48], sizes = [16, 8], strides = [1, 1]} : vector<16x128xf32> to vector<16x8xf32>
    %27 = vector.extract_strided_slice %18 {offsets = [0, 56], sizes = [16, 8], strides = [1, 1]} : vector<16x128xf32> to vector<16x8xf32>
    %28 = tpu.concatenate %24, %25, %26, %27 in 0 : vector<16x8xf32>, vector<16x8xf32>, vector<16x8xf32>, vector<16x8xf32> -> vector<64x8xf32>
    %29 = vector.extract_strided_slice %18 {offsets = [0, 64], sizes = [16, 8], strides = [1, 1]} : vector<16x128xf32> to vector<16x8xf32>
    %30 = vector.extract_strided_slice %18 {offsets = [0, 72], sizes = [16, 8], strides = [1, 1]} : vector<16x128xf32> to vector<16x8xf32>
    %31 = vector.extract_strided_slice %18 {offsets = [0, 80], sizes = [16, 8], strides = [1, 1]} : vector<16x128xf32> to vector<16x8xf32>
    %32 = vector.extract_strided_slice %18 {offsets = [0, 88], sizes = [16, 8], strides = [1, 1]} : vector<16x128xf32> to vector<16x8xf32>
    %33 = tpu.concatenate %29, %30, %31, %32 in 0 : vector<16x8xf32>, vector<16x8xf32>, vector<16x8xf32>, vector<16x8xf32> -> vector<64x8xf32>
    %cst_18 = arith.constant dense<0.000000e+00> : vector<64x64xf32>
    %34 = tpu.matmul %23, %28, %cst_18 {dimension_numbers = #tpu.dot_dimension_numbers<[1], [1], [0], [0], [0, 0, 1, 0], [], []>} : vector<64x8xf32>, vector<64x8xf32>, vector<64x64xf32> -> vector<64x64xf32>
    %cst_19 = arith.constant 0.353553385 : f32
    %35 = vector.broadcast %cst_19 : f32 to vector<64x64xf32>
    %36 = arith.mulf %34, %35 : vector<64x64xf32>
    %37 = arith.addf %36, %10 : vector<64x64xf32>
    %cst_20 = arith.constant dense<0xFF800000> : vector<64xf32>
    %38 = vector.multi_reduction <maximumf>, %37, %cst_20 [1] : vector<64x64xf32> to vector<64xf32>
    %39 = vector.shape_cast %38 : vector<64xf32> to vector<64x1xf32>
    %40 = vector.broadcast %39 : vector<64x1xf32> to vector<64x64xf32>
    %41 = arith.subf %37, %40 : vector<64x64xf32>
    %42 = math.exp %41 : vector<64x64xf32>
    %cst_21 = arith.constant dense<0.000000e+00> : vector<64xf32>
    %43 = vector.multi_reduction <add>, %42, %cst_21 [1] : vector<64x64xf32> to vector<64xf32>
    %44 = vector.shape_cast %43 : vector<64xf32> to vector<64x1xf32>
    %45 = tpu.reciprocal %44 {approx = true} : vector<64x1xf32> -> vector<64x1xf32>
    %46 = vector.broadcast %45 : vector<64x1xf32> to vector<64x64xf32>
    %47 = arith.mulf %42, %46 : vector<64x64xf32>
    %cst_22 = arith.constant dense<0.000000e+00> : vector<64x8xf32>
    %48 = tpu.matmul %47, %33, %cst_22 {dimension_numbers = #tpu.dot_dimension_numbers<[1], [0], [0], [1], [0, 0, 1, 1], [], []>} : vector<64x64xf32>, vector<64x8xf32>, vector<64x8xf32> -> vector<64x8xf32>
    %49 = vector.extract_strided_slice %48 {offsets = [0, 0], sizes = [16, 8], strides = [1, 1]} : vector<64x8xf32> to vector<16x8xf32>
    %50 = vector.extract_strided_slice %48 {offsets = [16, 0], sizes = [16, 8], strides = [1, 1]} : vector<64x8xf32> to vector<16x8xf32>
    %51 = vector.extract_strided_slice %48 {offsets = [32, 0], sizes = [16, 8], strides = [1, 1]} : vector<64x8xf32> to vector<16x8xf32>
    %52 = vector.extract_strided_slice %48 {offsets = [48, 0], sizes = [16, 8], strides = [1, 1]} : vector<64x8xf32> to vector<16x8xf32>
    %53 = tpu.concatenate %49, %50, %51, %52 in 1 : vector<16x8xf32>, vector<16x8xf32>, vector<16x8xf32>, vector<16x8xf32> -> vector<16x32xf32>
    %c0_23 = arith.constant 0 : index
    %c128 = arith.constant 128 : index
    %c0_24 = arith.constant 0 : index
    %54 = vector.load %arg3[%c0_23, %c128, %c0_24] : memref<2x912x128xf32, #tpu.memory_space<vmem>>, vector<1x32x128xf32>
    %55 = vector.shape_cast %54 : vector<1x32x128xf32> to vector<32x128xf32>
    %cst_25 = arith.constant dense<0.000000e+00> : vector<16x128xf32>
    %56 = tpu.matmul %53, %55, %cst_25 {dimension_numbers = #tpu.dot_dimension_numbers<[1], [0], [0], [1], [0, 0, 1, 1], [], []>} : vector<16x32xf32>, vector<32x128xf32>, vector<16x128xf32> -> vector<16x128xf32>
    %c0_26 = arith.constant 0 : index
    %c897 = arith.constant 897 : index
    %c0_27 = arith.constant 0 : index
    %57 = vector.load %arg3[%c0_26, %c897, %c0_27] : memref<2x912x128xf32, #tpu.memory_space<vmem>>, vector<1x1x128xf32>
    %58 = vector.shape_cast %57 : vector<1x1x128xf32> to vector<1x128xf32>
    %59 = vector.broadcast %58 : vector<1x128xf32> to vector<16x128xf32>
    %60 = arith.addf %56, %59 : vector<16x128xf32>
    %61 = arith.addf %8, %60 : vector<16x128xf32>
    %c0_28 = arith.constant 0 : index
    %c903 = arith.constant 903 : index
    %c0_29 = arith.constant 0 : index
    %62 = vector.load %arg3[%c0_28, %c903, %c0_29] : memref<2x912x128xf32, #tpu.memory_space<vmem>>, vector<1x1x128xf32>
    %63 = vector.shape_cast %62 : vector<1x1x128xf32> to vector<1x128xf32>
    %c0_30 = arith.constant 0 : index
    %c904 = arith.constant 904 : index
    %c0_31 = arith.constant 0 : index
    %64 = vector.load %arg3[%c0_30, %c904, %c0_31] : memref<2x912x128xf32, #tpu.memory_space<vmem>>, vector<1x1x128xf32>
    %65 = vector.shape_cast %64 : vector<1x1x128xf32> to vector<1x128xf32>
    %cst_32 = arith.constant dense<0.000000e+00> : vector<16xf32>
    %66 = vector.multi_reduction <add>, %61, %cst_32 [1] : vector<16x128xf32> to vector<16xf32>
    %67 = vector.shape_cast %66 : vector<16xf32> to vector<16x1xf32>
    %cst_33 = arith.constant 3.125000e-02 : f32
    %68 = vector.broadcast %cst_33 : f32 to vector<16x1xf32>
    %69 = arith.mulf %67, %68 : vector<16x1xf32>
    %70 = vector.broadcast %69 : vector<16x1xf32> to vector<16x128xf32>
    %71 = arith.subf %61, %70 : vector<16x128xf32>
    %72 = vector.broadcast %0 : vector<1x128xf32> to vector<16x128xf32>
    %73 = arith.mulf %71, %72 : vector<16x128xf32>
    %74 = arith.mulf %73, %73 : vector<16x128xf32>
    %cst_34 = arith.constant dense<0.000000e+00> : vector<16xf32>
    %75 = vector.multi_reduction <add>, %74, %cst_34 [1] : vector<16x128xf32> to vector<16xf32>
    %76 = vector.shape_cast %75 : vector<16xf32> to vector<16x1xf32>
    %cst_35 = arith.constant 3.125000e-02 : f32
    %77 = vector.broadcast %cst_35 : f32 to vector<16x1xf32>
    %78 = arith.mulf %76, %77 : vector<16x1xf32>
    %cst_36 = arith.constant 9.99999974E-6 : f32
    %79 = vector.broadcast %cst_36 : f32 to vector<16x1xf32>
    %80 = arith.addf %78, %79 : vector<16x1xf32>
    %81 = math.rsqrt %80 : vector<16x1xf32>
    %82 = vector.broadcast %81 : vector<16x1xf32> to vector<16x128xf32>
    %83 = arith.mulf %73, %82 : vector<16x128xf32>
    %84 = vector.broadcast %63 : vector<1x128xf32> to vector<16x128xf32>
    %85 = arith.mulf %83, %84 : vector<16x128xf32>
    %86 = vector.broadcast %65 : vector<1x128xf32> to vector<16x128xf32>
    %87 = arith.addf %85, %86 : vector<16x128xf32>
    %c0_37 = arith.constant 0 : index
    %c256 = arith.constant 256 : index
    %c0_38 = arith.constant 0 : index
    %88 = vector.load %arg3[%c0_37, %c256, %c0_38] : memref<2x912x128xf32, #tpu.memory_space<vmem>>, vector<1x128x128xf32>
    %89 = vector.shape_cast %88 : vector<1x128x128xf32> to vector<128x128xf32>
    %cst_39 = arith.constant dense<0.000000e+00> : vector<16x128xf32>
    %90 = tpu.matmul %87, %89, %cst_39 {dimension_numbers = #tpu.dot_dimension_numbers<[1], [0], [0], [1], [0, 0, 1, 1], [], []>} : vector<16x128xf32>, vector<128x128xf32>, vector<16x128xf32> -> vector<16x128xf32>
    %c0_40 = arith.constant 0 : index
    %c898 = arith.constant 898 : index
    %c0_41 = arith.constant 0 : index
    %91 = vector.load %arg3[%c0_40, %c898, %c0_41] : memref<2x912x128xf32, #tpu.memory_space<vmem>>, vector<1x1x128xf32>
    %92 = vector.shape_cast %91 : vector<1x1x128xf32> to vector<1x128xf32>
    %93 = vector.broadcast %92 : vector<1x128xf32> to vector<16x128xf32>
    %94 = arith.addf %90, %93 : vector<16x128xf32>
    %c0_42 = arith.constant 0 : index
    %c384_43 = arith.constant 384 : index
    %c0_44 = arith.constant 0 : index
    %95 = vector.load %arg3[%c0_42, %c384_43, %c0_44] : memref<2x912x128xf32, #tpu.memory_space<vmem>>, vector<1x32x128xf32>
    %96 = vector.shape_cast %95 : vector<1x32x128xf32> to vector<32x128xf32>
    %cst_45 = arith.constant dense<0.000000e+00> : vector<16x128xf32>
    %97 = tpu.matmul %9, %96, %cst_45 {dimension_numbers = #tpu.dot_dimension_numbers<[1], [0], [0], [1], [0, 0, 1, 1], [], []>} : vector<16x32xf32>, vector<32x128xf32>, vector<16x128xf32> -> vector<16x128xf32>
    %c0_46 = arith.constant 0 : index
    %c899 = arith.constant 899 : index
    %c0_47 = arith.constant 0 : index
    %98 = vector.load %arg3[%c0_46, %c899, %c0_47] : memref<2x912x128xf32, #tpu.memory_space<vmem>>, vector<1x1x128xf32>
    %99 = vector.shape_cast %98 : vector<1x1x128xf32> to vector<1x128xf32>
    %100 = vector.broadcast %99 : vector<1x128xf32> to vector<16x128xf32>
    %101 = arith.addf %97, %100 : vector<16x128xf32>
    %102 = vector.extract_strided_slice %94 {offsets = [0, 0], sizes = [16, 8], strides = [1, 1]} : vector<16x128xf32> to vector<16x8xf32>
    %103 = vector.extract_strided_slice %94 {offsets = [0, 8], sizes = [16, 8], strides = [1, 1]} : vector<16x128xf32> to vector<16x8xf32>
    %104 = vector.extract_strided_slice %94 {offsets = [0, 16], sizes = [16, 8], strides = [1, 1]} : vector<16x128xf32> to vector<16x8xf32>
    %105 = vector.extract_strided_slice %94 {offsets = [0, 24], sizes = [16, 8], strides = [1, 1]} : vector<16x128xf32> to vector<16x8xf32>
    %106 = tpu.concatenate %102, %103, %104, %105 in 0 : vector<16x8xf32>, vector<16x8xf32>, vector<16x8xf32>, vector<16x8xf32> -> vector<64x8xf32>
    %107 = vector.extract_strided_slice %101 {offsets = [0, 0], sizes = [16, 8], strides = [1, 1]} : vector<16x128xf32> to vector<16x8xf32>
    %108 = vector.extract_strided_slice %101 {offsets = [0, 8], sizes = [16, 8], strides = [1, 1]} : vector<16x128xf32> to vector<16x8xf32>
    %109 = vector.extract_strided_slice %101 {offsets = [0, 16], sizes = [16, 8], strides = [1, 1]} : vector<16x128xf32> to vector<16x8xf32>
    %110 = vector.extract_strided_slice %101 {offsets = [0, 24], sizes = [16, 8], strides = [1, 1]} : vector<16x128xf32> to vector<16x8xf32>
    %111 = tpu.concatenate %107, %108, %109, %110 in 0 : vector<16x8xf32>, vector<16x8xf32>, vector<16x8xf32>, vector<16x8xf32> -> vector<64x8xf32>
    %112 = vector.extract_strided_slice %101 {offsets = [0, 32], sizes = [16, 8], strides = [1, 1]} : vector<16x128xf32> to vector<16x8xf32>
    %113 = vector.extract_strided_slice %101 {offsets = [0, 40], sizes = [16, 8], strides = [1, 1]} : vector<16x128xf32> to vector<16x8xf32>
    %114 = vector.extract_strided_slice %101 {offsets = [0, 48], sizes = [16, 8], strides = [1, 1]} : vector<16x128xf32> to vector<16x8xf32>
    %115 = vector.extract_strided_slice %101 {offsets = [0, 56], sizes = [16, 8], strides = [1, 1]} : vector<16x128xf32> to vector<16x8xf32>
    %116 = tpu.concatenate %112, %113, %114, %115 in 0 : vector<16x8xf32>, vector<16x8xf32>, vector<16x8xf32>, vector<16x8xf32> -> vector<64x8xf32>
    %cst_48 = arith.constant dense<0.000000e+00> : vector<64x64xf32>
    %117 = tpu.matmul %106, %111, %cst_48 {dimension_numbers = #tpu.dot_dimension_numbers<[1], [1], [0], [0], [0, 0, 1, 0], [], []>} : vector<64x8xf32>, vector<64x8xf32>, vector<64x64xf32> -> vector<64x64xf32>
    %cst_49 = arith.constant 0.353553385 : f32
    %118 = vector.broadcast %cst_49 : f32 to vector<64x64xf32>
    %119 = arith.mulf %117, %118 : vector<64x64xf32>
    %120 = arith.addf %119, %11 : vector<64x64xf32>
    %cst_50 = arith.constant dense<0xFF800000> : vector<64xf32>
    %121 = vector.multi_reduction <maximumf>, %120, %cst_50 [1] : vector<64x64xf32> to vector<64xf32>
    %122 = vector.shape_cast %121 : vector<64xf32> to vector<64x1xf32>
    %123 = vector.broadcast %122 : vector<64x1xf32> to vector<64x64xf32>
    %124 = arith.subf %120, %123 : vector<64x64xf32>
    %125 = math.exp %124 : vector<64x64xf32>
    %cst_51 = arith.constant dense<0.000000e+00> : vector<64xf32>
    %126 = vector.multi_reduction <add>, %125, %cst_51 [1] : vector<64x64xf32> to vector<64xf32>
    %127 = vector.shape_cast %126 : vector<64xf32> to vector<64x1xf32>
    %128 = tpu.reciprocal %127 {approx = true} : vector<64x1xf32> -> vector<64x1xf32>
    %129 = vector.broadcast %128 : vector<64x1xf32> to vector<64x64xf32>
    %130 = arith.mulf %125, %129 : vector<64x64xf32>
    %cst_52 = arith.constant dense<0.000000e+00> : vector<64x8xf32>
    %131 = tpu.matmul %130, %116, %cst_52 {dimension_numbers = #tpu.dot_dimension_numbers<[1], [0], [0], [1], [0, 0, 1, 1], [], []>} : vector<64x64xf32>, vector<64x8xf32>, vector<64x8xf32> -> vector<64x8xf32>
    %132 = vector.extract_strided_slice %131 {offsets = [0, 0], sizes = [16, 8], strides = [1, 1]} : vector<64x8xf32> to vector<16x8xf32>
    %133 = vector.extract_strided_slice %131 {offsets = [16, 0], sizes = [16, 8], strides = [1, 1]} : vector<64x8xf32> to vector<16x8xf32>
    %134 = vector.extract_strided_slice %131 {offsets = [32, 0], sizes = [16, 8], strides = [1, 1]} : vector<64x8xf32> to vector<16x8xf32>
    %135 = vector.extract_strided_slice %131 {offsets = [48, 0], sizes = [16, 8], strides = [1, 1]} : vector<64x8xf32> to vector<16x8xf32>
    %136 = tpu.concatenate %132, %133, %134, %135 in 1 : vector<16x8xf32>, vector<16x8xf32>, vector<16x8xf32>, vector<16x8xf32> -> vector<16x32xf32>
    %c0_53 = arith.constant 0 : index
    %c512 = arith.constant 512 : index
    %c0_54 = arith.constant 0 : index
    %137 = vector.load %arg3[%c0_53, %c512, %c0_54] : memref<2x912x128xf32, #tpu.memory_space<vmem>>, vector<1x32x128xf32>
    %138 = vector.shape_cast %137 : vector<1x32x128xf32> to vector<32x128xf32>
    %cst_55 = arith.constant dense<0.000000e+00> : vector<16x128xf32>
    %139 = tpu.matmul %136, %138, %cst_55 {dimension_numbers = #tpu.dot_dimension_numbers<[1], [0], [0], [1], [0, 0, 1, 1], [], []>} : vector<16x32xf32>, vector<32x128xf32>, vector<16x128xf32> -> vector<16x128xf32>
    %c0_56 = arith.constant 0 : index
    %c900 = arith.constant 900 : index
    %c0_57 = arith.constant 0 : index
    %140 = vector.load %arg3[%c0_56, %c900, %c0_57] : memref<2x912x128xf32, #tpu.memory_space<vmem>>, vector<1x1x128xf32>
    %141 = vector.shape_cast %140 : vector<1x1x128xf32> to vector<1x128xf32>
    %142 = vector.broadcast %141 : vector<1x128xf32> to vector<16x128xf32>
    %143 = arith.addf %139, %142 : vector<16x128xf32>
    %144 = arith.addf %87, %143 : vector<16x128xf32>
    %c0_58 = arith.constant 0 : index
    %c905 = arith.constant 905 : index
    %c0_59 = arith.constant 0 : index
    %145 = vector.load %arg3[%c0_58, %c905, %c0_59] : memref<2x912x128xf32, #tpu.memory_space<vmem>>, vector<1x1x128xf32>
    %146 = vector.shape_cast %145 : vector<1x1x128xf32> to vector<1x128xf32>
    %c0_60 = arith.constant 0 : index
    %c906 = arith.constant 906 : index
    %c0_61 = arith.constant 0 : index
    %147 = vector.load %arg3[%c0_60, %c906, %c0_61] : memref<2x912x128xf32, #tpu.memory_space<vmem>>, vector<1x1x128xf32>
    %148 = vector.shape_cast %147 : vector<1x1x128xf32> to vector<1x128xf32>
    %cst_62 = arith.constant dense<0.000000e+00> : vector<16xf32>
    %149 = vector.multi_reduction <add>, %144, %cst_62 [1] : vector<16x128xf32> to vector<16xf32>
    %150 = vector.shape_cast %149 : vector<16xf32> to vector<16x1xf32>
    %cst_63 = arith.constant 3.125000e-02 : f32
    %151 = vector.broadcast %cst_63 : f32 to vector<16x1xf32>
    %152 = arith.mulf %150, %151 : vector<16x1xf32>
    %153 = vector.broadcast %152 : vector<16x1xf32> to vector<16x128xf32>
    %154 = arith.subf %144, %153 : vector<16x128xf32>
    %155 = vector.broadcast %0 : vector<1x128xf32> to vector<16x128xf32>
    %156 = arith.mulf %154, %155 : vector<16x128xf32>
    %157 = arith.mulf %156, %156 : vector<16x128xf32>
    %cst_64 = arith.constant dense<0.000000e+00> : vector<16xf32>
    %158 = vector.multi_reduction <add>, %157, %cst_64 [1] : vector<16x128xf32> to vector<16xf32>
    %159 = vector.shape_cast %158 : vector<16xf32> to vector<16x1xf32>
    %cst_65 = arith.constant 3.125000e-02 : f32
    %160 = vector.broadcast %cst_65 : f32 to vector<16x1xf32>
    %161 = arith.mulf %159, %160 : vector<16x1xf32>
    %cst_66 = arith.constant 9.99999974E-6 : f32
    %162 = vector.broadcast %cst_66 : f32 to vector<16x1xf32>
    %163 = arith.addf %161, %162 : vector<16x1xf32>
    %164 = math.rsqrt %163 : vector<16x1xf32>
    %165 = vector.broadcast %164 : vector<16x1xf32> to vector<16x128xf32>
    %166 = arith.mulf %156, %165 : vector<16x128xf32>
    %167 = vector.broadcast %146 : vector<1x128xf32> to vector<16x128xf32>
    %168 = arith.mulf %166, %167 : vector<16x128xf32>
    %169 = vector.broadcast %148 : vector<1x128xf32> to vector<16x128xf32>
    %170 = arith.addf %168, %169 : vector<16x128xf32>
    %c0_67 = arith.constant 0 : index
    %c640 = arith.constant 640 : index
    %c0_68 = arith.constant 0 : index
    %171 = vector.load %arg3[%c0_67, %c640, %c0_68] : memref<2x912x128xf32, #tpu.memory_space<vmem>>, vector<1x128x128xf32>
    %172 = vector.shape_cast %171 : vector<1x128x128xf32> to vector<128x128xf32>
    %cst_69 = arith.constant dense<0.000000e+00> : vector<16x128xf32>
    %173 = tpu.matmul %170, %172, %cst_69 {dimension_numbers = #tpu.dot_dimension_numbers<[1], [0], [0], [1], [0, 0, 1, 1], [], []>} : vector<16x128xf32>, vector<128x128xf32>, vector<16x128xf32> -> vector<16x128xf32>
    %c0_70 = arith.constant 0 : index
    %c901 = arith.constant 901 : index
    %c0_71 = arith.constant 0 : index
    %174 = vector.load %arg3[%c0_70, %c901, %c0_71] : memref<2x912x128xf32, #tpu.memory_space<vmem>>, vector<1x1x128xf32>
    %175 = vector.shape_cast %174 : vector<1x1x128xf32> to vector<1x128xf32>
    %176 = vector.broadcast %175 : vector<1x128xf32> to vector<16x128xf32>
    %177 = arith.addf %173, %176 : vector<16x128xf32>
    %cst_72 = arith.constant 0.000000e+00 : f32
    %178 = vector.broadcast %cst_72 : f32 to vector<16x128xf32>
    %179 = arith.maximumf %177, %178 : vector<16x128xf32>
    %c0_73 = arith.constant 0 : index
    %c768 = arith.constant 768 : index
    %c0_74 = arith.constant 0 : index
    %180 = vector.load %arg3[%c0_73, %c768, %c0_74] : memref<2x912x128xf32, #tpu.memory_space<vmem>>, vector<1x128x128xf32>
    %181 = vector.shape_cast %180 : vector<1x128x128xf32> to vector<128x128xf32>
    %cst_75 = arith.constant dense<0.000000e+00> : vector<16x128xf32>
    %182 = tpu.matmul %179, %181, %cst_75 {dimension_numbers = #tpu.dot_dimension_numbers<[1], [0], [0], [1], [0, 0, 1, 1], [], []>} : vector<16x128xf32>, vector<128x128xf32>, vector<16x128xf32> -> vector<16x128xf32>
    %c0_76 = arith.constant 0 : index
    %c902 = arith.constant 902 : index
    %c0_77 = arith.constant 0 : index
    %183 = vector.load %arg3[%c0_76, %c902, %c0_77] : memref<2x912x128xf32, #tpu.memory_space<vmem>>, vector<1x1x128xf32>
    %184 = vector.shape_cast %183 : vector<1x1x128xf32> to vector<1x128xf32>
    %185 = vector.broadcast %184 : vector<1x128xf32> to vector<16x128xf32>
    %186 = arith.addf %182, %185 : vector<16x128xf32>
    %187 = arith.addf %170, %186 : vector<16x128xf32>
    %c0_78 = arith.constant 0 : index
    %c907 = arith.constant 907 : index
    %c0_79 = arith.constant 0 : index
    %188 = vector.load %arg3[%c0_78, %c907, %c0_79] : memref<2x912x128xf32, #tpu.memory_space<vmem>>, vector<1x1x128xf32>
    %189 = vector.shape_cast %188 : vector<1x1x128xf32> to vector<1x128xf32>
    %c0_80 = arith.constant 0 : index
    %c908 = arith.constant 908 : index
    %c0_81 = arith.constant 0 : index
    %190 = vector.load %arg3[%c0_80, %c908, %c0_81] : memref<2x912x128xf32, #tpu.memory_space<vmem>>, vector<1x1x128xf32>
    %191 = vector.shape_cast %190 : vector<1x1x128xf32> to vector<1x128xf32>
    %cst_82 = arith.constant dense<0.000000e+00> : vector<16xf32>
    %192 = vector.multi_reduction <add>, %187, %cst_82 [1] : vector<16x128xf32> to vector<16xf32>
    %193 = vector.shape_cast %192 : vector<16xf32> to vector<16x1xf32>
    %cst_83 = arith.constant 3.125000e-02 : f32
    %194 = vector.broadcast %cst_83 : f32 to vector<16x1xf32>
    %195 = arith.mulf %193, %194 : vector<16x1xf32>
    %196 = vector.broadcast %195 : vector<16x1xf32> to vector<16x128xf32>
    %197 = arith.subf %187, %196 : vector<16x128xf32>
    %198 = vector.broadcast %0 : vector<1x128xf32> to vector<16x128xf32>
    %199 = arith.mulf %197, %198 : vector<16x128xf32>
    %200 = arith.mulf %199, %199 : vector<16x128xf32>
    %cst_84 = arith.constant dense<0.000000e+00> : vector<16xf32>
    %201 = vector.multi_reduction <add>, %200, %cst_84 [1] : vector<16x128xf32> to vector<16xf32>
    %202 = vector.shape_cast %201 : vector<16xf32> to vector<16x1xf32>
    %cst_85 = arith.constant 3.125000e-02 : f32
    %203 = vector.broadcast %cst_85 : f32 to vector<16x1xf32>
    %204 = arith.mulf %202, %203 : vector<16x1xf32>
    %cst_86 = arith.constant 9.99999974E-6 : f32
    %205 = vector.broadcast %cst_86 : f32 to vector<16x1xf32>
    %206 = arith.addf %204, %205 : vector<16x1xf32>
    %207 = math.rsqrt %206 : vector<16x1xf32>
    %208 = vector.broadcast %207 : vector<16x1xf32> to vector<16x128xf32>
    %209 = arith.mulf %199, %208 : vector<16x128xf32>
    %210 = vector.broadcast %189 : vector<1x128xf32> to vector<16x128xf32>
    %211 = arith.mulf %209, %210 : vector<16x128xf32>
    %212 = vector.broadcast %191 : vector<1x128xf32> to vector<16x128xf32>
    %213 = arith.addf %211, %212 : vector<16x128xf32>
    %c1 = arith.constant 1 : index
    %c0_87 = arith.constant 0 : index
    %c0_88 = arith.constant 0 : index
    %214 = vector.load %arg3[%c1, %c0_87, %c0_88] : memref<2x912x128xf32, #tpu.memory_space<vmem>>, vector<1x128x128xf32>
    %215 = vector.shape_cast %214 : vector<1x128x128xf32> to vector<128x128xf32>
    %cst_89 = arith.constant dense<0.000000e+00> : vector<16x128xf32>
    %216 = tpu.matmul %213, %215, %cst_89 {dimension_numbers = #tpu.dot_dimension_numbers<[1], [0], [0], [1], [0, 0, 1, 1], [], []>} : vector<16x128xf32>, vector<128x128xf32>, vector<16x128xf32> -> vector<16x128xf32>
    %c1_90 = arith.constant 1 : index
    %c896_91 = arith.constant 896 : index
    %c0_92 = arith.constant 0 : index
    %217 = vector.load %arg3[%c1_90, %c896_91, %c0_92] : memref<2x912x128xf32, #tpu.memory_space<vmem>>, vector<1x1x128xf32>
    %218 = vector.shape_cast %217 : vector<1x1x128xf32> to vector<1x128xf32>
    %219 = vector.broadcast %218 : vector<1x128xf32> to vector<16x128xf32>
    %220 = arith.addf %216, %219 : vector<16x128xf32>
    %221 = vector.extract_strided_slice %220 {offsets = [0, 0], sizes = [16, 8], strides = [1, 1]} : vector<16x128xf32> to vector<16x8xf32>
    %222 = vector.extract_strided_slice %220 {offsets = [0, 8], sizes = [16, 8], strides = [1, 1]} : vector<16x128xf32> to vector<16x8xf32>
    %223 = vector.extract_strided_slice %220 {offsets = [0, 16], sizes = [16, 8], strides = [1, 1]} : vector<16x128xf32> to vector<16x8xf32>
    %224 = vector.extract_strided_slice %220 {offsets = [0, 24], sizes = [16, 8], strides = [1, 1]} : vector<16x128xf32> to vector<16x8xf32>
    %225 = tpu.concatenate %221, %222, %223, %224 in 0 : vector<16x8xf32>, vector<16x8xf32>, vector<16x8xf32>, vector<16x8xf32> -> vector<64x8xf32>
    %226 = vector.extract_strided_slice %220 {offsets = [0, 32], sizes = [16, 8], strides = [1, 1]} : vector<16x128xf32> to vector<16x8xf32>
    %227 = vector.extract_strided_slice %220 {offsets = [0, 40], sizes = [16, 8], strides = [1, 1]} : vector<16x128xf32> to vector<16x8xf32>
    %228 = vector.extract_strided_slice %220 {offsets = [0, 48], sizes = [16, 8], strides = [1, 1]} : vector<16x128xf32> to vector<16x8xf32>
    %229 = vector.extract_strided_slice %220 {offsets = [0, 56], sizes = [16, 8], strides = [1, 1]} : vector<16x128xf32> to vector<16x8xf32>
    %230 = tpu.concatenate %226, %227, %228, %229 in 0 : vector<16x8xf32>, vector<16x8xf32>, vector<16x8xf32>, vector<16x8xf32> -> vector<64x8xf32>
    %231 = vector.extract_strided_slice %220 {offsets = [0, 64], sizes = [16, 8], strides = [1, 1]} : vector<16x128xf32> to vector<16x8xf32>
    %232 = vector.extract_strided_slice %220 {offsets = [0, 72], sizes = [16, 8], strides = [1, 1]} : vector<16x128xf32> to vector<16x8xf32>
    %233 = vector.extract_strided_slice %220 {offsets = [0, 80], sizes = [16, 8], strides = [1, 1]} : vector<16x128xf32> to vector<16x8xf32>
    %234 = vector.extract_strided_slice %220 {offsets = [0, 88], sizes = [16, 8], strides = [1, 1]} : vector<16x128xf32> to vector<16x8xf32>
    %235 = tpu.concatenate %231, %232, %233, %234 in 0 : vector<16x8xf32>, vector<16x8xf32>, vector<16x8xf32>, vector<16x8xf32> -> vector<64x8xf32>
    %cst_93 = arith.constant dense<0.000000e+00> : vector<64x64xf32>
    %236 = tpu.matmul %225, %230, %cst_93 {dimension_numbers = #tpu.dot_dimension_numbers<[1], [1], [0], [0], [0, 0, 1, 0], [], []>} : vector<64x8xf32>, vector<64x8xf32>, vector<64x64xf32> -> vector<64x64xf32>
    %cst_94 = arith.constant 0.353553385 : f32
    %237 = vector.broadcast %cst_94 : f32 to vector<64x64xf32>
    %238 = arith.mulf %236, %237 : vector<64x64xf32>
    %239 = arith.addf %238, %10 : vector<64x64xf32>
    %cst_95 = arith.constant dense<0xFF800000> : vector<64xf32>
    %240 = vector.multi_reduction <maximumf>, %239, %cst_95 [1] : vector<64x64xf32> to vector<64xf32>
    %241 = vector.shape_cast %240 : vector<64xf32> to vector<64x1xf32>
    %242 = vector.broadcast %241 : vector<64x1xf32> to vector<64x64xf32>
    %243 = arith.subf %239, %242 : vector<64x64xf32>
    %244 = math.exp %243 : vector<64x64xf32>
    %cst_96 = arith.constant dense<0.000000e+00> : vector<64xf32>
    %245 = vector.multi_reduction <add>, %244, %cst_96 [1] : vector<64x64xf32> to vector<64xf32>
    %246 = vector.shape_cast %245 : vector<64xf32> to vector<64x1xf32>
    %247 = tpu.reciprocal %246 {approx = true} : vector<64x1xf32> -> vector<64x1xf32>
    %248 = vector.broadcast %247 : vector<64x1xf32> to vector<64x64xf32>
    %249 = arith.mulf %244, %248 : vector<64x64xf32>
    %cst_97 = arith.constant dense<0.000000e+00> : vector<64x8xf32>
    %250 = tpu.matmul %249, %235, %cst_97 {dimension_numbers = #tpu.dot_dimension_numbers<[1], [0], [0], [1], [0, 0, 1, 1], [], []>} : vector<64x64xf32>, vector<64x8xf32>, vector<64x8xf32> -> vector<64x8xf32>
    %251 = vector.extract_strided_slice %250 {offsets = [0, 0], sizes = [16, 8], strides = [1, 1]} : vector<64x8xf32> to vector<16x8xf32>
    %252 = vector.extract_strided_slice %250 {offsets = [16, 0], sizes = [16, 8], strides = [1, 1]} : vector<64x8xf32> to vector<16x8xf32>
    %253 = vector.extract_strided_slice %250 {offsets = [32, 0], sizes = [16, 8], strides = [1, 1]} : vector<64x8xf32> to vector<16x8xf32>
    %254 = vector.extract_strided_slice %250 {offsets = [48, 0], sizes = [16, 8], strides = [1, 1]} : vector<64x8xf32> to vector<16x8xf32>
    %255 = tpu.concatenate %251, %252, %253, %254 in 1 : vector<16x8xf32>, vector<16x8xf32>, vector<16x8xf32>, vector<16x8xf32> -> vector<16x32xf32>
    %c1_98 = arith.constant 1 : index
    %c128_99 = arith.constant 128 : index
    %c0_100 = arith.constant 0 : index
    %256 = vector.load %arg3[%c1_98, %c128_99, %c0_100] : memref<2x912x128xf32, #tpu.memory_space<vmem>>, vector<1x32x128xf32>
    %257 = vector.shape_cast %256 : vector<1x32x128xf32> to vector<32x128xf32>
    %cst_101 = arith.constant dense<0.000000e+00> : vector<16x128xf32>
    %258 = tpu.matmul %255, %257, %cst_101 {dimension_numbers = #tpu.dot_dimension_numbers<[1], [0], [0], [1], [0, 0, 1, 1], [], []>} : vector<16x32xf32>, vector<32x128xf32>, vector<16x128xf32> -> vector<16x128xf32>
    %c1_102 = arith.constant 1 : index
    %c897_103 = arith.constant 897 : index
    %c0_104 = arith.constant 0 : index
    %259 = vector.load %arg3[%c1_102, %c897_103, %c0_104] : memref<2x912x128xf32, #tpu.memory_space<vmem>>, vector<1x1x128xf32>
    %260 = vector.shape_cast %259 : vector<1x1x128xf32> to vector<1x128xf32>
    %261 = vector.broadcast %260 : vector<1x128xf32> to vector<16x128xf32>
    %262 = arith.addf %258, %261 : vector<16x128xf32>
    %263 = arith.addf %213, %262 : vector<16x128xf32>
    %c1_105 = arith.constant 1 : index
    %c903_106 = arith.constant 903 : index
    %c0_107 = arith.constant 0 : index
    %264 = vector.load %arg3[%c1_105, %c903_106, %c0_107] : memref<2x912x128xf32, #tpu.memory_space<vmem>>, vector<1x1x128xf32>
    %265 = vector.shape_cast %264 : vector<1x1x128xf32> to vector<1x128xf32>
    %c1_108 = arith.constant 1 : index
    %c904_109 = arith.constant 904 : index
    %c0_110 = arith.constant 0 : index
    %266 = vector.load %arg3[%c1_108, %c904_109, %c0_110] : memref<2x912x128xf32, #tpu.memory_space<vmem>>, vector<1x1x128xf32>
    %267 = vector.shape_cast %266 : vector<1x1x128xf32> to vector<1x128xf32>
    %cst_111 = arith.constant dense<0.000000e+00> : vector<16xf32>
    %268 = vector.multi_reduction <add>, %263, %cst_111 [1] : vector<16x128xf32> to vector<16xf32>
    %269 = vector.shape_cast %268 : vector<16xf32> to vector<16x1xf32>
    %cst_112 = arith.constant 3.125000e-02 : f32
    %270 = vector.broadcast %cst_112 : f32 to vector<16x1xf32>
    %271 = arith.mulf %269, %270 : vector<16x1xf32>
    %272 = vector.broadcast %271 : vector<16x1xf32> to vector<16x128xf32>
    %273 = arith.subf %263, %272 : vector<16x128xf32>
    %274 = vector.broadcast %0 : vector<1x128xf32> to vector<16x128xf32>
    %275 = arith.mulf %273, %274 : vector<16x128xf32>
    %276 = arith.mulf %275, %275 : vector<16x128xf32>
    %cst_113 = arith.constant dense<0.000000e+00> : vector<16xf32>
    %277 = vector.multi_reduction <add>, %276, %cst_113 [1] : vector<16x128xf32> to vector<16xf32>
    %278 = vector.shape_cast %277 : vector<16xf32> to vector<16x1xf32>
    %cst_114 = arith.constant 3.125000e-02 : f32
    %279 = vector.broadcast %cst_114 : f32 to vector<16x1xf32>
    %280 = arith.mulf %278, %279 : vector<16x1xf32>
    %cst_115 = arith.constant 9.99999974E-6 : f32
    %281 = vector.broadcast %cst_115 : f32 to vector<16x1xf32>
    %282 = arith.addf %280, %281 : vector<16x1xf32>
    %283 = math.rsqrt %282 : vector<16x1xf32>
    %284 = vector.broadcast %283 : vector<16x1xf32> to vector<16x128xf32>
    %285 = arith.mulf %275, %284 : vector<16x128xf32>
    %286 = vector.broadcast %265 : vector<1x128xf32> to vector<16x128xf32>
    %287 = arith.mulf %285, %286 : vector<16x128xf32>
    %288 = vector.broadcast %267 : vector<1x128xf32> to vector<16x128xf32>
    %289 = arith.addf %287, %288 : vector<16x128xf32>
    %c1_116 = arith.constant 1 : index
    %c256_117 = arith.constant 256 : index
    %c0_118 = arith.constant 0 : index
    %290 = vector.load %arg3[%c1_116, %c256_117, %c0_118] : memref<2x912x128xf32, #tpu.memory_space<vmem>>, vector<1x128x128xf32>
    %291 = vector.shape_cast %290 : vector<1x128x128xf32> to vector<128x128xf32>
    %cst_119 = arith.constant dense<0.000000e+00> : vector<16x128xf32>
    %292 = tpu.matmul %289, %291, %cst_119 {dimension_numbers = #tpu.dot_dimension_numbers<[1], [0], [0], [1], [0, 0, 1, 1], [], []>} : vector<16x128xf32>, vector<128x128xf32>, vector<16x128xf32> -> vector<16x128xf32>
    %c1_120 = arith.constant 1 : index
    %c898_121 = arith.constant 898 : index
    %c0_122 = arith.constant 0 : index
    %293 = vector.load %arg3[%c1_120, %c898_121, %c0_122] : memref<2x912x128xf32, #tpu.memory_space<vmem>>, vector<1x1x128xf32>
    %294 = vector.shape_cast %293 : vector<1x1x128xf32> to vector<1x128xf32>
    %295 = vector.broadcast %294 : vector<1x128xf32> to vector<16x128xf32>
    %296 = arith.addf %292, %295 : vector<16x128xf32>
    %c1_123 = arith.constant 1 : index
    %c384_124 = arith.constant 384 : index
    %c0_125 = arith.constant 0 : index
    %297 = vector.load %arg3[%c1_123, %c384_124, %c0_125] : memref<2x912x128xf32, #tpu.memory_space<vmem>>, vector<1x32x128xf32>
    %298 = vector.shape_cast %297 : vector<1x32x128xf32> to vector<32x128xf32>
    %cst_126 = arith.constant dense<0.000000e+00> : vector<16x128xf32>
    %299 = tpu.matmul %9, %298, %cst_126 {dimension_numbers = #tpu.dot_dimension_numbers<[1], [0], [0], [1], [0, 0, 1, 1], [], []>} : vector<16x32xf32>, vector<32x128xf32>, vector<16x128xf32> -> vector<16x128xf32>
    %c1_127 = arith.constant 1 : index
    %c899_128 = arith.constant 899 : index
    %c0_129 = arith.constant 0 : index
    %300 = vector.load %arg3[%c1_127, %c899_128, %c0_129] : memref<2x912x128xf32, #tpu.memory_space<vmem>>, vector<1x1x128xf32>
    %301 = vector.shape_cast %300 : vector<1x1x128xf32> to vector<1x128xf32>
    %302 = vector.broadcast %301 : vector<1x128xf32> to vector<16x128xf32>
    %303 = arith.addf %299, %302 : vector<16x128xf32>
    %304 = vector.extract_strided_slice %296 {offsets = [0, 0], sizes = [16, 8], strides = [1, 1]} : vector<16x128xf32> to vector<16x8xf32>
    %305 = vector.extract_strided_slice %296 {offsets = [0, 8], sizes = [16, 8], strides = [1, 1]} : vector<16x128xf32> to vector<16x8xf32>
    %306 = vector.extract_strided_slice %296 {offsets = [0, 16], sizes = [16, 8], strides = [1, 1]} : vector<16x128xf32> to vector<16x8xf32>
    %307 = vector.extract_strided_slice %296 {offsets = [0, 24], sizes = [16, 8], strides = [1, 1]} : vector<16x128xf32> to vector<16x8xf32>
    %308 = tpu.concatenate %304, %305, %306, %307 in 0 : vector<16x8xf32>, vector<16x8xf32>, vector<16x8xf32>, vector<16x8xf32> -> vector<64x8xf32>
    %309 = vector.extract_strided_slice %303 {offsets = [0, 0], sizes = [16, 8], strides = [1, 1]} : vector<16x128xf32> to vector<16x8xf32>
    %310 = vector.extract_strided_slice %303 {offsets = [0, 8], sizes = [16, 8], strides = [1, 1]} : vector<16x128xf32> to vector<16x8xf32>
    %311 = vector.extract_strided_slice %303 {offsets = [0, 16], sizes = [16, 8], strides = [1, 1]} : vector<16x128xf32> to vector<16x8xf32>
    %312 = vector.extract_strided_slice %303 {offsets = [0, 24], sizes = [16, 8], strides = [1, 1]} : vector<16x128xf32> to vector<16x8xf32>
    %313 = tpu.concatenate %309, %310, %311, %312 in 0 : vector<16x8xf32>, vector<16x8xf32>, vector<16x8xf32>, vector<16x8xf32> -> vector<64x8xf32>
    %314 = vector.extract_strided_slice %303 {offsets = [0, 32], sizes = [16, 8], strides = [1, 1]} : vector<16x128xf32> to vector<16x8xf32>
    %315 = vector.extract_strided_slice %303 {offsets = [0, 40], sizes = [16, 8], strides = [1, 1]} : vector<16x128xf32> to vector<16x8xf32>
    %316 = vector.extract_strided_slice %303 {offsets = [0, 48], sizes = [16, 8], strides = [1, 1]} : vector<16x128xf32> to vector<16x8xf32>
    %317 = vector.extract_strided_slice %303 {offsets = [0, 56], sizes = [16, 8], strides = [1, 1]} : vector<16x128xf32> to vector<16x8xf32>
    %318 = tpu.concatenate %314, %315, %316, %317 in 0 : vector<16x8xf32>, vector<16x8xf32>, vector<16x8xf32>, vector<16x8xf32> -> vector<64x8xf32>
    %cst_130 = arith.constant dense<0.000000e+00> : vector<64x64xf32>
    %319 = tpu.matmul %308, %313, %cst_130 {dimension_numbers = #tpu.dot_dimension_numbers<[1], [1], [0], [0], [0, 0, 1, 0], [], []>} : vector<64x8xf32>, vector<64x8xf32>, vector<64x64xf32> -> vector<64x64xf32>
    %cst_131 = arith.constant 0.353553385 : f32
    %320 = vector.broadcast %cst_131 : f32 to vector<64x64xf32>
    %321 = arith.mulf %319, %320 : vector<64x64xf32>
    %322 = arith.addf %321, %11 : vector<64x64xf32>
    %cst_132 = arith.constant dense<0xFF800000> : vector<64xf32>
    %323 = vector.multi_reduction <maximumf>, %322, %cst_132 [1] : vector<64x64xf32> to vector<64xf32>
    %324 = vector.shape_cast %323 : vector<64xf32> to vector<64x1xf32>
    %325 = vector.broadcast %324 : vector<64x1xf32> to vector<64x64xf32>
    %326 = arith.subf %322, %325 : vector<64x64xf32>
    %327 = math.exp %326 : vector<64x64xf32>
    %cst_133 = arith.constant dense<0.000000e+00> : vector<64xf32>
    %328 = vector.multi_reduction <add>, %327, %cst_133 [1] : vector<64x64xf32> to vector<64xf32>
    %329 = vector.shape_cast %328 : vector<64xf32> to vector<64x1xf32>
    %330 = tpu.reciprocal %329 {approx = true} : vector<64x1xf32> -> vector<64x1xf32>
    %331 = vector.broadcast %330 : vector<64x1xf32> to vector<64x64xf32>
    %332 = arith.mulf %327, %331 : vector<64x64xf32>
    %cst_134 = arith.constant dense<0.000000e+00> : vector<64x8xf32>
    %333 = tpu.matmul %332, %318, %cst_134 {dimension_numbers = #tpu.dot_dimension_numbers<[1], [0], [0], [1], [0, 0, 1, 1], [], []>} : vector<64x64xf32>, vector<64x8xf32>, vector<64x8xf32> -> vector<64x8xf32>
    %cst_135 = arith.constant 0.000000e+00 : f32
    %334 = vector.broadcast %cst_135 : f32 to vector<64x64xf32>
    %335 = tpu.concatenate %332, %334 in 1 : vector<64x64xf32>, vector<64x64xf32> -> vector<64x128xf32>
    %336 = vector.extract_strided_slice %333 {offsets = [0, 0], sizes = [16, 8], strides = [1, 1]} : vector<64x8xf32> to vector<16x8xf32>
    %337 = vector.extract_strided_slice %333 {offsets = [16, 0], sizes = [16, 8], strides = [1, 1]} : vector<64x8xf32> to vector<16x8xf32>
    %338 = vector.extract_strided_slice %333 {offsets = [32, 0], sizes = [16, 8], strides = [1, 1]} : vector<64x8xf32> to vector<16x8xf32>
    %339 = vector.extract_strided_slice %333 {offsets = [48, 0], sizes = [16, 8], strides = [1, 1]} : vector<64x8xf32> to vector<16x8xf32>
    %340 = tpu.concatenate %336, %337, %338, %339 in 1 : vector<16x8xf32>, vector<16x8xf32>, vector<16x8xf32>, vector<16x8xf32> -> vector<16x32xf32>
    %c1_136 = arith.constant 1 : index
    %c512_137 = arith.constant 512 : index
    %c0_138 = arith.constant 0 : index
    %341 = vector.load %arg3[%c1_136, %c512_137, %c0_138] : memref<2x912x128xf32, #tpu.memory_space<vmem>>, vector<1x32x128xf32>
    %342 = vector.shape_cast %341 : vector<1x32x128xf32> to vector<32x128xf32>
    %cst_139 = arith.constant dense<0.000000e+00> : vector<16x128xf32>
    %343 = tpu.matmul %340, %342, %cst_139 {dimension_numbers = #tpu.dot_dimension_numbers<[1], [0], [0], [1], [0, 0, 1, 1], [], []>} : vector<16x32xf32>, vector<32x128xf32>, vector<16x128xf32> -> vector<16x128xf32>
    %c1_140 = arith.constant 1 : index
    %c900_141 = arith.constant 900 : index
    %c0_142 = arith.constant 0 : index
    %344 = vector.load %arg3[%c1_140, %c900_141, %c0_142] : memref<2x912x128xf32, #tpu.memory_space<vmem>>, vector<1x1x128xf32>
    %345 = vector.shape_cast %344 : vector<1x1x128xf32> to vector<1x128xf32>
    %346 = vector.broadcast %345 : vector<1x128xf32> to vector<16x128xf32>
    %347 = arith.addf %343, %346 : vector<16x128xf32>
    %348 = arith.addf %289, %347 : vector<16x128xf32>
    %c1_143 = arith.constant 1 : index
    %c905_144 = arith.constant 905 : index
    %c0_145 = arith.constant 0 : index
    %349 = vector.load %arg3[%c1_143, %c905_144, %c0_145] : memref<2x912x128xf32, #tpu.memory_space<vmem>>, vector<1x1x128xf32>
    %350 = vector.shape_cast %349 : vector<1x1x128xf32> to vector<1x128xf32>
    %c1_146 = arith.constant 1 : index
    %c906_147 = arith.constant 906 : index
    %c0_148 = arith.constant 0 : index
    %351 = vector.load %arg3[%c1_146, %c906_147, %c0_148] : memref<2x912x128xf32, #tpu.memory_space<vmem>>, vector<1x1x128xf32>
    %352 = vector.shape_cast %351 : vector<1x1x128xf32> to vector<1x128xf32>
    %cst_149 = arith.constant dense<0.000000e+00> : vector<16xf32>
    %353 = vector.multi_reduction <add>, %348, %cst_149 [1] : vector<16x128xf32> to vector<16xf32>
    %354 = vector.shape_cast %353 : vector<16xf32> to vector<16x1xf32>
    %cst_150 = arith.constant 3.125000e-02 : f32
    %355 = vector.broadcast %cst_150 : f32 to vector<16x1xf32>
    %356 = arith.mulf %354, %355 : vector<16x1xf32>
    %357 = vector.broadcast %356 : vector<16x1xf32> to vector<16x128xf32>
    %358 = arith.subf %348, %357 : vector<16x128xf32>
    %359 = vector.broadcast %0 : vector<1x128xf32> to vector<16x128xf32>
    %360 = arith.mulf %358, %359 : vector<16x128xf32>
    %361 = arith.mulf %360, %360 : vector<16x128xf32>
    %cst_151 = arith.constant dense<0.000000e+00> : vector<16xf32>
    %362 = vector.multi_reduction <add>, %361, %cst_151 [1] : vector<16x128xf32> to vector<16xf32>
    %363 = vector.shape_cast %362 : vector<16xf32> to vector<16x1xf32>
    %cst_152 = arith.constant 3.125000e-02 : f32
    %364 = vector.broadcast %cst_152 : f32 to vector<16x1xf32>
    %365 = arith.mulf %363, %364 : vector<16x1xf32>
    %cst_153 = arith.constant 9.99999974E-6 : f32
    %366 = vector.broadcast %cst_153 : f32 to vector<16x1xf32>
    %367 = arith.addf %365, %366 : vector<16x1xf32>
    %368 = math.rsqrt %367 : vector<16x1xf32>
    %369 = vector.broadcast %368 : vector<16x1xf32> to vector<16x128xf32>
    %370 = arith.mulf %360, %369 : vector<16x128xf32>
    %371 = vector.broadcast %350 : vector<1x128xf32> to vector<16x128xf32>
    %372 = arith.mulf %370, %371 : vector<16x128xf32>
    %373 = vector.broadcast %352 : vector<1x128xf32> to vector<16x128xf32>
    %374 = arith.addf %372, %373 : vector<16x128xf32>
    %c1_154 = arith.constant 1 : index
    %c640_155 = arith.constant 640 : index
    %c0_156 = arith.constant 0 : index
    %375 = vector.load %arg3[%c1_154, %c640_155, %c0_156] : memref<2x912x128xf32, #tpu.memory_space<vmem>>, vector<1x128x128xf32>
    %376 = vector.shape_cast %375 : vector<1x128x128xf32> to vector<128x128xf32>
    %cst_157 = arith.constant dense<0.000000e+00> : vector<16x128xf32>
    %377 = tpu.matmul %374, %376, %cst_157 {dimension_numbers = #tpu.dot_dimension_numbers<[1], [0], [0], [1], [0, 0, 1, 1], [], []>} : vector<16x128xf32>, vector<128x128xf32>, vector<16x128xf32> -> vector<16x128xf32>
    %c1_158 = arith.constant 1 : index
    %c901_159 = arith.constant 901 : index
    %c0_160 = arith.constant 0 : index
    %378 = vector.load %arg3[%c1_158, %c901_159, %c0_160] : memref<2x912x128xf32, #tpu.memory_space<vmem>>, vector<1x1x128xf32>
    %379 = vector.shape_cast %378 : vector<1x1x128xf32> to vector<1x128xf32>
    %380 = vector.broadcast %379 : vector<1x128xf32> to vector<16x128xf32>
    %381 = arith.addf %377, %380 : vector<16x128xf32>
    %cst_161 = arith.constant 0.000000e+00 : f32
    %382 = vector.broadcast %cst_161 : f32 to vector<16x128xf32>
    %383 = arith.maximumf %381, %382 : vector<16x128xf32>
    %c1_162 = arith.constant 1 : index
    %c768_163 = arith.constant 768 : index
    %c0_164 = arith.constant 0 : index
    %384 = vector.load %arg3[%c1_162, %c768_163, %c0_164] : memref<2x912x128xf32, #tpu.memory_space<vmem>>, vector<1x128x128xf32>
    %385 = vector.shape_cast %384 : vector<1x128x128xf32> to vector<128x128xf32>
    %cst_165 = arith.constant dense<0.000000e+00> : vector<16x128xf32>
    %386 = tpu.matmul %383, %385, %cst_165 {dimension_numbers = #tpu.dot_dimension_numbers<[1], [0], [0], [1], [0, 0, 1, 1], [], []>} : vector<16x128xf32>, vector<128x128xf32>, vector<16x128xf32> -> vector<16x128xf32>
    %c1_166 = arith.constant 1 : index
    %c902_167 = arith.constant 902 : index
    %c0_168 = arith.constant 0 : index
    %387 = vector.load %arg3[%c1_166, %c902_167, %c0_168] : memref<2x912x128xf32, #tpu.memory_space<vmem>>, vector<1x1x128xf32>
    %388 = vector.shape_cast %387 : vector<1x1x128xf32> to vector<1x128xf32>
    %389 = vector.broadcast %388 : vector<1x128xf32> to vector<16x128xf32>
    %390 = arith.addf %386, %389 : vector<16x128xf32>
    %391 = arith.addf %374, %390 : vector<16x128xf32>
    %c1_169 = arith.constant 1 : index
    %c907_170 = arith.constant 907 : index
    %c0_171 = arith.constant 0 : index
    %392 = vector.load %arg3[%c1_169, %c907_170, %c0_171] : memref<2x912x128xf32, #tpu.memory_space<vmem>>, vector<1x1x128xf32>
    %393 = vector.shape_cast %392 : vector<1x1x128xf32> to vector<1x128xf32>
    %c1_172 = arith.constant 1 : index
    %c908_173 = arith.constant 908 : index
    %c0_174 = arith.constant 0 : index
    %394 = vector.load %arg3[%c1_172, %c908_173, %c0_174] : memref<2x912x128xf32, #tpu.memory_space<vmem>>, vector<1x1x128xf32>
    %395 = vector.shape_cast %394 : vector<1x1x128xf32> to vector<1x128xf32>
    %cst_175 = arith.constant dense<0.000000e+00> : vector<16xf32>
    %396 = vector.multi_reduction <add>, %391, %cst_175 [1] : vector<16x128xf32> to vector<16xf32>
    %397 = vector.shape_cast %396 : vector<16xf32> to vector<16x1xf32>
    %cst_176 = arith.constant 3.125000e-02 : f32
    %398 = vector.broadcast %cst_176 : f32 to vector<16x1xf32>
    %399 = arith.mulf %397, %398 : vector<16x1xf32>
    %400 = vector.broadcast %399 : vector<16x1xf32> to vector<16x128xf32>
    %401 = arith.subf %391, %400 : vector<16x128xf32>
    %402 = vector.broadcast %0 : vector<1x128xf32> to vector<16x128xf32>
    %403 = arith.mulf %401, %402 : vector<16x128xf32>
    %404 = arith.mulf %403, %403 : vector<16x128xf32>
    %cst_177 = arith.constant dense<0.000000e+00> : vector<16xf32>
    %405 = vector.multi_reduction <add>, %404, %cst_177 [1] : vector<16x128xf32> to vector<16xf32>
    %406 = vector.shape_cast %405 : vector<16xf32> to vector<16x1xf32>
    %cst_178 = arith.constant 3.125000e-02 : f32
    %407 = vector.broadcast %cst_178 : f32 to vector<16x1xf32>
    %408 = arith.mulf %406, %407 : vector<16x1xf32>
    %cst_179 = arith.constant 9.99999974E-6 : f32
    %409 = vector.broadcast %cst_179 : f32 to vector<16x1xf32>
    %410 = arith.addf %408, %409 : vector<16x1xf32>
    %411 = math.rsqrt %410 : vector<16x1xf32>
    %412 = vector.broadcast %411 : vector<16x1xf32> to vector<16x128xf32>
    %413 = arith.mulf %403, %412 : vector<16x128xf32>
    %414 = vector.broadcast %393 : vector<1x128xf32> to vector<16x128xf32>
    %415 = arith.mulf %413, %414 : vector<16x128xf32>
    %416 = vector.broadcast %395 : vector<1x128xf32> to vector<16x128xf32>
    %417 = arith.addf %415, %416 : vector<16x128xf32>
    %c8 = arith.constant 8 : index
    %c0_180 = arith.constant 0 : index
    %418 = vector.load %arg8[%c8, %c0_180] : memref<88x128xf32, #tpu.memory_space<vmem>>, vector<16x128xf32>
    tpu.vector_store %arg8[%c8, %c0_180], %417 {strides = array<i32>} : memref<88x128xf32, #tpu.memory_space<vmem>>, vector<16x128xf32>,
    %c24 = arith.constant 24 : index
    %c0_181 = arith.constant 0 : index
    %419 = vector.load %arg8[%c24, %c0_181] : memref<88x128xf32, #tpu.memory_space<vmem>>, vector<64x128xf32>
    tpu.vector_store %arg8[%c24, %c0_181], %335 {strides = array<i32>} : memref<88x128xf32, #tpu.memory_space<vmem>>, vector<64x128xf32>,
    %c128_182 = arith.constant 128 : index
    %c0_183 = arith.constant 0 : index
    %420 = vector.load %arg2[%c128_182, %c0_183] : memref<392x128xf32, #tpu.memory_space<vmem>>, vector<128x128xf32>
    %cst_184 = arith.constant dense<0.000000e+00> : vector<16x128xf32>
    %421 = tpu.matmul %417, %420, %cst_184 {dimension_numbers = #tpu.dot_dimension_numbers<[1], [0], [0], [1], [0, 0, 1, 1], [], []>} : vector<16x128xf32>, vector<128x128xf32>, vector<16x128xf32> -> vector<16x128xf32>
    %c0_185 = arith.constant 0 : index
    %c0_186 = arith.constant 0 : index
    %422 = vector.load %arg6[%c0_185, %c0_186] : memref<16x128xf32, #tpu.memory_space<vmem>>, vector<16x128xf32>
    %423 = arith.mulf %421, %422 : vector<16x128xf32>
    %c256_187 = arith.constant 256 : index
    %c0_188 = arith.constant 0 : index
    %424 = vector.load %arg2[%c256_187, %c0_188] : memref<392x128xf32, #tpu.memory_space<vmem>>, vector<128x128xf32>
    %cst_189 = arith.constant dense<0.000000e+00> : vector<16x128xf32>
    %425 = tpu.matmul %423, %424, %cst_189 {dimension_numbers = #tpu.dot_dimension_numbers<[1], [0], [0], [1], [0, 0, 1, 1], [], []>} : vector<16x128xf32>, vector<128x128xf32>, vector<16x128xf32> -> vector<16x128xf32>
    %c385 = arith.constant 385 : index
    %c0_190 = arith.constant 0 : index
    %426 = vector.load %arg2[%c385, %c0_190] : memref<392x128xf32, #tpu.memory_space<vmem>>, vector<1x128xf32>
    %c0_191 = arith.constant 0 : index
    %c0_192 = arith.constant 0 : index
    %427 = vector.load %arg7[%c0_191, %c0_192] : memref<2x16xf32, #tpu.memory_space<vmem>>, vector<2x16xf32>
    %cst_193 = arith.constant dense<0.000000e+00> : vector<2x128xf32>
    %428 = tpu.matmul %427, %425, %cst_193 {dimension_numbers = #tpu.dot_dimension_numbers<[1], [0], [0], [1], [0, 0, 1, 1], [], []>} : vector<2x16xf32>, vector<16x128xf32>, vector<2x128xf32> -> vector<2x128xf32>
    %429 = vector.broadcast %426 : vector<1x128xf32> to vector<2x128xf32>
    %430 = arith.addf %428, %429 : vector<2x128xf32>
    %c0_194 = arith.constant 0 : index
    %c0_195 = arith.constant 0 : index
    %431 = vector.load %arg8[%c0_194, %c0_195] : memref<88x128xf32, #tpu.memory_space<vmem>>, vector<2x128xf32>
    tpu.vector_store %arg8[%c0_194, %c0_195], %430 {strides = array<i32>} : memref<88x128xf32, #tpu.memory_space<vmem>>, vector<2x128xf32>,
    return
  }
}

</mosaic_0001>

<bundles_post_ra>
// kernel: fwd.1
= control target key start
LH: loop header
LB: loop body
LE: loop exit
PB: predicated region body
PF: predicated region fallthrough
CT: control target
= control target key end

     0   :  { %13 = vsyncpa [#allocation3], 0  ;;  %s6246_s0 = inlined_call_operand.hbm [shape: f32[16,16], index: 0, kind: input, shape index: {}]   ;;  %s6247_s1 = inlined_call_operand.hbm [shape: f32[16,32], index: 1, kind: input, shape index: {}]   ;;  %s6248_s2 = inlined_call_operand.hbm [shape: f32[392,128], index: 2, kind: input, shape index: {}]   ;;  %s6249_s3 = inlined_call_operand.hbm [shape: f32[2,912,128], index: 3, kind: input, shape index: {}]   ;;  %s6250_s4 = inlined_call_operand.hbm [shape: f32[64,64], index: 4, kind: input, shape index: {}, may-alias: {4,5}]   ;;  %s6251_s5 = inlined_call_operand.hbm [shape: f32[64,64], index: 5, kind: input, shape index: {}, may-alias: {4,5}]   ;;  %s6252_s6 = inlined_call_operand.hbm [shape: f32[16,128], index: 6, kind: input, shape index: {}]   ;;  %s6253_s7 = inlined_call_operand.vmem [shape: f32[2,16], index: 7, kind: input, shape index: {}]   ;;  %s6254_s8 = inlined_call_operand.vmem [shape: f32[88,128], index: 8, kind: output, shape index: {}]  }
   0x1   :  { %14 = vsyncpa [#allocation5], 0 }
   0x2   :  { %15 = vsyncpa [#allocation8], 0 }
   0x3   :  { %16 = vsyncpa [#allocation11], 0  ;;  %s5378_s27 = smov [#allocation4]   ;;  %s5379_s29 = smov [#allocation7]  }
   0x4   :  { %s34_s28 = sshll.u32 %s5378_s27, 4  ;;  %s58_s30 = sshll.u32 %s5379_s29, 4  ;;  %s35_s28 = int_to_ptr.vmem [resolvable:$true] %s34_s28  ;;  %s59_s30 = int_to_ptr.vmem [resolvable:$true] %s58_s30 }
   0x5   :  { %s5238_s9 = scalar_lea.vmem %s35_s28, 256  ;;  %p5243_p1 = scmp.lt.s32.totalorder %s35_s28, %s35_s28 }
   0x6   :  { %p5239_p0 = scmp.ne.s32.totalorder %s35_s28, %s5238_s9  ;;  %p5244_p2 = scmp.lt.s32.totalorder %s5238_s9, %s5238_s9 }
   0x8   :  { %p5245_p3 = por %p5244_p2, %p5243_p1 }
   0xa   :  { %p5246_p4 = pnand %p5245_p3, %p5239_p0 }
   0xc   :  { %5249 = shalt.err (!%p5246_p4)
}
   0xd   :  { %s5380_s10 = smov 128   ;;  %s5381_s11 = smov 8  }
   0xe   :  { %40 = dma.hbm_to_vmem [thread:$0]  %s6247_s1, 256, %s35_s28, [#allocation5], %s5380_s10, %s5380_s10, %s5381_s11  }
   0xf   :  { %s5258_s14 = scalar_lea.vmem %s59_s30, 29184  ;;  %p5263_p6 = scmp.lt.s32.totalorder %s59_s30, %s59_s30 }
  0x10   :  { %p5259_p5 = scmp.ne.s32.totalorder %s59_s30, %s5258_s14  ;;  %p5264_p7 = scmp.lt.s32.totalorder %s5258_s14, %s5258_s14 }
  0x12   :  { %p5265_p8 = por %p5264_p7, %p5263_p6 }
  0x14   :  { %p5266_p9 = pnand %p5265_p8, %p5259_p5 }
  0x16   :  { %5269 = shalt.err (!%p5266_p9)
}
  0x17   :  { %64 = dma.hbm_to_vmem [thread:$0]  %s6249_s3, 29184, %s59_s30, [#allocation8], %s5380_s10, %s5380_s10, %s5381_s11  }
  0x18   :  { %s5382_s17 = smov [#allocation10]   ;;  %s5383_s19 = smov [#allocation2]  }
  0x19   :  { %s82_s18 = sshll.u32 %s5382_s17, 4  ;;  %s22_s20 = sshll.u32 %s5383_s19, 4  ;;  %s83_s18 = int_to_ptr.vmem [resolvable:$true] %s82_s18  ;;  %s23_s20 = int_to_ptr.vmem [resolvable:$true] %s22_s20 }
  0x1a   :  { %s5278_s1 = scalar_lea.vmem %s83_s18, 1024  ;;  %p5283_p11 = scmp.lt.s32.totalorder %s83_s18, %s83_s18 }
  0x1b   :  { %p5279_p10 = scmp.ne.s32.totalorder %s83_s18, %s5278_s1  ;;  %p5284_p12 = scmp.lt.s32.totalorder %s5278_s1, %s5278_s1 }
  0x1d   :  { %p5285_p13 = por %p5284_p12, %p5283_p11 }
  0x1f   :  { %p5286_p0 = pnand %p5285_p13, %p5279_p10 }
  0x21   :  { %5289 = shalt.err (!%p5286_p0)
}
  0x22   :  { %88 = dma.hbm_to_vmem [thread:$0]  %s6251_s5, 1024, %s83_s18, [#allocation11], %s5380_s10, %s5380_s10, %s5381_s11  }
  0x23   :  { %s5298_s3 = scalar_lea.vmem %s23_s20, 256  ;;  %p5303_p2 = scmp.lt.s32.totalorder %s23_s20, %s23_s20 }
  0x24   :  { %p5299_p1 = scmp.ne.s32.totalorder %s23_s20, %s5298_s3  ;;  %p5304_p3 = scmp.lt.s32.totalorder %s5298_s3, %s5298_s3 }
  0x26   :  { %p5305_p4 = por %p5304_p3, %p5303_p2 }
  0x28   :  { %p5306_p5 = pnand %p5305_p4, %p5299_p1 }
  0x2a   :  { %5309 = shalt.err (!%p5306_p5)
}
  0x2b   :  { %28 = dma.hbm_to_vmem [thread:$0]  %s6246_s0, 256, %s23_s20, [#allocation3], %s5380_s10, %s5380_s10, %s5381_s11  }
  0x2c   :  { %s5384_s25 = smov [#allocation6]   ;;  %s5385_s27 = smov [#allocation9]  }
  0x2d   :  { %s46_s26 = sshll.u32 %s5384_s25, 4  ;;  %s70_s28 = sshll.u32 %s5385_s27, 4  ;;  %s47_s26 = int_to_ptr.vmem [resolvable:$true] %s46_s26  ;;  %s71_s28 = int_to_ptr.vmem [resolvable:$true] %s70_s28 }
  0x2e   :  { %s5318_s5 = scalar_lea.vmem %s47_s26, 6272  ;;  %p5323_p7 = scmp.lt.s32.totalorder %s47_s26, %s47_s26 }
  0x2f   :  { %p5319_p6 = scmp.ne.s32.totalorder %s47_s26, %s5318_s5  ;;  %p5324_p8 = scmp.lt.s32.totalorder %s5318_s5, %s5318_s5 }
  0x31   :  { %p5325_p9 = por %p5324_p8, %p5323_p7 }
  0x33   :  { %p5326_p10 = pnand %p5325_p9, %p5319_p6 }
  0x35   :  { %5329 = shalt.err (!%p5326_p10)
}
  0x36   :  { %52 = dma.hbm_to_vmem [thread:$0]  %s6248_s2, 6272, %s47_s26, [#allocation5], %s5380_s10, %s5380_s10, %s5381_s11  }
  0x37   :  { %s5338_s0 = scalar_lea.vmem %s71_s28, 1024  ;;  %p5343_p12 = scmp.lt.s32.totalorder %s71_s28, %s71_s28 }
  0x38   :  { %p5339_p11 = scmp.ne.s32.totalorder %s71_s28, %s5338_s0  ;;  %p5344_p13 = scmp.lt.s32.totalorder %s5338_s0, %s5338_s0 }
  0x3a   :  { %p5345_p0 = por %p5344_p13, %p5343_p12 }
  0x3c   :  { %p5346_p1 = pnand %p5345_p0, %p5339_p11 }
  0x3e   :  { %5349 = shalt.err (!%p5346_p1)
}
  0x3f   :  { %76 = dma.hbm_to_vmem [thread:$0]  %s6250_s4, 1024, %s71_s28, [#allocation8], %s5380_s10, %s5380_s10, %s5381_s11  }
  0x40   :  { %s5386_s13 = smov [#allocation12]  }
  0x41   :  { %s94_s14 = sshll.u32 %s5386_s13, 4  ;;  %s95_s14 = int_to_ptr.vmem [resolvable:$true] %s94_s14 }
  0x42   :  { %s5358_s15 = scalar_lea.vmem %s95_s14, 256  ;;  %p5363_p3 = scmp.lt.s32.totalorder %s95_s14, %s95_s14 }
  0x43   :  { %p5359_p2 = scmp.ne.s32.totalorder %s95_s14, %s5358_s15  ;;  %p5364_p4 = scmp.lt.s32.totalorder %s5358_s15, %s5358_s15 }
  0x45   :  { %p5365_p5 = por %p5364_p4, %p5363_p3 }
  0x47   :  { %p5366_p6 = pnand %p5365_p5, %p5359_p2 }
  0x49   :  { %5369 = shalt.err (!%p5366_p6)
}
  0x4a   :  { %100 = dma.hbm_to_vmem [thread:$0]  %s6252_s6, 256, %s95_s14, [#allocation11], %s5380_s10, %s5380_s10, %s5381_s11  }
  0x4b   :  { %5370 = dma.done.wait [#allocation3], 256  }
  0x4c   :  { %5371 = vsyncadd [#allocation3], 4294967040 }
  0x4d   :  { %5372 = dma.done.wait [#allocation5], 6528  }
  0x4e   :  { %5373 = vsyncadd [#allocation5], 4294960768 }
  0x4f   :  { %5374 = dma.done.wait [#allocation8], 30208  }
  0x50   :  { %5375 = vsyncadd [#allocation8], 4294937088 }
  0x51   :  { %5376 = dma.done.wait [#allocation11], 1280  }
  0x52   :  { %5377 = vsyncadd [#allocation11], 4294966016  ;;  %vm134_vm0 = vcmask 130048   ;;  %v126_v0 = vld [vmem:[#allocation6 + $0x8] sm:$0xff]  ;;  %v125_v1 = vld [vmem:[#allocation6] sm:$0xff]  ;;  %vm362_vm1 = vcmask 64512  }
  0x53   :  { %v128_v2 = vld [vmem:[#allocation2] sm:$0xff]  ;;  %4386 = vmatprep.subr.mxu0 %v126_v0  ;;  %v250_v4 = vld [vmem:[#allocation7 + $0x70] sm:$0xff]  ;;  %v129_v5 = vld [vmem:[#allocation2 + $0x8] sm:$0xff]  ;;  %s5387_s4 = smov 112   ;;  %s5388_s6 = smov 104   ;;  %vm516_vm2 = vcmask 523264  }
  0x54   :  { %4390 = vmatprep.mubr.msk.f32.mxu0 %vm134_vm0, %v128_v2  ;;  %v251_v3 = vld [vmem:[#allocation7 + $0x78] sm:$0xff]  ;;  %4387 = vmatpush3.msra.mxu0 %v126_v0  ;;  %v249_v6 = vld [vmem:[#allocation7 + $0x68] sm:$0xff]  ;;  %v248_v7 = vld [vmem:[#allocation7 + $0x60] sm:$0xff]  ;;  %s5389_s10 = smov 120   ;;  %s5390_s17 = smov 96   ;;  %vm786_vm3 = vcmask 195584  }
  0x55   :  { %4393 = vmatprep.subr.mxu1 %v251_v3  ;;  %4388 = vmatprep.subr.mxu0 %v125_v1  ;;  %v247_v8 = vld [vmem:[#allocation7 + $0x58] sm:$0xff]  ;;  %v246_v9 = vld [vmem:[#allocation7 + $0x50] sm:$0xff]  ;;  %v245_v10 = vld [vmem:[#allocation7 + $0x48] sm:$0xff]  ;;  %s5391_s18 = smov 64   ;;  %s5392_s19 = smov 16   ;;  %vm798_vm4 = vcmask 261120  }
  0x56   :  { %4394 = vmatpush3.msra.mxu1 %v251_v3  ;;  %4389 = vmatpush3.msra.mxu0 %v125_v1  ;;  %v244_v11 = vld [vmem:[#allocation7 + $0x40] sm:$0xff]  ;;  %v243_v12 = vld [vmem:[#allocation7 + $0x38] sm:$0xff]  ;;  %v242_v13 = vld [vmem:[#allocation7 + $0x30] sm:$0xff]  ;;  %s5393_s20 = smov 24   ;;  %vm5395_vm5 = vmmov 0  }
  0x57   :  { %4395 = vmatprep.subr.mxu1 %v250_v4  ;;  %4391 = vmatmul.mubr.msk.f32.vlgmr.msra.gmra.mxu0 %vm134_vm0, %v129_v5  ;;  %v241_v14 = vld [vmem:[#allocation7 + $0x28] sm:$0xff]  ;;  %v240_v15 = vld [vmem:[#allocation7 + $0x20] sm:$0xff]  ;;  %v239_v16 = vld [vmem:[#allocation7 + $0x18] sm:$0xff] }
  0x58   :  { %4396 = vmatpush3.msra.mxu1 %v250_v4  ;;  %v238_v17 = vld [vmem:[#allocation7 + $0x10] sm:$0xff]  ;;  %v237_v18 = vld [vmem:[#allocation7 + $0x8] sm:$0xff]  ;;  %v236_v19 = vld [vmem:[#allocation7] sm:$0xff] }
  0x59   :  { %4397 = vmatprep.subr.mxu1 %v249_v6  ;;  %v3895_v20 = vld [vmem:[#allocation6 + $0x180] ss:$0 sm:$0xff]  ;;  %v3898_v27 = vld [vmem:[#allocation7 + $0x380] ss:$0 sm:$0xff]  ;;  %v221_v47 = vld [vmem:[#allocation9 + $0x8] sm:$0xff] }
  0x5a   :  { %4398 = vmatpush3.msra.mxu1 %v249_v6  ;;  %v220_v50 = vld [vmem:[#allocation9] sm:$0xff]  ;;  %v222_v57 = vld [vmem:[#allocation9 + $0x10] sm:$0xff]  ;;  %v223_v62 = vld [vmem:[#allocation9 + $0x18] sm:$0xff] }
  0x5b   :  { %4399 = vmatprep.subr.mxu1 %v248_v7  ;;  %v224_v1 = vld [vmem:[#allocation9 + $0x20] sm:$0xff] }
  0x5c   :  { %4400 = vmatpush3.msra.mxu1 %v248_v7  ;;  %v225_v7 = vld [vmem:[#allocation9 + $0x28] sm:$0xff] }
  0x5d   :  { %4401 = vmatprep.subr.mxu1 %v247_v8 }
  0x5e   :  { %4402 = vmatpush3.msra.mxu1 %v247_v8 }
  0x5f   :  { %4403 = vmatprep.subr.mxu1 %v246_v9 }
  0x60   :  { %4404 = vmatpush3.msra.mxu1 %v246_v9 }
  0x61   :  { %4405 = vmatprep.subr.mxu1 %v245_v10 }
  0x62   :  { %4406 = vmatpush3.msra.mxu1 %v245_v10 }
  0x63   :  { %4407 = vmatprep.subr.mxu1 %v244_v11 }
  0x64   :  { %4408 = vmatpush3.msra.mxu1 %v244_v11 }
  0x65   :  { %4409 = vmatprep.subr.mxu1 %v243_v12 }
  0x66   :  { %4410 = vmatpush3.msra.mxu1 %v243_v12 }
  0x67   :  { %4411 = vmatprep.subr.mxu1 %v242_v13 }
  0x68   :  { %4412 = vmatpush3.msra.mxu1 %v242_v13  ;;  %v227_v13 = vld [vmem:[#allocation9 + $0x38] sm:$0xff] }
  0x69   :  { %4413 = vmatprep.subr.mxu1 %v241_v14 }
  0x6a   :  { %4414 = vmatpush3.msra.mxu1 %v241_v14 }
  0x6b   :  { %4415 = vmatprep.subr.mxu1 %v240_v15 }
  0x6c   :  { %4416 = vmatpush3.msra.mxu1 %v240_v15 }
  0x6d   :  { %4417 = vmatprep.subr.mxu1 %v239_v16 }
  0x6e   :  { %4418 = vmatpush3.msra.mxu1 %v239_v16 }
  0x6f   :  { %4419 = vmatprep.subr.mxu1 %v238_v17 }
  0x70   :  { %4420 = vmatpush3.msra.mxu1 %v238_v17 }
  0x71   :  { %4421 = vmatprep.subr.mxu1 %v237_v18 }
  0x72   :  { %4422 = vmatpush3.msra.mxu1 %v237_v18 }
  0x73   :  { %4423 = vmatprep.subr.mxu1 %v236_v19 }
  0x74   :  { %4424 = vmatpush3.msra.mxu1 %v236_v19  ;;  %v226_v19 = vld [vmem:[#allocation9 + $0x30] sm:$0xff] }
 0x117   :  { %v4392_v21 = vpop.f32.mrf.mxu0 }
 0x118   :  { %v213_v22 = vadd.f32 %v4392_v21, %v3895_v20 }
 0x119   :  { %v207_v23 = vpop.f32.mrf.mxu0 }
 0x11a   :  { %v208_v24 = vadd.f32 %v3895_v20, %v207_v23  ;;  %v5487_v26 = vmul.f32 5.656854, %v213_v22 }
 0x11c   :  { %v5485_v25 = vmul.f32 5.656854, %v208_v24 }
 0x11e   :  { %4425 = vmatprep.mubr.f32.mxu1 %v5485_v25 }
 0x11f   :  { %4426 = vmatmul.mubr.f32.vlgmr.msra.gmra.mxu1 %v5487_v26 }
 0x1df   :  { %v4427_v28 = vpop.f32.mrf.mxu1 }
 0x1e0   :  { %v5491_v29 = vadd.f32 %v4427_v28, %v3898_v27 }
 0x1e1   :  { %v323_v30 = vpop.f32.mrf.mxu1 }
 0x1e2   :  { %v5493_v31 = vadd.f32 %v3898_v27, %v323_v30  ;;  %340 = vrot.lane.b32.xlu1 %v5491_v29, %s5387_s4  ;;  %344 = vrot.lane.b32.xlu0 %v5491_v29, %s5388_s6 }
 0x1e4   :  { %4444 = vmatprep.mubr.msk.f32.mxu0 %vm362_vm1, %v5493_v31 }
 0x1e6   :  { %338 = vrot.lane.b32.xlu1 %v5493_v31, %s5387_s4  ;;  %342 = vrot.lane.b32.xlu0 %v5493_v31, %s5388_s6 }
 0x1ea   :  { %334 = vrot.lane.b32.xlu1 %v5493_v31, %s5389_s10  ;;  %336 = vrot.lane.b32.xlu0 %v5491_v29, %s5389_s10 }
 0x254   :  { %v5509_v32 = vpop.permute.xlu1 %340  ;;  %v5511_v33 = vpop.permute.xlu0 %344 }
 0x255   :  { %360 = vrot.lane.b32.xlu0 %v5511_v33, %s5390_s17 }
 0x258   :  { %v5515_v34 = vpop.permute.xlu0 %342  ;;  %v5521_v35 = vpop.permute.xlu1 %338 }
 0x259   :  { %356 = vrot.lane.b32.xlu0 %v5509_v32, %s5390_s17  ;;  %358 = vrot.lane.b32.xlu1 %v5515_v34, %s5390_s17 }
 0x25c   :  { %v5523_v36 = vpop.permute.xlu0 %336  ;;  %v5529_v37 = vpop.permute.xlu1 %334 }
 0x25d   :  { %354 = vrot.lane.b32.xlu1 %v5521_v35, %s5390_s17  ;;  %352 = vrot.lane.b32.xlu0 %v5523_v36, %s5390_s17 }
 0x261   :  { %350 = vrot.lane.b32.xlu1 %v5529_v37, %s5390_s17  ;;  %348 = vrot.lane.b32.xlu0 %v5491_v29, %s5390_s17 }
 0x265   :  { %346 = vrot.lane.b32.xlu1 %v5493_v31, %s5390_s17 }
 0x2c7   :  { %v361_v38 = vpop.permute.xlu0 %360 }
 0x2c8   :  { %4428 = vmatprep.subr.msk.mxu0 %vm362_vm1, %v361_v38 }
 0x2c9   :  { %4429 = vmatpush3.xpose.msk.msra.mxu0 %vm362_vm1, %v361_v38 }
 0x2cb   :  { %v359_v39 = vpop.permute.xlu1 %358  ;;  %v357_v40 = vpop.permute.xlu0 %356 }
 0x2cc   :  { %4430 = vmatprep.subr.msk.mxu0 %vm362_vm1, %v359_v39 }
 0x2cd   :  { %4431 = vmatpush3.xpose.msk.msra.mxu0 %vm362_vm1, %v359_v39 }
 0x2ce   :  { %4432 = vmatprep.subr.msk.mxu0 %vm362_vm1, %v357_v40 }
 0x2cf   :  { %v355_v41 = vpop.permute.xlu1 %354  ;;  %v353_v42 = vpop.permute.xlu0 %352 }
 0x2d1   :  { %4433 = vmatpush3.xpose.msk.msra.mxu0 %vm362_vm1, %v357_v40 }
 0x2d2   :  { %4434 = vmatprep.subr.msk.mxu0 %vm362_vm1, %v355_v41 }
 0x2d3   :  { %v351_v43 = vpop.permute.xlu1 %350  ;;  %v349_v44 = vpop.permute.xlu0 %348 }
 0x2d5   :  { %4435 = vmatpush3.xpose.msk.msra.mxu0 %vm362_vm1, %v355_v41 }
 0x2d6   :  { %4436 = vmatprep.subr.msk.mxu0 %vm362_vm1, %v353_v42 }
 0x2d7   :  { %v347_v45 = vpop.permute.xlu1 %346 }
 0x2d9   :  { %4437 = vmatpush3.xpose.msk.msra.mxu0 %vm362_vm1, %v353_v42 }
 0x2da   :  { %4438 = vmatprep.subr.msk.mxu0 %vm362_vm1, %v351_v43 }
 0x2dd   :  { %4439 = vmatpush3.xpose.msk.msra.mxu0 %vm362_vm1, %v351_v43 }
 0x2de   :  { %4440 = vmatprep.subr.msk.mxu0 %vm362_vm1, %v349_v44 }
 0x2e1   :  { %4441 = vmatpush3.xpose.msk.msra.mxu0 %vm362_vm1, %v349_v44 }
 0x2e2   :  { %4442 = vmatprep.subr.msk.mxu0 %vm362_vm1, %v347_v45 }
 0x2e5   :  { %4443 = vmatpush3.xpose.msk.msra.mxu0 %vm362_vm1, %v347_v45 }
 0x2e8   :  { %4445 = vmatmul.mubr.msk.f32.vlgmr.msra.gmra.mxu0 %vm362_vm1, %v5491_v29 }
 0x2e9   :  { %4447 = vmatprep.mubr.msk.f32.mxu0 %vm362_vm1, %v5529_v37 }
 0x2ec   :  { %4448 = vmatmul.mubr.msk.f32.gmra.mxu0 %vm362_vm1, %v5523_v36 }
 0x2ed   :  { %4450 = vmatprep.mubr.msk.f32.mxu0 %vm362_vm1, %v5521_v35 }
 0x2f0   :  { %4451 = vmatmul.mubr.msk.f32.gmra.mxu0 %vm362_vm1, %v5509_v32 }
 0x2f1   :  { %4453 = vmatprep.mubr.msk.f32.mxu0 %vm362_vm1, %v5515_v34 }
 0x2f4   :  { %4454 = vmatmul.mubr.msk.f32.gmra.mxu0 %vm362_vm1, %v5511_v33 }
 0x3a8   :  { %v4446_v46 = vpop.f32.mrf.mxu0 }
 0x3a9   :  { %v501_v48 = vmul.f32 0.35355338, %v4446_v46 }
 0x3aa   :  { %v461_v49 = vpop.f32.mrf.mxu0 }
 0x3ab   :  { %v500_v51 = vmul.f32 0.35355338, %v461_v49  ;;  %v509_v52 = vadd.f32 %v501_v48, %v221_v47 }
 0x3ac   :  { %v4449_v53 = vpop.f32.mrf.mxu0 }
 0x3ad   :  { %v520_v54 = vsel %vm516_vm2, %v509_v52, -inf  ;;  %v508_v55 = vadd.f32 %v500_v51, %v220_v50  ;;  %v503_v58 = vmul.f32 0.35355338, %v4449_v53 }
 0x3ae   :  { %521 = vmax.xlane.f32.xlu1 %v520_v54  ;;  %v471_v56 = vpop.f32.mrf.mxu0 }
 0x3af   :  { %v502_v59 = vmul.f32 0.35355338, %v471_v56  ;;  %v517_v60 = vsel %vm516_vm2, %v508_v55, -inf  ;;  %v511_v5 = vadd.f32 %v503_v58, %v223_v62 }
 0x3b0   :  { %518 = vmax.xlane.f32.xlu0 %v517_v60  ;;  %v4452_v61 = vpop.f32.mrf.mxu0 }
 0x3b1   :  { %v510_v63 = vadd.f32 %v502_v59, %v222_v57  ;;  %v505_v2 = vmul.f32 0.35355338, %v4452_v61  ;;  %v526_v10 = vsel %vm516_vm2, %v511_v5, -inf }
 0x3b2   :  { %v481_v0 = vpop.f32.mrf.mxu0 }
 0x3b3   :  { %v504_v3 = vmul.f32 0.35355338, %v481_v0  ;;  %v523_v4 = vsel %vm516_vm2, %v510_v63, -inf  ;;  %v513_v12 = vadd.f32 %v505_v2, %v225_v7 }
 0x3b4   :  { %524 = vmax.xlane.f32.xlu0 %v523_v4  ;;  %v4455_v6 = vpop.f32.mrf.mxu0 }
 0x3b5   :  { %v512_v8 = vadd.f32 %v504_v3, %v224_v1  ;;  %v507_v9 = vmul.f32 0.35355338, %v4455_v6  ;;  %v532_v14 = vsel %vm516_vm2, %v513_v12, -inf }
 0x3b6   :  { %v491_v17 = vpop.f32.mrf.mxu0 }
 0x3b7   :  { %v529_v11 = vsel %vm516_vm2, %v512_v8, -inf  ;;  %v515_v15 = vadd.f32 %v507_v9, %v227_v13  ;;  %v506_v18 = vmul.f32 0.35355338, %v491_v17 }
 0x3b8   :  { %527 = vmax.xlane.f32.xlu0 %v526_v10  ;;  %530 = vmax.xlane.f32.xlu1 %v529_v11 }
 0x3b9   :  { %v538_v16 = vsel %vm516_vm2, %v515_v15, -inf  ;;  %v5582_v20 = vadd.f32 %v506_v18, %v226_v19 }
 0x3bb   :  { %v535_v21 = vsel %vm516_vm2, %v5582_v20, -inf }
 0x3bc   :  { %533 = vmax.xlane.f32.xlu0 %v532_v14 }
 0x3c0   :  { %539 = vmax.xlane.f32.xlu0 %v538_v16 }
 0x3c9   :  { %619 = vrot.lane.b32.xlu1 %v5511_v33, %s5391_s18 }
 0x3cd   :  { %615 = vrot.lane.b32.xlu1 %v5509_v32, %s5391_s18 }
 0x3d6   :  { %617 = vrot.lane.b32.xlu0 %v5515_v34, %s5391_s18 }
 0x3da   :  { %611 = vrot.lane.b32.xlu0 %v5523_v36, %s5391_s18 }
 0x3f1   :  { %536 = vmax.xlane.f32.xlu1 %v535_v21 }
 0x402   :  { %613 = vrot.lane.b32.xlu1 %v5521_v35, %s5391_s18 }
 0x406   :  { %609 = vrot.lane.b32.xlu1 %v5529_v37, %s5391_s18 }
 0x437   :  { %v522_v22 = vpop.xlane.xlu1 %521 }
 0x438   :  { %v542_v23 = vsub.f32 %v509_v52, %v522_v22 }
 0x439   :  { %v519_v24 = vpop.xlane.xlu0 %518 }
 0x43a   :  { %v551_v27 = vmul.f32 1.442695, %v542_v23  ;;  %v541_v28 = vsub.f32 %v508_v55, %v519_v24 }
 0x43c   :  { %5058 = vpow2.f32 %v551_v27  ;;  %v549_v30 = vmul.f32 1.442695, %v541_v28 }
 0x43d   :  { %v525_v32 = vpop.xlane.xlu0 %524 }
 0x43e   :  { %5060 = vpow2.f32 %v549_v30  ;;  %v543_v33 = vsub.f32 %v510_v63, %v525_v32 }
 0x440   :  { %v553_v34 = vmul.f32 1.442695, %v543_v33 }
 0x441   :  { %v528_v36 = vpop.xlane.xlu0 %527  ;;  %v531_v38 = vpop.xlane.xlu1 %530 }
 0x442   :  { %5062 = vpow2.f32 %v553_v34  ;;  %v544_v39 = vsub.f32 %v511_v5, %v528_v36  ;;  %v545_v40 = vsub.f32 %v512_v8, %v531_v38  ;;  %v792_v38 = vld [vmem:[#allocation7 + $0x98] sm:$0xff] }
 0x443   :  { %4484 = vmatprep.subr.mxu0 %v792_v38 }
 0x444   :  { %v555_v35 = vmul.f32 1.442695, %v544_v39  ;;  %v557_v41 = vmul.f32 1.442695, %v545_v40  ;;  %4485 = vmatpush3.msra.mxu0 %v792_v38  ;;  %v791_v39 = vld [vmem:[#allocation7 + $0x90] sm:$0xff]  ;;  %v790_v40 = vld [vmem:[#allocation7 + $0x88] sm:$0xff] }
 0x445   :  { %v534_v42 = vpop.xlane.xlu0 %533  ;;  %v620_v37 = vpop.permute.xlu1 %619  ;;  %4486 = vmatprep.subr.mxu0 %v791_v39 }
 0x446   :  { %5064 = vpow2.f32 %v555_v35  ;;  %v546_v43 = vsub.f32 %v513_v12, %v534_v42  ;;  %4456 = vmatprep.subr.mxu1 %v620_v37  ;;  %4487 = vmatpush3.msra.mxu0 %v791_v39  ;;  %v3930_v39 = vld [vmem:[#allocation7 + $0x383] ss:$0 sm:$0xff] }
 0x447   :  { %5066 = vpow2.f32 %v557_v41  ;;  %4457 = vmatpush3.msra.mxu1 %v620_v37  ;;  %4488 = vmatprep.subr.mxu0 %v790_v40  ;;  %v789_v41 = vld [vmem:[#allocation7 + $0x80] sm:$0xff] }
 0x448   :  { %v559_v44 = vmul.f32 1.442695, %v546_v43  ;;  %4489 = vmatpush3.msra.mxu0 %v790_v40 }
 0x449   :  { %v5590_v45 = vpop.eup %5058  ;;  %v540_v46 = vpop.xlane.xlu0 %539  ;;  %4490 = vmatprep.subr.mxu0 %v789_v41 }
 0x44a   :  { %5068 = vpow2.f32 %v559_v44  ;;  %v548_v47 = vsub.f32 %v515_v15, %v540_v46  ;;  %v568_v48 = vsel %vm516_vm2, %v5590_v45, 0.0  ;;  %v616_v54 = vpop.permute.xlu1 %615  ;;  %4491 = vmatpush3.msra.mxu0 %v789_v41 }
 0x44b   :  { %v5061_v49 = vpop.eup %5060  ;;  %569 = vadd.xlane.f32.xlu0 %v568_v48 }
 0x44c   :  { %v563_v50 = vmul.f32 1.442695, %v548_v47  ;;  %v565_v51 = vsel %vm516_vm2, %v5061_v49, 0.0 }
 0x44d   :  { %v618_v52 = vpop.permute.xlu0 %617  ;;  %566 = vadd.xlane.f32.xlu1 %v565_v51 }
 0x44e   :  { %5070 = vpow2.f32 %v563_v50  ;;  %4458 = vmatprep.subr.mxu1 %v618_v52 }
 0x44f   :  { %v5595_v53 = vpop.eup %5062  ;;  %4459 = vmatpush3.msra.mxu1 %v618_v52 }
 0x450   :  { %4460 = vmatprep.subr.mxu1 %v616_v54  ;;  %v571_v55 = vsel %vm516_vm2, %v5595_v53, 0.0 }
 0x451   :  { %4461 = vmatpush3.msra.mxu1 %v616_v54  ;;  %572 = vadd.xlane.f32.xlu1 %v571_v55  ;;  %v612_v4 = vpop.permute.xlu0 %611 }
 0x453   :  { %v5599_v56 = vpop.eup %5064 }
 0x454   :  { %v5601_v57 = vpop.eup %5066  ;;  %v574_v58 = vsel %vm516_vm2, %v5599_v56, 0.0 }
 0x455   :  { %575 = vadd.xlane.f32.xlu0 %v574_v58  ;;  %v577_v59 = vsel %vm516_vm2, %v5601_v57, 0.0 }
 0x456   :  { %578 = vadd.xlane.f32.xlu1 %v577_v59 }
 0x457   :  { %v5607_v60 = vpop.eup %5068 }
 0x458   :  { %v580_v61 = vsel %vm516_vm2, %v5607_v60, 0.0 }
 0x459   :  { %581 = vadd.xlane.f32.xlu0 %v580_v61  ;;  %v1022_v61 = vld [vmem:[#allocation7 + $0x190] sm:$0xff] }
 0x45b   :  { %v5611_v62 = vpop.eup %5070 }
 0x45c   :  { %v586_v63 = vsel %vm516_vm2, %v5611_v62, 0.0 }
 0x45d   :  { %587 = vadd.xlane.f32.xlu0 %v586_v63  ;;  %v1021_v63 = vld [vmem:[#allocation7 + $0x188] sm:$0xff] }
 0x473   :  { %607 = vrot.lane.b32.xlu0 %v5491_v29, %s5391_s18 }
 0x47a   :  { %v537_v0 = vpop.xlane.xlu1 %536 }
 0x47b   :  { %v547_v1 = vsub.f32 %v5582_v20, %v537_v0  ;;  %v1020_v0 = vld [vmem:[#allocation7 + $0x180] sm:$0xff] }
 0x47d   :  { %v561_v2 = vmul.f32 1.442695, %v547_v1  ;;  %v219_v1 = vld [vmem:[#allocation4 + $0x8] sm:$0xff] }
 0x47e   :  { %v614_v3 = vpop.permute.xlu1 %613 }
 0x47f   :  { %5072 = vpow2.f32 %v561_v2  ;;  %4462 = vmatprep.subr.mxu1 %v614_v3  ;;  %v3923_v2 = vld [vmem:[#allocation7 + $0x381] ss:$0 sm:$0xff] }
 0x480   :  { %4463 = vmatpush3.msra.mxu1 %v614_v3 }
 0x481   :  { %4464 = vmatprep.subr.mxu1 %v612_v4 }
 0x482   :  { %4465 = vmatpush3.msra.mxu1 %v612_v4  ;;  %v610_v5 = vpop.permute.xlu1 %609 }
 0x483   :  { %4466 = vmatprep.subr.mxu1 %v610_v5 }
 0x484   :  { %4467 = vmatpush3.msra.mxu1 %v610_v5 }
 0x48c   :  { %v5073_v6 = vpop.eup %5072 }
 0x48d   :  { %v583_v7 = vsel %vm516_vm2, %v5073_v6, 0.0 }
 0x48e   :  { %584 = vadd.xlane.f32.xlu1 %v583_v7 }
 0x49f   :  { %605 = vrot.lane.b32.xlu1 %v5493_v31, %s5391_s18 }
 0x4d4   :  { %v570_v8 = vpop.xlane.xlu0 %569 }
 0x4d6   :  { %v567_v29 = vpop.xlane.xlu1 %566 }
 0x4d7   :  { %5074 = vrcp.f32 %v567_v29 }
 0x4d8   :  { %5076 = vrcp.f32 %v570_v8  ;;  %v939_v8 = vld [vmem:[#allocation7 + $0x178] sm:$0xff] }
 0x4da   :  { %v573_v15 = vpop.xlane.xlu1 %572 }
 0x4db   :  { %5078 = vrcp.f32 %v573_v15 }
 0x4de   :  { %v576_v9 = vpop.xlane.xlu0 %575 }
 0x4df   :  { %v579_v16 = vpop.xlane.xlu1 %578  ;;  %5080 = vrcp.f32 %v576_v9  ;;  %v938_v9 = vld [vmem:[#allocation7 + $0x170] sm:$0xff] }
 0x4e0   :  { %5082 = vrcp.f32 %v579_v16  ;;  %v5653_v16 = vld [vmem:[#allocation6 + $0x182] ss:$0 sm:$0xff] }
 0x4e2   :  { %v582_v10 = vpop.xlane.xlu0 %581 }
 0x4e3   :  { %5084 = vrcp.f32 %v582_v10 }
 0x4e4   :  { %v5075_v11 = vpop.eup %5074 }
 0x4e5   :  { %v597_v12 = vmul.f32 %v5075_v11, %v5061_v49  ;;  %v5077_v17 = vpop.eup %5076 }
 0x4e6   :  { %v588_v13 = vpop.xlane.xlu0 %587  ;;  %v598_v20 = vmul.f32 %v5077_v17, %v5590_v45 }
 0x4e7   :  { %4472 = vmatprep.mubr.msk.f32.mxu1 %vm516_vm2, %v597_v12  ;;  %5086 = vrcp.f32 %v588_v13 }
 0x4e8   :  { %v5079_v18 = vpop.eup %5078 }
 0x4e9   :  { %v599_v22 = vmul.f32 %v5079_v18, %v5595_v53  ;;  %v937_v18 = vld [vmem:[#allocation7 + $0x168] sm:$0xff] }
 0x4ea   :  { %v608_v14 = vpop.permute.xlu0 %607 }
 0x4eb   :  { %4468 = vmatprep.subr.mxu1 %v608_v14 }
 0x4ec   :  { %4469 = vmatpush3.msra.mxu1 %v608_v14  ;;  %v5081_v21 = vpop.eup %5080 }
 0x4ed   :  { %v5083_v23 = vpop.eup %5082  ;;  %v600_v24 = vmul.f32 %v5081_v21, %v5599_v56  ;;  %v934_v21 = vld [vmem:[#allocation7 + $0x150] sm:$0xff] }
 0x4ee   :  { %v601_v28 = vmul.f32 %v5083_v23, %v5601_v57  ;;  %v932_v23 = vld [vmem:[#allocation7 + $0x140] sm:$0xff] }
 0x4f0   :  { %v5085_v27 = vpop.eup %5084 }
 0x4f1   :  { %v602_v32 = vmul.f32 %v5085_v27, %v5607_v60  ;;  %v1023_v60 = vld [vmem:[#allocation7 + $0x198] sm:$0xff]  ;;  %v930_v27 = vld [vmem:[#allocation7 + $0x130] sm:$0xff] }
 0x4f2   :  { %4530 = vmatprep.subr.mxu0 %v1023_v60 }
 0x4f4   :  { %v5087_v30 = vpop.eup %5086 }
 0x4f5   :  { %v604_v36 = vmul.f32 %v5087_v30, %v5611_v62  ;;  %v218_v62 = vld [vmem:[#allocation4] sm:$0xff]  ;;  %v928_v30 = vld [vmem:[#allocation7 + $0x120] sm:$0xff] }
 0x517   :  { %v585_v31 = vpop.xlane.xlu1 %584 }
 0x518   :  { %5088 = vrcp.f32 %v585_v31 }
 0x51b   :  { %v606_v19 = vpop.permute.xlu1 %605 }
 0x51c   :  { %4470 = vmatprep.subr.mxu1 %v606_v19 }
 0x51d   :  { %4471 = vmatpush3.msra.mxu1 %v606_v19  ;;  %v936_v19 = vld [vmem:[#allocation7 + $0x160] sm:$0xff] }
 0x51e   :  { %4473 = vmatmul.mubr.msk.f32.vlgmr.msra.gmra.mxu1 %vm516_vm2, %v598_v20  ;;  %4495 = vmatprep.subr.mxu1 %v939_v8  ;;  %v935_v20 = vld [vmem:[#allocation7 + $0x158] sm:$0xff] }
 0x51f   :  { %4475 = vmatprep.mubr.msk.f32.mxu1 %vm516_vm2, %v599_v22  ;;  %4496 = vmatpush3.msra.mxu1 %v939_v8  ;;  %v933_v22 = vld [vmem:[#allocation7 + $0x148] sm:$0xff] }
 0x520   :  { %4497 = vmatprep.subr.mxu1 %v938_v9 }
 0x521   :  { %4498 = vmatpush3.msra.mxu1 %v938_v9 }
 0x522   :  { %4476 = vmatmul.mubr.msk.f32.gmra.mxu1 %vm516_vm2, %v600_v24  ;;  %4499 = vmatprep.subr.mxu1 %v937_v18  ;;  %v931_v24 = vld [vmem:[#allocation7 + $0x138] sm:$0xff] }
 0x523   :  { %4478 = vmatprep.mubr.msk.f32.mxu1 %vm516_vm2, %v601_v28  ;;  %4500 = vmatpush3.msra.mxu1 %v937_v18  ;;  %v929_v28 = vld [vmem:[#allocation7 + $0x128] sm:$0xff] }
 0x524   :  { %4501 = vmatprep.subr.mxu1 %v936_v19 }
 0x525   :  { %v5089_v33 = vpop.eup %5088  ;;  %4502 = vmatpush3.msra.mxu1 %v936_v19  ;;  %v230_v19 = vld [vmem:[#allocation10 + $0x10] sm:$0xff] }
 0x526   :  { %4479 = vmatmul.mubr.msk.f32.gmra.mxu1 %vm516_vm2, %v602_v32  ;;  %v603_v34 = vmul.f32 %v5089_v33, %v5073_v6  ;;  %4503 = vmatprep.subr.mxu1 %v935_v20  ;;  %v927_v32 = vld [vmem:[#allocation7 + $0x118] sm:$0xff]  ;;  %v926_v33 = vld [vmem:[#allocation7 + $0x110] sm:$0xff] }
 0x527   :  { %4504 = vmatpush3.msra.mxu1 %v935_v20 }
 0x528   :  { %4481 = vmatprep.mubr.msk.f32.mxu1 %vm516_vm2, %v603_v34  ;;  %4505 = vmatprep.subr.mxu1 %v934_v21  ;;  %v925_v34 = vld [vmem:[#allocation7 + $0x108] sm:$0xff] }
 0x529   :  { %4506 = vmatpush3.msra.mxu1 %v934_v21 }
 0x52a   :  { %4482 = vmatmul.mubr.msk.f32.gmra.mxu1 %vm516_vm2, %v604_v36  ;;  %4507 = vmatprep.subr.mxu1 %v933_v22  ;;  %v924_v36 = vld [vmem:[#allocation7 + $0x100] sm:$0xff] }
 0x52b   :  { %4508 = vmatpush3.msra.mxu1 %v933_v22 }
 0x52c   :  { %4509 = vmatprep.subr.mxu1 %v932_v23 }
 0x52d   :  { %4510 = vmatpush3.msra.mxu1 %v932_v23  ;;  %v231_v23 = vld [vmem:[#allocation10 + $0x18] sm:$0xff] }
 0x52e   :  { %4511 = vmatprep.subr.mxu1 %v931_v24 }
 0x52f   :  { %4512 = vmatpush3.msra.mxu1 %v931_v24 }
 0x530   :  { %4513 = vmatprep.subr.mxu1 %v930_v27 }
 0x531   :  { %4514 = vmatpush3.msra.mxu1 %v930_v27 }
 0x532   :  { %4515 = vmatprep.subr.mxu1 %v929_v28 }
 0x533   :  { %4516 = vmatpush3.msra.mxu1 %v929_v28  ;;  %v232_v28 = vld [vmem:[#allocation10 + $0x20] sm:$0xff] }
 0x534   :  { %4517 = vmatprep.subr.mxu1 %v928_v30 }
 0x535   :  { %4518 = vmatpush3.msra.mxu1 %v928_v30 }
 0x536   :  { %4519 = vmatprep.subr.mxu1 %v927_v32 }
 0x537   :  { %4520 = vmatpush3.msra.mxu1 %v927_v32 }
 0x538   :  { %4521 = vmatprep.subr.mxu1 %v926_v33 }
 0x539   :  { %4522 = vmatpush3.msra.mxu1 %v926_v33 }
 0x53a   :  { %4523 = vmatprep.subr.mxu1 %v925_v34 }
 0x53b   :  { %4524 = vmatpush3.msra.mxu1 %v925_v34 }
 0x53c   :  { %4525 = vmatprep.subr.mxu1 %v924_v36 }
 0x53d   :  { %4526 = vmatpush3.msra.mxu1 %v924_v36 }
 0x5de   :  { %v4474_v35 = vpop.f32.mrf.mxu1 }
 0x5e0   :  { %v719_v42 = vpop.f32.mrf.mxu1 }
 0x5e2   :  { %v4477_v37 = vpop.f32.mrf.mxu1 }
 0x5e3   :  { %762 = vrot.lane.b32.xlu1 %v4477_v37, %s5381_s11 }
 0x5e4   :  { %v729_v43 = vpop.f32.mrf.mxu1 }
 0x5e5   :  { %760 = vrot.lane.b32.xlu0 %v729_v43, %s5381_s11 }
 0x5e6   :  { %v4480_v44 = vpop.f32.mrf.mxu1 }
 0x5e7   :  { %770 = vrot.lane.b32.xlu1 %v4480_v44, %s5392_s19 }
 0x5e8   :  { %v739_v45 = vpop.f32.mrf.mxu1 }
 0x5e9   :  { %768 = vrot.lane.b32.xlu0 %v739_v45, %s5392_s19 }
 0x5ea   :  { %v4483_v46 = vpop.f32.mrf.mxu1 }
 0x5eb   :  { %778 = vrot.lane.b32.xlu1 %v4483_v46, %s5393_s20 }
 0x5ec   :  { %v749_v47 = vpop.f32.mrf.mxu1 }
 0x5ed   :  { %776 = vrot.lane.b32.xlu0 %v749_v47, %s5393_s20 }
 0x655   :  { %v763_v48 = vpop.permute.xlu1 %762 }
 0x656   :  { %v783_v54 = vsel %vm362_vm1, %v4474_v35, %v763_v48  ;;  %v3927_v48 = vld [vmem:[#allocation7 + $0x387] ss:$0 sm:$0xff] }
 0x657   :  { %v761_v49 = vpop.permute.xlu0 %760 }
 0x658   :  { %v782_v52 = vsel %vm362_vm1, %v719_v42, %v761_v49 }
 0x659   :  { %v771_v50 = vpop.permute.xlu1 %770 }
 0x65a   :  { %v785_v57 = vsel %vm134_vm0, %v783_v54, %v771_v50 }
 0x65b   :  { %v769_v51 = vpop.permute.xlu0 %768 }
 0x65c   :  { %v784_v55 = vsel %vm134_vm0, %v782_v52, %v769_v51  ;;  %v3928_v51 = vld [vmem:[#allocation7 + $0x388] ss:$0 sm:$0xff] }
 0x65d   :  { %v779_v53 = vpop.permute.xlu1 %778 }
 0x65e   :  { %v788_v59 = vsel %vm786_vm3, %v785_v57, %v779_v53 }
 0x65f   :  { %v777_v56 = vpop.permute.xlu0 %776 }
 0x660   :  { %v787_v58 = vsel %vm786_vm3, %v784_v55, %v777_v56 }
 0x661   :  { %4492 = vmatprep.mubr.msk.f32.mxu0 %vm798_vm4, %v787_v58 }
 0x662   :  { %4493 = vmatmul.mubr.msk.f32.vlgmr.msra.gmra.mxu0 %vm798_vm4, %v788_v59 }
 0x663   :  { %4531 = vmatpush3.msra.mxu0 %v1023_v60  ;;  %4538 = vmatprep.mubr.msk.f32.mxu0 %vm798_vm4, %v218_v62 }
 0x664   :  { %4532 = vmatprep.subr.mxu0 %v1022_v61 }
 0x665   :  { %4533 = vmatpush3.msra.mxu0 %v1022_v61 }
 0x666   :  { %4534 = vmatprep.subr.mxu0 %v1021_v63 }
 0x667   :  { %4535 = vmatpush3.msra.mxu0 %v1021_v63  ;;  %v3929_v63 = vld [vmem:[#allocation7 + $0x382] ss:$0 sm:$0xff] }
 0x668   :  { %4536 = vmatprep.subr.mxu0 %v1020_v0 }
 0x669   :  { %4537 = vmatpush3.msra.mxu0 %v1020_v0 }
 0x66a   :  { %4539 = vmatmul.mubr.msk.f32.vlgmr.msra.gmra.mxu0 %vm798_vm4, %v219_v1 }
 0x722   :  { %v4494_v3 = vpop.f32.mrf.mxu0 }
 0x723   :  { %v877_v4 = vadd.f32 %v4494_v3, %v3923_v2 }
 0x724   :  { %v871_v5 = vpop.f32.mrf.mxu0 }
 0x725   :  { %v872_v6 = vadd.f32 %v3923_v2, %v871_v5  ;;  %v881_v7 = vadd.f32 %v877_v4, %v5487_v26 }
 0x727   :  { %886 = vadd.xlane.f32.xlu1 %v881_v7  ;;  %v880_v29 = vadd.f32 %v872_v6, %v5485_v25 }
 0x729   :  { %884 = vadd.xlane.f32.xlu0 %v880_v29 }
 0x72a   :  { %v4540_v38 = vpop.f32.mrf.mxu0 }
 0x72b   :  { %v5665_v40 = vadd.f32 %v4540_v38, %v3930_v39  ;;  %v233_v38 = vld [vmem:[#allocation10 + $0x28] sm:$0xff] }
 0x72c   :  { %v1101_v35 = vpop.f32.mrf.mxu0 }
 0x72d   :  { %v5669_v41 = vadd.f32 %v3930_v39, %v1101_v35 }
 0x738   :  { %1136 = vrot.lane.b32.xlu1 %v5665_v40, %s5388_s6 }
 0x73c   :  { %1132 = vrot.lane.b32.xlu1 %v5665_v40, %s5387_s4 }
 0x740   :  { %1130 = vrot.lane.b32.xlu1 %v5669_v41, %s5387_s4 }
 0x744   :  { %1126 = vrot.lane.b32.xlu1 %v5669_v41, %s5389_s10 }
 0x7b0   :  { %v887_v10 = vpop.xlane.xlu1 %886 }
 0x7b1   :  { %v889_v11 = vmul.f32 0.03125, %v887_v10  ;;  %v229_v10 = vld [vmem:[#allocation10 + $0x8] sm:$0xff] }
 0x7b2   :  { %v885_v12 = vpop.xlane.xlu0 %884 }
 0x7b3   :  { %v888_v13 = vmul.f32 0.03125, %v885_v12  ;;  %v891_v14 = vsub.f32 %v881_v7, %v889_v11 }
 0x7b4   :  { %v5681_v49 = vpop.permute.xlu1 %1136 }
 0x7b5   :  { %v890_v15 = vsub.f32 %v880_v29, %v888_v13  ;;  %v5661_v31 = vmul.f32 %v5653_v16, %v891_v14  ;;  %4541 = vmatprep.subr.msk.mxu0 %vm362_vm1, %v5681_v49  ;;  %v228_v13 = vld [vmem:[#allocation10] sm:$0xff] }
 0x7b6   :  { %4542 = vmatpush3.xpose.msk.msra.mxu0 %vm362_vm1, %v5681_v49 }
 0x7b7   :  { %v5656_v26 = vmul.f32 %v5653_v16, %v890_v15  ;;  %v899_v17 = vmul.f32 %v5661_v31, %v5661_v31 }
 0x7b8   :  { %v5692_v55 = vpop.permute.xlu1 %1132 }
 0x7b9   :  { %v898_v25 = vmul.f32 %v5656_v26, %v5656_v26 }
 0x7bb   :  { %900 = vadd.xlane.f32.xlu0 %v898_v25 }
 0x7bc   :  { %v5702_v59 = vpop.permute.xlu1 %1130 }
 0x7bf   :  { %902 = vadd.xlane.f32.xlu0 %v899_v17 }
 0x7c0   :  { %v5717_v62 = vpop.permute.xlu1 %1126 }
 0x7d5   :  { %1134 = vrot.lane.b32.xlu0 %v5669_v41, %s5388_s6 }
 0x7d9   :  { %1128 = vrot.lane.b32.xlu0 %v5665_v40, %s5389_s10 }
 0x844   :  { %v901_v42 = vpop.xlane.xlu0 %900 }
 0x845   :  { %v904_v37 = vmul.f32 0.03125, %v901_v42 }
 0x847   :  { %v906_v43 = vadd.f32 1e-05, %v904_v37 }
 0x848   :  { %v903_v44 = vpop.xlane.xlu0 %902 }
 0x849   :  { %5090 = vrsqrt.f32 %v906_v43  ;;  %v905_v45 = vmul.f32 0.03125, %v903_v44  ;;  %v235_v44 = vld [vmem:[#allocation10 + $0x38] sm:$0xff] }
 0x84b   :  { %v907_v46 = vadd.f32 1e-05, %v905_v45 }
 0x84c   :  { %v5688_v52 = vpop.permute.xlu0 %1134 }
 0x84d   :  { %5092 = vrsqrt.f32 %v907_v46  ;;  %4543 = vmatprep.subr.msk.mxu0 %vm362_vm1, %v5688_v52 }
 0x84e   :  { %4544 = vmatpush3.xpose.msk.msra.mxu0 %vm362_vm1, %v5688_v52 }
 0x84f   :  { %4545 = vmatprep.subr.msk.mxu0 %vm362_vm1, %v5692_v55 }
 0x850   :  { %v5711_v61 = vpop.permute.xlu0 %1128 }
 0x852   :  { %4546 = vmatpush3.xpose.msk.msra.mxu0 %vm362_vm1, %v5692_v55 }
 0x853   :  { %4547 = vmatprep.subr.msk.mxu0 %vm362_vm1, %v5702_v59 }
 0x856   :  { %v5091_v47 = vpop.eup %5090  ;;  %4548 = vmatpush3.xpose.msk.msra.mxu0 %vm362_vm1, %v5702_v59 }
 0x857   :  { %v910_v50 = vmul.f32 %v5091_v47, %v5656_v26  ;;  %4549 = vmatprep.subr.msk.mxu0 %vm362_vm1, %v5711_v61 }
 0x859   :  { %v916_v53 = vmul.f32 %v3927_v48, %v910_v50 }
 0x85a   :  { %v5093_v54 = vpop.eup %5092  ;;  %4550 = vmatpush3.xpose.msk.msra.mxu0 %vm362_vm1, %v5711_v61 }
 0x85b   :  { %v911_v56 = vmul.f32 %v5093_v54, %v5661_v31  ;;  %v5695_v57 = vadd.f32 %v3928_v51, %v916_v53  ;;  %4551 = vmatprep.subr.msk.mxu0 %vm362_vm1, %v5717_v62 }
 0x85d   :  { %v917_v58 = vmul.f32 %v3927_v48, %v911_v56  ;;  %4527 = vmatprep.mubr.f32.mxu1 %v5695_v57  ;;  %v234_v56 = vld [vmem:[#allocation10 + $0x30] sm:$0xff] }
 0x85e   :  { %4552 = vmatpush3.xpose.msk.msra.mxu0 %vm362_vm1, %v5717_v62 }
 0x85f   :  { %v5704_v60 = vadd.f32 %v3928_v51, %v917_v58  ;;  %4553 = vmatprep.subr.msk.mxu0 %vm362_vm1, %v5665_v40 }
 0x861   :  { %4528 = vmatmul.mubr.f32.vlgmr.msra.gmra.mxu1 %v5704_v60 }
 0x862   :  { %4554 = vmatpush3.xpose.msk.msra.mxu0 %vm362_vm1, %v5665_v40 }
 0x863   :  { %4555 = vmatprep.subr.msk.mxu0 %vm362_vm1, %v5669_v41 }
 0x866   :  { %4556 = vmatpush3.xpose.msk.msra.mxu0 %vm362_vm1, %v5669_v41 }
 0x921   :  { %v4529_v0 = vpop.f32.mrf.mxu1 }
 0x922   :  { %v1017_v1 = vadd.f32 %v4529_v0, %v3929_v63 }
 0x923   :  { %v1011_v2 = vpop.f32.mrf.mxu1 }
 0x924   :  { %v1012_v3 = vadd.f32 %v3929_v63, %v1011_v2  ;;  %1114 = vrot.lane.b32.xlu1 %v1017_v1, %s5389_s10 }
 0x926   :  { %1112 = vrot.lane.b32.xlu0 %v1012_v3, %s5389_s10  ;;  %4557 = vmatprep.mubr.msk.f32.mxu0 %vm362_vm1, %v1012_v3 }
 0x927   :  { %4558 = vmatmul.mubr.msk.f32.vlgmr.msra.gmra.mxu0 %vm362_vm1, %v1017_v1 }
 0x928   :  { %1118 = vrot.lane.b32.xlu1 %v1017_v1, %s5387_s4 }
 0x92a   :  { %1116 = vrot.lane.b32.xlu0 %v1012_v3, %s5387_s4 }
 0x92c   :  { %1122 = vrot.lane.b32.xlu1 %v1017_v1, %s5388_s6 }
 0x92e   :  { %1120 = vrot.lane.b32.xlu0 %v1012_v3, %s5388_s6 }
 0x996   :  { %v1115_v4 = vpop.permute.xlu1 %1114 }
 0x998   :  { %v1113_v5 = vpop.permute.xlu0 %1112 }
 0x999   :  { %4560 = vmatprep.mubr.msk.f32.mxu0 %vm362_vm1, %v1113_v5 }
 0x99a   :  { %4561 = vmatmul.mubr.msk.f32.gmra.mxu0 %vm362_vm1, %v1115_v4  ;;  %v1119_v6 = vpop.permute.xlu1 %1118 }
 0x99c   :  { %v1117_v7 = vpop.permute.xlu0 %1116 }
 0x99d   :  { %4563 = vmatprep.mubr.msk.f32.mxu0 %vm362_vm1, %v1117_v7 }
 0x99e   :  { %4564 = vmatmul.mubr.msk.f32.gmra.mxu0 %vm362_vm1, %v1119_v6  ;;  %v1123_v8 = vpop.permute.xlu1 %1122 }
 0x9a0   :  { %v1121_v29 = vpop.permute.xlu0 %1120 }
 0x9a1   :  { %4566 = vmatprep.mubr.msk.f32.mxu0 %vm362_vm1, %v1121_v29 }
 0x9a2   :  { %4567 = vmatmul.mubr.msk.f32.gmra.mxu0 %vm362_vm1, %v1123_v8 }
 0x9e7   :  { %v4559_v9 = vpop.f32.mrf.mxu0 }
 0x9e8   :  { %v1276_v11 = vmul.f32 0.35355338, %v4559_v9 }
 0x9e9   :  { %v1236_v12 = vpop.f32.mrf.mxu0 }
 0x9ea   :  { %v1275_v14 = vmul.f32 0.35355338, %v1236_v12  ;;  %v1284_v15 = vadd.f32 %v1276_v11, %v229_v10 }
 0x9ec   :  { %v1294_v26 = vsel %vm516_vm2, %v1284_v15, -inf  ;;  %v1283_v25 = vadd.f32 %v1275_v14, %v228_v13 }
 0x9ed   :  { %1295 = vmax.xlane.f32.xlu1 %v1294_v26 }
 0x9ee   :  { %v1291_v31 = vsel %vm516_vm2, %v1283_v25, -inf }
 0x9ef   :  { %1292 = vmax.xlane.f32.xlu0 %v1291_v31 }
 0xa5a   :  { %v4562_v17 = vpop.f32.mrf.mxu0 }
 0xa5b   :  { %v1278_v20 = vmul.f32 0.35355338, %v4562_v17 }
 0xa5c   :  { %v1246_v18 = vpop.f32.mrf.mxu0 }
 0xa5d   :  { %v1277_v21 = vmul.f32 0.35355338, %v1246_v18  ;;  %v1286_v34 = vadd.f32 %v1278_v20, %v231_v23 }
 0xa5e   :  { %v4565_v22 = vpop.f32.mrf.mxu0 }
 0xa5f   :  { %v1285_v24 = vadd.f32 %v1277_v21, %v230_v19  ;;  %v1280_v30 = vmul.f32 0.35355338, %v4565_v22  ;;  %v1300_v42 = vsel %vm516_vm2, %v1286_v34, -inf }
 0xa60   :  { %v1256_v27 = vpop.f32.mrf.mxu0 }
 0xa61   :  { %v1279_v32 = vmul.f32 0.35355338, %v1256_v27  ;;  %v1297_v33 = vsel %vm516_vm2, %v1285_v24, -inf  ;;  %v1288_v43 = vadd.f32 %v1280_v30, %v233_v38 }
 0xa62   :  { %1298 = vmax.xlane.f32.xlu0 %v1297_v33  ;;  %v4568_v36 = vpop.f32.mrf.mxu0 }
 0xa63   :  { %v1287_v39 = vadd.f32 %v1279_v32, %v232_v28  ;;  %v1282_v35 = vmul.f32 0.35355338, %v4568_v36  ;;  %v1306_v45 = vsel %vm516_vm2, %v1288_v43, -inf }
 0xa64   :  { %v1266_v53 = vpop.f32.mrf.mxu0 }
 0xa65   :  { %v1303_v37 = vsel %vm516_vm2, %v1287_v39, -inf  ;;  %v1290_v46 = vadd.f32 %v1282_v35, %v235_v44  ;;  %v1281_v54 = vmul.f32 0.35355338, %v1266_v53 }
 0xa66   :  { %1301 = vmax.xlane.f32.xlu0 %v1300_v42  ;;  %1304 = vmax.xlane.f32.xlu1 %v1303_v37 }
 0xa67   :  { %v1312_v47 = vsel %vm516_vm2, %v1290_v46, -inf  ;;  %v1289_v58 = vadd.f32 %v1281_v54, %v234_v56 }
 0xa69   :  { %v1309_v63 = vsel %vm516_vm2, %v1289_v58, -inf }
 0xa6a   :  { %1307 = vmax.xlane.f32.xlu0 %v1306_v45 }
 0xa6e   :  { %1313 = vmax.xlane.f32.xlu0 %v1312_v47 }
 0xa76   :  { %v1296_v48 = vpop.xlane.xlu1 %1295 }
 0xa77   :  { %1393 = vrot.lane.b32.xlu1 %v5681_v49, %s5390_s17  ;;  %v1316_v50 = vsub.f32 %v1284_v15, %v1296_v48 }
 0xa79   :  { %v1325_v51 = vmul.f32 1.442695, %v1316_v50 }
 0xa7b   :  { %1389 = vrot.lane.b32.xlu1 %v5692_v55, %s5390_s17  ;;  %5094 = vpow2.f32 %v1325_v51 }
 0xa84   :  { %1391 = vrot.lane.b32.xlu0 %v5688_v52, %s5390_s17  ;;  %v1293_v52 = vpop.xlane.xlu0 %1292 }
 0xa88   :  { %1385 = vrot.lane.b32.xlu0 %v5711_v61, %s5390_s17  ;;  %v5763_v49 = vpop.eup %5094  ;;  %v1315_v61 = vsub.f32 %v1283_v25, %v1293_v52 }
 0xa89   :  { %v1342_v55 = vsel %vm516_vm2, %v5763_v49, 0.0 }
 0xa8a   :  { %v1323_v0 = vmul.f32 1.442695, %v1315_v61 }
 0xa8c   :  { %5096 = vpow2.f32 %v1323_v0 }
 0xa99   :  { %v5771_v1 = vpop.eup %5096 }
 0xa9a   :  { %v1339_v2 = vsel %vm516_vm2, %v5771_v1, 0.0 }
 0xa9f   :  { %1310 = vmax.xlane.f32.xlu1 %v1309_v63 }
 0xaa7   :  { %1343 = vadd.xlane.f32.xlu0 %v1342_v55 }
 0xab0   :  { %1387 = vrot.lane.b32.xlu1 %v5702_v59, %s5390_s17 }
 0xab4   :  { %1383 = vrot.lane.b32.xlu1 %v5717_v62, %s5390_s17 }
 0xad8   :  { %1340 = vadd.xlane.f32.xlu1 %v1339_v2 }
 0xaeb   :  { %v1299_v3 = vpop.xlane.xlu0 %1298 }
 0xaec   :  { %v1317_v4 = vsub.f32 %v1285_v24, %v1299_v3 }
 0xaee   :  { %v1327_v5 = vmul.f32 1.442695, %v1317_v4  ;;  %v1565_v4 = vld [vmem:[#allocation7 + $0x218] sm:$0xff] }
 0xaef   :  { %v1305_v6 = vpop.xlane.xlu1 %1304  ;;  %v1302_v7 = vpop.xlane.xlu0 %1301  ;;  %4597 = vmatprep.subr.mxu0 %v1565_v4 }
 0xaf0   :  { %5098 = vpow2.f32 %v1327_v5  ;;  %v1319_v59 = vsub.f32 %v1287_v39, %v1305_v6  ;;  %v1318_v29 = vsub.f32 %v1286_v34, %v1302_v7  ;;  %4598 = vmatpush3.msra.mxu0 %v1565_v4  ;;  %v1564_v5 = vld [vmem:[#allocation7 + $0x210] sm:$0xff]  ;;  %v1563_v6 = vld [vmem:[#allocation7 + $0x208] sm:$0xff]  ;;  %v1798_v4 = vld [vmem:[#allocation7 + $0x340] sm:$0xff] }
 0xaf1   :  { %4599 = vmatprep.subr.mxu0 %v1564_v5 }
 0xaf2   :  { %v1331_v8 = vmul.f32 1.442695, %v1319_v59  ;;  %v1329_v62 = vmul.f32 1.442695, %v1318_v29  ;;  %4600 = vmatpush3.msra.mxu0 %v1564_v5  ;;  %v1562_v59 = vld [vmem:[#allocation7 + $0x200] sm:$0xff]  ;;  %v1797_v5 = vld [vmem:[#allocation7 + $0x338] sm:$0xff] }
 0xaf3   :  { %v1394_v9 = vpop.permute.xlu1 %1393  ;;  %v1308_v10 = vpop.xlane.xlu0 %1307  ;;  %4601 = vmatprep.subr.mxu0 %v1563_v6 }
 0xaf4   :  { %5100 = vpow2.f32 %v1331_v8  ;;  %v1320_v11 = vsub.f32 %v1288_v43, %v1308_v10  ;;  %4569 = vmatprep.subr.mxu1 %v1394_v9  ;;  %4602 = vmatpush3.msra.mxu0 %v1563_v6  ;;  %v1796_v6 = vld [vmem:[#allocation7 + $0x330] sm:$0xff] }
 0xaf5   :  { %5102 = vpow2.f32 %v1329_v62  ;;  %4570 = vmatpush3.msra.mxu1 %v1394_v9  ;;  %4603 = vmatprep.subr.mxu0 %v1562_v59 }
 0xaf6   :  { %v1333_v12 = vmul.f32 1.442695, %v1320_v11  ;;  %4604 = vmatpush3.msra.mxu0 %v1562_v59  ;;  %v1794_v59 = vld [vmem:[#allocation7 + $0x320] sm:$0xff] }
 0xaf7   :  { %v1314_v13 = vpop.xlane.xlu0 %1313  ;;  %v1390_v31 = vpop.permute.xlu1 %1389 }
 0xaf8   :  { %5104 = vpow2.f32 %v1333_v12  ;;  %v1322_v14 = vsub.f32 %v1290_v46, %v1314_v13 }
 0xafa   :  { %v1337_v15 = vmul.f32 1.442695, %v1322_v14 }
 0xafb   :  { %v1392_v26 = vpop.permute.xlu0 %1391 }
 0xafc   :  { %5106 = vpow2.f32 %v1337_v15  ;;  %4571 = vmatprep.subr.mxu1 %v1392_v26 }
 0xafd   :  { %v5775_v25 = vpop.eup %5098  ;;  %4572 = vmatpush3.msra.mxu1 %v1392_v26 }
 0xafe   :  { %4573 = vmatprep.subr.mxu1 %v1390_v31  ;;  %v1345_v17 = vsel %vm516_vm2, %v5775_v25, 0.0 }
 0xaff   :  { %1346 = vadd.xlane.f32.xlu1 %v1345_v17  ;;  %4574 = vmatpush3.msra.mxu1 %v1390_v31  ;;  %v1386_v34 = vpop.permute.xlu0 %1385 }
 0xb01   :  { %v5779_v18 = vpop.eup %5100 }
 0xb02   :  { %v5103_v19 = vpop.eup %5102  ;;  %v1351_v20 = vsel %vm516_vm2, %v5779_v18, 0.0 }
 0xb03   :  { %1352 = vadd.xlane.f32.xlu1 %v1351_v20  ;;  %v1348_v21 = vsel %vm516_vm2, %v5103_v19, 0.0 }
 0xb04   :  { %1349 = vadd.xlane.f32.xlu0 %v1348_v21 }
 0xb05   :  { %v5784_v22 = vpop.eup %5104 }
 0xb06   :  { %v1354_v23 = vsel %vm516_vm2, %v5784_v22, 0.0 }
 0xb08   :  { %1355 = vadd.xlane.f32.xlu0 %v1354_v23  ;;  %v3957_v23 = vld [vmem:[#allocation7 + $0x384] ss:$0 sm:$0xff] }
 0xb09   :  { %v5788_v24 = vpop.eup %5106 }
 0xb0a   :  { %v1360_v27 = vsel %vm516_vm2, %v5788_v24, 0.0 }
 0xb0c   :  { %1361 = vadd.xlane.f32.xlu0 %v1360_v27 }
 0xb22   :  { %1381 = vrot.lane.b32.xlu0 %v5665_v40, %s5390_s17 }
 0xb28   :  { %v1311_v28 = vpop.xlane.xlu1 %1310 }
 0xb29   :  { %v1321_v30 = vsub.f32 %v1289_v58, %v1311_v28 }
 0xb2b   :  { %v1335_v32 = vmul.f32 1.442695, %v1321_v30 }
 0xb2c   :  { %v1388_v33 = vpop.permute.xlu1 %1387 }
 0xb2d   :  { %5108 = vpow2.f32 %v1335_v32  ;;  %4575 = vmatprep.subr.mxu1 %v1388_v33 }
 0xb2e   :  { %4576 = vmatpush3.msra.mxu1 %v1388_v33 }
 0xb2f   :  { %4577 = vmatprep.subr.mxu1 %v1386_v34 }
 0xb30   :  { %v1384_v36 = vpop.permute.xlu1 %1383  ;;  %4578 = vmatpush3.msra.mxu1 %v1386_v34  ;;  %v1344_v37 = vpop.xlane.xlu0 %1343  ;;  %v1707_v34 = vld [vmem:[#allocation7 + $0x2f8] sm:$0xff] }
 0xb31   :  { %4579 = vmatprep.subr.mxu1 %v1384_v36 }
 0xb32   :  { %4580 = vmatpush3.msra.mxu1 %v1384_v36  ;;  %v1706_v36 = vld [vmem:[#allocation7 + $0x2f0] sm:$0xff] }
 0xb3a   :  { %v5109_v38 = vpop.eup %5108 }
 0xb3b   :  { %v1357_v39 = vsel %vm516_vm2, %v5109_v38, 0.0 }
 0xb3c   :  { %1358 = vadd.xlane.f32.xlu1 %v1357_v39 }
 0xb4d   :  { %1379 = vrot.lane.b32.xlu1 %v5669_v41, %s5390_s17 }
 0xb61   :  { %v1341_v40 = vpop.xlane.xlu1 %1340 }
 0xb62   :  { %5110 = vrcp.f32 %v1341_v40 }
 0xb63   :  { %5112 = vrcp.f32 %v1344_v37 }
 0xb6f   :  { %v5111_v35 = vpop.eup %5110 }
 0xb70   :  { %v1371_v42 = vmul.f32 %v5111_v35, %v5771_v1  ;;  %v5113_v50 = vpop.eup %5112 }
 0xb71   :  { %v1372_v54 = vmul.f32 %v5113_v50, %v5763_v49  ;;  %v1699_v50 = vld [vmem:[#allocation7 + $0x2b8] sm:$0xff] }
 0xb72   :  { %4585 = vmatprep.mubr.msk.f32.mxu1 %vm516_vm2, %v1371_v42 }
 0xb88   :  { %v1347_v47 = vpop.xlane.xlu1 %1346 }
 0xb89   :  { %5114 = vrcp.f32 %v1347_v47  ;;  %v1703_v47 = vld [vmem:[#allocation7 + $0x2d8] sm:$0xff] }
 0xb8c   :  { %v1353_v48 = vpop.xlane.xlu1 %1352 }
 0xb8d   :  { %v1350_v43 = vpop.xlane.xlu0 %1349 }
 0xb8e   :  { %5116 = vrcp.f32 %v1350_v43 }
 0xb8f   :  { %5118 = vrcp.f32 %v1353_v48  ;;  %v1702_v48 = vld [vmem:[#allocation7 + $0x2d0] sm:$0xff] }
 0xb91   :  { %v1356_v44 = vpop.xlane.xlu0 %1355 }
 0xb92   :  { %5120 = vrcp.f32 %v1356_v44 }
 0xb95   :  { %v1362_v45 = vpop.xlane.xlu0 %1361 }
 0xb96   :  { %5122 = vrcp.f32 %v1362_v45  ;;  %v5115_v51 = vpop.eup %5114  ;;  %v1705_v45 = vld [vmem:[#allocation7 + $0x2e8] sm:$0xff] }
 0xb97   :  { %v1373_v58 = vmul.f32 %v5115_v51, %v5775_v25  ;;  %v1698_v51 = vld [vmem:[#allocation7 + $0x2b0] sm:$0xff] }
 0xb99   :  { %v1382_v46 = vpop.permute.xlu0 %1381 }
 0xb9a   :  { %4581 = vmatprep.subr.mxu1 %v1382_v46 }
 0xb9b   :  { %4582 = vmatpush3.msra.mxu1 %v1382_v46  ;;  %v5117_v56 = vpop.eup %5116  ;;  %v1704_v46 = vld [vmem:[#allocation7 + $0x2e0] sm:$0xff] }
 0xb9c   :  { %v5119_v63 = vpop.eup %5118  ;;  %v1374_v55 = vmul.f32 %v5117_v56, %v5103_v19  ;;  %v1695_v56 = vld [vmem:[#allocation7 + $0x298] sm:$0xff] }
 0xb9d   :  { %v1375_v61 = vmul.f32 %v5119_v63, %v5779_v18  ;;  %v1693_v63 = vld [vmem:[#allocation7 + $0x288] sm:$0xff] }
 0xb9f   :  { %v5121_v52 = vpop.eup %5120 }
 0xba0   :  { %v1376_v49 = vmul.f32 %v5121_v52, %v5784_v22  ;;  %v1805_v52 = vld [vmem:[#allocation7 + $0x378] sm:$0xff] }
 0xba1   :  { %4643 = vmatprep.subr.mxu0 %v1805_v52 }
 0xba3   :  { %v5123_v0 = vpop.eup %5122 }
 0xba4   :  { %v1378_v3 = vmul.f32 %v5123_v0, %v5788_v24  ;;  %v1803_v0 = vld [vmem:[#allocation7 + $0x368] sm:$0xff] }
 0xbc5   :  { %v1359_v41 = vpop.xlane.xlu1 %1358 }
 0xbc6   :  { %5124 = vrcp.f32 %v1359_v41  ;;  %v1701_v41 = vld [vmem:[#allocation7 + $0x2c8] sm:$0xff] }
 0xbc9   :  { %v1380_v53 = vpop.permute.xlu1 %1379 }
 0xbca   :  { %4583 = vmatprep.subr.mxu1 %v1380_v53 }
 0xbcb   :  { %4584 = vmatpush3.msra.mxu1 %v1380_v53  ;;  %v1697_v53 = vld [vmem:[#allocation7 + $0x2a8] sm:$0xff] }
 0xbcc   :  { %4586 = vmatmul.mubr.msk.f32.vlgmr.msra.gmra.mxu1 %vm516_vm2, %v1372_v54  ;;  %4608 = vmatprep.subr.mxu1 %v1707_v34  ;;  %v1696_v54 = vld [vmem:[#allocation7 + $0x2a0] sm:$0xff] }
 0xbcd   :  { %4588 = vmatprep.mubr.msk.f32.mxu1 %vm516_vm2, %v1373_v58  ;;  %4609 = vmatpush3.msra.mxu1 %v1707_v34  ;;  %v1694_v58 = vld [vmem:[#allocation7 + $0x290] sm:$0xff] }
 0xbce   :  { %4610 = vmatprep.subr.mxu1 %v1706_v36 }
 0xbcf   :  { %4611 = vmatpush3.msra.mxu1 %v1706_v36  ;;  %v3963_v36 = vld [vmem:[#allocation7 + $0x386] ss:$0 sm:$0xff] }
 0xbd0   :  { %4589 = vmatmul.mubr.msk.f32.gmra.mxu1 %vm516_vm2, %v1374_v55  ;;  %4612 = vmatprep.subr.mxu1 %v1705_v45  ;;  %v1692_v55 = vld [vmem:[#allocation7 + $0x280] sm:$0xff] }
 0xbd1   :  { %4591 = vmatprep.mubr.msk.f32.mxu1 %vm516_vm2, %v1375_v61  ;;  %4613 = vmatpush3.msra.mxu1 %v1705_v45  ;;  %v1804_v61 = vld [vmem:[#allocation7 + $0x370] sm:$0xff] }
 0xbd2   :  { %4614 = vmatprep.subr.mxu1 %v1704_v46 }
 0xbd3   :  { %v5125_v1 = vpop.eup %5124  ;;  %4615 = vmatpush3.msra.mxu1 %v1704_v46 }
 0xbd4   :  { %4592 = vmatmul.mubr.msk.f32.gmra.mxu1 %vm516_vm2, %v1376_v49  ;;  %v1377_v2 = vmul.f32 %v5125_v1, %v5109_v38  ;;  %4616 = vmatprep.subr.mxu1 %v1703_v47  ;;  %v1802_v49 = vld [vmem:[#allocation7 + $0x360] sm:$0xff]  ;;  %v1801_v1 = vld [vmem:[#allocation7 + $0x358] sm:$0xff] }
 0xbd5   :  { %4617 = vmatpush3.msra.mxu1 %v1703_v47 }
 0xbd6   :  { %4594 = vmatprep.mubr.msk.f32.mxu1 %vm516_vm2, %v1377_v2  ;;  %4618 = vmatprep.subr.mxu1 %v1702_v48  ;;  %v1800_v2 = vld [vmem:[#allocation7 + $0x350] sm:$0xff] }
 0xbd7   :  { %4619 = vmatpush3.msra.mxu1 %v1702_v48 }
 0xbd8   :  { %4595 = vmatmul.mubr.msk.f32.gmra.mxu1 %vm516_vm2, %v1378_v3  ;;  %4620 = vmatprep.subr.mxu1 %v1701_v41  ;;  %v1799_v3 = vld [vmem:[#allocation7 + $0x348] sm:$0xff] }
 0xbd9   :  { %4621 = vmatpush3.msra.mxu1 %v1701_v41  ;;  %v5839_v41 = vld [vmem:[#allocation6 + $0x182] ss:$0 sm:$0xff] }
 0xc8c   :  { %v4587_v7 = vpop.f32.mrf.mxu1 }
 0xc8e   :  { %v1493_v29 = vpop.f32.mrf.mxu1 }
 0xc90   :  { %v4590_v8 = vpop.f32.mrf.mxu1 }
 0xc91   :  { %1536 = vrot.lane.b32.xlu1 %v4590_v8, %s5381_s11 }
 0xc92   :  { %v1503_v62 = vpop.f32.mrf.mxu1 }
 0xc93   :  { %1534 = vrot.lane.b32.xlu0 %v1503_v62, %s5381_s11 }
 0xc94   :  { %v4593_v9 = vpop.f32.mrf.mxu1 }
 0xc95   :  { %1544 = vrot.lane.b32.xlu1 %v4593_v9, %s5392_s19 }
 0xc96   :  { %v1513_v10 = vpop.f32.mrf.mxu1 }
 0xc97   :  { %1542 = vrot.lane.b32.xlu0 %v1513_v10, %s5392_s19 }
 0xc98   :  { %v4596_v11 = vpop.f32.mrf.mxu1 }
 0xc99   :  { %1552 = vrot.lane.b32.xlu1 %v4596_v11, %s5393_s20 }
 0xc9a   :  { %v1523_v12 = vpop.f32.mrf.mxu1 }
 0xc9b   :  { %1550 = vrot.lane.b32.xlu0 %v1523_v12, %s5393_s20 }
 0xd03   :  { %v1537_v13 = vpop.permute.xlu1 %1536 }
 0xd04   :  { %v1557_v17 = vsel %vm362_vm1, %v4587_v7, %v1537_v13  ;;  %v1795_v7 = vld [vmem:[#allocation7 + $0x328] sm:$0xff] }
 0xd05   :  { %v1535_v14 = vpop.permute.xlu0 %1534  ;;  %v3960_v13 = vld [vmem:[#allocation7 + $0x389] ss:$0 sm:$0xff] }
 0xd06   :  { %v1556_v25 = vsel %vm362_vm1, %v1493_v29, %v1535_v14 }
 0xd07   :  { %v1545_v15 = vpop.permute.xlu1 %1544 }
 0xd08   :  { %v1559_v20 = vsel %vm134_vm0, %v1557_v17, %v1545_v15  ;;  %v3961_v15 = vld [vmem:[#allocation7 + $0x38a] ss:$0 sm:$0xff] }
 0xd09   :  { %v1543_v26 = vpop.permute.xlu0 %1542 }
 0xd0a   :  { %v1558_v18 = vsel %vm134_vm0, %v1556_v25, %v1543_v26 }
 0xd0b   :  { %v1553_v31 = vpop.permute.xlu1 %1552 }
 0xd0c   :  { %v1561_v22 = vsel %vm786_vm3, %v1559_v20, %v1553_v31  ;;  %v1793_v20 = vld [vmem:[#allocation7 + $0x318] sm:$0xff] }
 0xd0d   :  { %v1551_v19 = vpop.permute.xlu0 %1550 }
 0xd0e   :  { %v1560_v21 = vsel %vm786_vm3, %v1558_v18, %v1551_v19 }
 0xd0f   :  { %4605 = vmatprep.mubr.msk.f32.mxu0 %vm798_vm4, %v1560_v21  ;;  %v1792_v21 = vld [vmem:[#allocation7 + $0x310] sm:$0xff] }
 0xd10   :  { %4606 = vmatmul.mubr.msk.f32.vlgmr.msra.gmra.mxu0 %vm798_vm4, %v1561_v22  ;;  %v1791_v22 = vld [vmem:[#allocation7 + $0x308] sm:$0xff] }
 0xd11   :  { %4644 = vmatpush3.msra.mxu0 %v1805_v52  ;;  %v1935_v52 = vld [vmem:[#allocation7 + $0x3d0] sm:$0xff] }
 0xd12   :  { %4645 = vmatprep.subr.mxu0 %v1804_v61 }
 0xd13   :  { %4646 = vmatpush3.msra.mxu0 %v1804_v61  ;;  %v1934_v61 = vld [vmem:[#allocation7 + $0x3c8] sm:$0xff] }
 0xd14   :  { %4647 = vmatprep.subr.mxu0 %v1803_v0 }
 0xd15   :  { %4648 = vmatpush3.msra.mxu0 %v1803_v0  ;;  %v1933_v0 = vld [vmem:[#allocation7 + $0x3c0] sm:$0xff] }
 0xd16   :  { %4649 = vmatprep.subr.mxu0 %v1802_v49 }
 0xd17   :  { %4650 = vmatpush3.msra.mxu0 %v1802_v49  ;;  %v1932_v49 = vld [vmem:[#allocation7 + $0x3b8] sm:$0xff] }
 0xd18   :  { %4651 = vmatprep.subr.mxu0 %v1801_v1 }
 0xd19   :  { %4652 = vmatpush3.msra.mxu0 %v1801_v1  ;;  %v1931_v1 = vld [vmem:[#allocation7 + $0x3b0] sm:$0xff] }
 0xd1a   :  { %4653 = vmatprep.subr.mxu0 %v1800_v2 }
 0xd1b   :  { %4654 = vmatpush3.msra.mxu0 %v1800_v2  ;;  %v1930_v2 = vld [vmem:[#allocation7 + $0x3a8] sm:$0xff] }
 0xd1c   :  { %4655 = vmatprep.subr.mxu0 %v1799_v3 }
 0xd1d   :  { %4656 = vmatpush3.msra.mxu0 %v1799_v3  ;;  %v1929_v3 = vld [vmem:[#allocation7 + $0x3a0] sm:$0xff] }
 0xd1e   :  { %4657 = vmatprep.subr.mxu0 %v1798_v4 }
 0xd1f   :  { %4658 = vmatpush3.msra.mxu0 %v1798_v4  ;;  %v1928_v4 = vld [vmem:[#allocation7 + $0x398] sm:$0xff] }
 0xd20   :  { %4659 = vmatprep.subr.mxu0 %v1797_v5 }
 0xd21   :  { %4660 = vmatpush3.msra.mxu0 %v1797_v5  ;;  %v1927_v5 = vld [vmem:[#allocation7 + $0x390] sm:$0xff] }
 0xd22   :  { %4661 = vmatprep.subr.mxu0 %v1796_v6 }
 0xd23   :  { %4662 = vmatpush3.msra.mxu0 %v1796_v6 }
 0xd24   :  { %4663 = vmatprep.subr.mxu0 %v1795_v7 }
 0xd25   :  { %4664 = vmatpush3.msra.mxu0 %v1795_v7 }
 0xd26   :  { %4665 = vmatprep.subr.mxu0 %v1794_v59 }
 0xd27   :  { %4666 = vmatpush3.msra.mxu0 %v1794_v59 }
 0xd28   :  { %4667 = vmatprep.subr.mxu0 %v1793_v20 }
 0xd29   :  { %4668 = vmatpush3.msra.mxu0 %v1793_v20 }
 0xd2a   :  { %4669 = vmatprep.subr.mxu0 %v1792_v21 }
 0xd2b   :  { %4670 = vmatpush3.msra.mxu0 %v1792_v21 }
 0xd2c   :  { %4671 = vmatprep.subr.mxu0 %v1791_v22 }
 0xd2d   :  { %4672 = vmatpush3.msra.mxu0 %v1791_v22 }
 0xdd0   :  { %v4607_v24 = vpop.f32.mrf.mxu0 }
 0xdd1   :  { %v1649_v27 = vadd.f32 %v4607_v24, %v3957_v23  ;;  %v3962_v24 = vld [vmem:[#allocation7 + $0x385] ss:$0 sm:$0xff] }
 0xdd2   :  { %v1643_v28 = vpop.f32.mrf.mxu0 }
 0xdd3   :  { %v1644_v30 = vadd.f32 %v3957_v23, %v1643_v28  ;;  %v1653_v32 = vadd.f32 %v1649_v27, %v5704_v60  ;;  %v1790_v23 = vld [vmem:[#allocation7 + $0x300] sm:$0xff] }
 0xdd4   :  { %4673 = vmatprep.subr.mxu0 %v1790_v23 }
 0xdd5   :  { %1658 = vadd.xlane.f32.xlu1 %v1653_v32  ;;  %v1652_v33 = vadd.f32 %v1644_v30, %v5695_v57  ;;  %4674 = vmatpush3.msra.mxu0 %v1790_v23 }
 0xdd7   :  { %1656 = vadd.xlane.f32.xlu0 %v1652_v33 }
 0xe5e   :  { %v1659_v38 = vpop.xlane.xlu1 %1658 }
 0xe5f   :  { %v1661_v39 = vmul.f32 0.03125, %v1659_v38 }
 0xe60   :  { %v1657_v40 = vpop.xlane.xlu0 %1656 }
 0xe61   :  { %v1660_v35 = vmul.f32 0.03125, %v1657_v40  ;;  %v1663_v42 = vsub.f32 %v1653_v32, %v1661_v39 }
 0xe63   :  { %v1662_v37 = vsub.f32 %v1652_v33, %v1660_v35  ;;  %v5833_v57 = vmul.f32 %v5653_v16, %v1663_v42 }
 0xe65   :  { %v5828_v43 = vmul.f32 %v5653_v16, %v1662_v37  ;;  %v1667_v44 = vmul.f32 %v5833_v57, %v5833_v57  ;;  %v1700_v16 = vld [vmem:[#allocation7 + $0x2c0] sm:$0xff] }
 0xe66   :  { %4622 = vmatprep.subr.mxu1 %v1700_v16 }
 0xe67   :  { %v1666_v60 = vmul.f32 %v5828_v43, %v5828_v43  ;;  %4623 = vmatpush3.msra.mxu1 %v1700_v16 }
 0xe68   :  { %4624 = vmatprep.subr.mxu1 %v1699_v50 }
 0xe69   :  { %1668 = vadd.xlane.f32.xlu0 %v1666_v60  ;;  %4625 = vmatpush3.msra.mxu1 %v1699_v50  ;;  %v1941_v60 = vld [vmem:[#allocation7 + $0x400] sm:$0xff] }
 0xe6a   :  { %4626 = vmatprep.subr.mxu1 %v1698_v51 }
 0xe6b   :  { %4627 = vmatpush3.msra.mxu1 %v1698_v51 }
 0xe6c   :  { %4628 = vmatprep.subr.mxu1 %v1697_v53 }
 0xe6d   :  { %1670 = vadd.xlane.f32.xlu0 %v1667_v44  ;;  %4629 = vmatpush3.msra.mxu1 %v1697_v53 }
 0xe6e   :  { %4630 = vmatprep.subr.mxu1 %v1696_v54 }
 0xe6f   :  { %4631 = vmatpush3.msra.mxu1 %v1696_v54 }
 0xe70   :  { %4632 = vmatprep.subr.mxu1 %v1695_v56 }
 0xe71   :  { %4633 = vmatpush3.msra.mxu1 %v1695_v56  ;;  %v1939_v56 = vld [vmem:[#allocation7 + $0x3f0] sm:$0xff] }
 0xe72   :  { %4634 = vmatprep.subr.mxu1 %v1694_v58 }
 0xe73   :  { %4635 = vmatpush3.msra.mxu1 %v1694_v58  ;;  %v1938_v58 = vld [vmem:[#allocation7 + $0x3e8] sm:$0xff] }
 0xe74   :  { %4636 = vmatprep.subr.mxu1 %v1693_v63 }
 0xe75   :  { %4637 = vmatpush3.msra.mxu1 %v1693_v63  ;;  %v1937_v63 = vld [vmem:[#allocation7 + $0x3e0] sm:$0xff] }
 0xe76   :  { %4638 = vmatprep.subr.mxu1 %v1692_v55 }
 0xe77   :  { %4639 = vmatpush3.msra.mxu1 %v1692_v55  ;;  %v1936_v55 = vld [vmem:[#allocation7 + $0x3d8] sm:$0xff] }
 0xef2   :  { %v1669_v29 = vpop.xlane.xlu0 %1668 }
 0xef3   :  { %v1672_v8 = vmul.f32 0.03125, %v1669_v29 }
 0xef5   :  { %v1674_v62 = vadd.f32 1e-05, %v1672_v8 }
 0xef6   :  { %v1671_v9 = vpop.xlane.xlu0 %1670 }
 0xef7   :  { %5126 = vrsqrt.f32 %v1674_v62  ;;  %v1673_v10 = vmul.f32 0.03125, %v1671_v9 }
 0xef9   :  { %v1675_v11 = vadd.f32 1e-05, %v1673_v10  ;;  %v3964_v10 = vld [vmem:[#allocation7 + $0x38b] ss:$0 sm:$0xff] }
 0xefb   :  { %5128 = vrsqrt.f32 %v1675_v11 }
 0xf04   :  { %v5127_v12 = vpop.eup %5126 }
 0xf05   :  { %v1678_v14 = vmul.f32 %v5127_v12, %v5828_v43  ;;  %v1942_v43 = vld [vmem:[#allocation7 + $0x408] sm:$0xff] }
 0xf06   :  { %4678 = vmatprep.subr.mxu1 %v1942_v43 }
 0xf07   :  { %v1684_v26 = vmul.f32 %v3960_v13, %v1678_v14 }
 0xf08   :  { %v5129_v25 = vpop.eup %5128 }
 0xf09   :  { %v1679_v31 = vmul.f32 %v5129_v25, %v5833_v57  ;;  %v1690_v17 = vadd.f32 %v3961_v15, %v1684_v26  ;;  %v1940_v57 = vld [vmem:[#allocation7 + $0x3f8] sm:$0xff] }
 0xf0b   :  { %v1685_v18 = vmul.f32 %v3960_v13, %v1679_v31  ;;  %4640 = vmatprep.mubr.f32.mxu1 %v1690_v17 }
 0xf0d   :  { %v1691_v19 = vadd.f32 %v3961_v15, %v1685_v18  ;;  %v3965_v15 = vld [vmem:[#allocation7 + $0x38c] ss:$0 sm:$0xff] }
 0xf0f   :  { %4641 = vmatmul.mubr.f32.vlgmr.msra.gmra.mxu1 %v1691_v19 }
 0xf10   :  { %4679 = vmatpush3.msra.mxu1 %v1942_v43 }
 0xf11   :  { %4680 = vmatprep.subr.mxu1 %v1941_v60 }
 0xf12   :  { %4681 = vmatpush3.msra.mxu1 %v1941_v60  ;;  %v5211_v60 = vld [vmem:[#allocation9 + $0x8] sm:$0xff] }
 0xf13   :  { %4682 = vmatprep.subr.mxu1 %v1940_v57 }
 0xf14   :  { %4683 = vmatpush3.msra.mxu1 %v1940_v57 }
 0xf15   :  { %4684 = vmatprep.subr.mxu1 %v1939_v56 }
 0xf16   :  { %4685 = vmatpush3.msra.mxu1 %v1939_v56  ;;  %v5213_v56 = vld [vmem:[#allocation9 + $0x10] sm:$0xff] }
 0xf17   :  { %4686 = vmatprep.subr.mxu1 %v1938_v58 }
 0xf18   :  { %4687 = vmatpush3.msra.mxu1 %v1938_v58 }
 0xf19   :  { %4688 = vmatprep.subr.mxu1 %v1937_v63 }
 0xf1a   :  { %4689 = vmatpush3.msra.mxu1 %v1937_v63 }
 0xf1b   :  { %4690 = vmatprep.subr.mxu1 %v1936_v55 }
 0xf1c   :  { %4691 = vmatpush3.msra.mxu1 %v1936_v55  ;;  %v5214_v55 = vld [vmem:[#allocation9 + $0x18] sm:$0xff] }
 0xf1d   :  { %4692 = vmatprep.subr.mxu1 %v1935_v52 }
 0xf1e   :  { %4693 = vmatpush3.msra.mxu1 %v1935_v52 }
 0xf1f   :  { %4694 = vmatprep.subr.mxu1 %v1934_v61 }
 0xf20   :  { %4695 = vmatpush3.msra.mxu1 %v1934_v61 }
 0xf21   :  { %4696 = vmatprep.subr.mxu1 %v1933_v0 }
 0xf22   :  { %4697 = vmatpush3.msra.mxu1 %v1933_v0 }
 0xf23   :  { %4698 = vmatprep.subr.mxu1 %v1932_v49 }
 0xf24   :  { %4699 = vmatpush3.msra.mxu1 %v1932_v49 }
 0xf25   :  { %4700 = vmatprep.subr.mxu1 %v1931_v1 }
 0xf26   :  { %4701 = vmatpush3.msra.mxu1 %v1931_v1 }
 0xf27   :  { %4702 = vmatprep.subr.mxu1 %v1930_v2 }
 0xf28   :  { %4703 = vmatpush3.msra.mxu1 %v1930_v2  ;;  %v5215_v2 = vld [vmem:[#allocation9 + $0x20] sm:$0xff] }
 0xf29   :  { %4704 = vmatprep.subr.mxu1 %v1929_v3 }
 0xf2a   :  { %4705 = vmatpush3.msra.mxu1 %v1929_v3 }
 0xf2b   :  { %4706 = vmatprep.subr.mxu1 %v1928_v4 }
 0xf2c   :  { %4707 = vmatpush3.msra.mxu1 %v1928_v4  ;;  %v5216_v4 = vld [vmem:[#allocation9 + $0x28] sm:$0xff] }
 0xf2d   :  { %4708 = vmatprep.subr.mxu1 %v1927_v5 }
 0xf2e   :  { %4709 = vmatpush3.msra.mxu1 %v1927_v5 }
 0xfcf   :  { %v4642_v27 = vpop.f32.mrf.mxu1 }
 0xfd0   :  { %v1785_v28 = vadd.f32 %v4642_v27, %v3962_v24 }
 0xfd1   :  { %v1779_v30 = vpop.f32.mrf.mxu1 }
 0xfd2   :  { %v1780_v32 = vadd.f32 %v3962_v24, %v1779_v30  ;;  %v1789_v34 = vmax.f32 %v1785_v28, 0.0 }
 0xfd4   :  { %v1788_v33 = vmax.f32 %v1780_v32, 0.0 }
 0xfd6   :  { %4675 = vmatprep.mubr.f32.mxu0 %v1788_v33 }
 0xfd7   :  { %4676 = vmatmul.mubr.f32.vlgmr.msra.gmra.mxu0 %v1789_v34 }
0x1097   :  { %v4677_v38 = vpop.f32.mrf.mxu0 }
0x1098   :  { %v1883_v39 = vadd.f32 %v4677_v38, %v3963_v36 }
0x1099   :  { %v1877_v40 = vpop.f32.mrf.mxu0 }
0x109a   :  { %v1878_v35 = vadd.f32 %v3963_v36, %v1877_v40  ;;  %v1887_v42 = vadd.f32 %v1883_v39, %v1691_v19 }
0x109c   :  { %1892 = vadd.xlane.f32.xlu0 %v1887_v42  ;;  %v1886_v37 = vadd.f32 %v1878_v35, %v1690_v17  ;;  %v3966_v17 = vld [vmem:[#allocation7 + $0x710] ss:$0 sm:$0xff] }
0x109e   :  { %1890 = vadd.xlane.f32.xlu1 %v1886_v37 }
0x1125   :  { %v1893_v44 = vpop.xlane.xlu0 %1892 }
0x1126   :  { %v1895_v45 = vmul.f32 0.03125, %v1893_v44 }
0x1127   :  { %v1891_v46 = vpop.xlane.xlu1 %1890 }
0x1128   :  { %v1897_v47 = vsub.f32 %v1887_v42, %v1895_v45  ;;  %v1894_v48 = vmul.f32 0.03125, %v1891_v46  ;;  %v5212_v46 = vld [vmem:[#allocation9] sm:$0xff] }
0x112a   :  { %v1899_v16 = vmul.f32 %v5839_v41, %v1897_v47  ;;  %v1896_v50 = vsub.f32 %v1886_v37, %v1894_v48 }
0x112c   :  { %v1901_v51 = vmul.f32 %v1899_v16, %v1899_v16  ;;  %v1898_v53 = vmul.f32 %v5839_v41, %v1896_v50 }
0x112e   :  { %1904 = vadd.xlane.f32.xlu0 %v1901_v51  ;;  %v1900_v54 = vmul.f32 %v1898_v53, %v1898_v53 }
0x1130   :  { %1902 = vadd.xlane.f32.xlu1 %v1900_v54 }
0x11b7   :  { %v1905_v6 = vpop.xlane.xlu0 %1904 }
0x11b8   :  { %v1907_v7 = vmul.f32 0.03125, %v1905_v6 }
0x11b9   :  { %v1903_v59 = vpop.xlane.xlu1 %1902 }
0x11ba   :  { %v1909_v29 = vadd.f32 1e-05, %v1907_v7  ;;  %v1906_v8 = vmul.f32 0.03125, %v1903_v59 }
0x11bc   :  { %5130 = vrsqrt.f32 %v1909_v29  ;;  %v1908_v62 = vadd.f32 1e-05, %v1906_v8  ;;  %v5217_v29 = vld [vmem:[#allocation9 + $0x38] sm:$0xff] }
0x11be   :  { %5132 = vrsqrt.f32 %v1908_v62 }
0x11c9   :  { %v5131_v9 = vpop.eup %5130 }
0x11ca   :  { %v1913_v11 = vmul.f32 %v5131_v9, %v1899_v16 }
0x11cb   :  { %v5133_v12 = vpop.eup %5132 }
0x11cc   :  { %v1912_v13 = vmul.f32 %v5133_v12, %v1898_v53  ;;  %v1919_v14 = vmul.f32 %v3964_v10, %v1913_v11  ;;  %v5218_v12 = vld [vmem:[#allocation9 + $0x30] sm:$0xff] }
0x11ce   :  { %v1918_v26 = vmul.f32 %v3964_v10, %v1912_v13  ;;  %v5845_v31 = vadd.f32 %v3965_v15, %v1919_v14 }
0x11d0   :  { %v5843_v25 = vadd.f32 %v3965_v15, %v1918_v26 }
0x11d2   :  { %4710 = vmatprep.mubr.f32.mxu1 %v5843_v25 }
0x11d3   :  { %4711 = vmatmul.mubr.f32.vlgmr.msra.gmra.mxu1 %v5845_v31 }
0x1293   :  { %v4712_v18 = vpop.f32.mrf.mxu1 }
0x1294   :  { %v5849_v19 = vadd.f32 %v4712_v18, %v3966_v17 }
0x1295   :  { %v2014_v20 = vpop.f32.mrf.mxu1 }
0x1296   :  { %v5851_v21 = vadd.f32 %v3966_v17, %v2014_v20  ;;  %2035 = vrot.lane.b32.xlu1 %v5849_v19, %s5388_s6 }
0x1298   :  { %2033 = vrot.lane.b32.xlu0 %v5851_v21, %s5388_s6  ;;  %4729 = vmatprep.mubr.msk.f32.mxu0 %vm362_vm1, %v5851_v21 }
0x129a   :  { %2031 = vrot.lane.b32.xlu1 %v5849_v19, %s5387_s4 }
0x129c   :  { %2027 = vrot.lane.b32.xlu0 %v5849_v19, %s5389_s10 }
0x129e   :  { %2029 = vrot.lane.b32.xlu1 %v5851_v21, %s5387_s4 }
0x12a2   :  { %2025 = vrot.lane.b32.xlu1 %v5851_v21, %s5389_s10 }
0x1308   :  { %v5867_v22 = vpop.permute.xlu1 %2035 }
0x1309   :  { %2051 = vrot.lane.b32.xlu0 %v5867_v22, %s5390_s17 }
0x130a   :  { %v5871_v23 = vpop.permute.xlu0 %2033 }
0x130b   :  { %2049 = vrot.lane.b32.xlu1 %v5871_v23, %s5390_s17 }
0x130c   :  { %v5875_v24 = vpop.permute.xlu1 %2031 }
0x130d   :  { %2047 = vrot.lane.b32.xlu0 %v5875_v24, %s5390_s17 }
0x130e   :  { %v5879_v27 = vpop.permute.xlu0 %2027 }
0x1310   :  { %v5881_v28 = vpop.permute.xlu1 %2029 }
0x1311   :  { %2045 = vrot.lane.b32.xlu1 %v5881_v28, %s5390_s17  ;;  %2043 = vrot.lane.b32.xlu0 %v5879_v27, %s5390_s17 }
0x1314   :  { %v5887_v30 = vpop.permute.xlu1 %2025 }
0x1315   :  { %2041 = vrot.lane.b32.xlu1 %v5887_v30, %s5390_s17  ;;  %2039 = vrot.lane.b32.xlu0 %v5849_v19, %s5390_s17 }
0x1319   :  { %2037 = vrot.lane.b32.xlu1 %v5851_v21, %s5390_s17 }
0x137b   :  { %v2052_v32 = vpop.permute.xlu0 %2051 }
0x137c   :  { %4713 = vmatprep.subr.msk.mxu0 %vm362_vm1, %v2052_v32 }
0x137d   :  { %v2050_v33 = vpop.permute.xlu1 %2049  ;;  %4714 = vmatpush3.xpose.msk.msra.mxu0 %vm362_vm1, %v2052_v32 }
0x137e   :  { %4715 = vmatprep.subr.msk.mxu0 %vm362_vm1, %v2050_v33 }
0x137f   :  { %v2048_v34 = vpop.permute.xlu0 %2047 }
0x1381   :  { %4716 = vmatpush3.xpose.msk.msra.mxu0 %vm362_vm1, %v2050_v33 }
0x1382   :  { %4717 = vmatprep.subr.msk.mxu0 %vm362_vm1, %v2048_v34 }
0x1383   :  { %v2046_v36 = vpop.permute.xlu1 %2045  ;;  %v2044_v38 = vpop.permute.xlu0 %2043 }
0x1385   :  { %4718 = vmatpush3.xpose.msk.msra.mxu0 %vm362_vm1, %v2048_v34 }
0x1386   :  { %4719 = vmatprep.subr.msk.mxu0 %vm362_vm1, %v2046_v36 }
0x1387   :  { %v2042_v39 = vpop.permute.xlu1 %2041  ;;  %v2040_v40 = vpop.permute.xlu0 %2039 }
0x1389   :  { %4720 = vmatpush3.xpose.msk.msra.mxu0 %vm362_vm1, %v2046_v36 }
0x138a   :  { %4721 = vmatprep.subr.msk.mxu0 %vm362_vm1, %v2044_v38 }
0x138b   :  { %v2038_v35 = vpop.permute.xlu1 %2037 }
0x138d   :  { %4722 = vmatpush3.xpose.msk.msra.mxu0 %vm362_vm1, %v2044_v38 }
0x138e   :  { %4723 = vmatprep.subr.msk.mxu0 %vm362_vm1, %v2042_v39 }
0x1391   :  { %4724 = vmatpush3.xpose.msk.msra.mxu0 %vm362_vm1, %v2042_v39 }
0x1392   :  { %4725 = vmatprep.subr.msk.mxu0 %vm362_vm1, %v2040_v40 }
0x1395   :  { %4726 = vmatpush3.xpose.msk.msra.mxu0 %vm362_vm1, %v2040_v40 }
0x1396   :  { %4727 = vmatprep.subr.msk.mxu0 %vm362_vm1, %v2038_v35 }
0x1399   :  { %4728 = vmatpush3.xpose.msk.msra.mxu0 %vm362_vm1, %v2038_v35 }
0x139c   :  { %4730 = vmatmul.mubr.msk.f32.vlgmr.msra.gmra.mxu0 %vm362_vm1, %v5849_v19 }
0x139d   :  { %4732 = vmatprep.mubr.msk.f32.mxu0 %vm362_vm1, %v5887_v30 }
0x13a0   :  { %4733 = vmatmul.mubr.msk.f32.gmra.mxu0 %vm362_vm1, %v5879_v27 }
0x13a1   :  { %4735 = vmatprep.mubr.msk.f32.mxu0 %vm362_vm1, %v5881_v28 }
0x13a4   :  { %4736 = vmatmul.mubr.msk.f32.gmra.mxu0 %vm362_vm1, %v5875_v24 }
0x13a5   :  { %4738 = vmatprep.mubr.msk.f32.mxu0 %vm362_vm1, %v5871_v23 }
0x13a8   :  { %4739 = vmatmul.mubr.msk.f32.gmra.mxu0 %vm362_vm1, %v5867_v22 }
0x145c   :  { %v4731_v42 = vpop.f32.mrf.mxu0 }
0x145d   :  { %v2191_v37 = vmul.f32 0.35355338, %v4731_v42 }
0x145e   :  { %v2151_v43 = vpop.f32.mrf.mxu0 }
0x145f   :  { %v2199_v57 = vadd.f32 %v5211_v60, %v2191_v37  ;;  %v2190_v44 = vmul.f32 0.35355338, %v2151_v43 }
0x1460   :  { %v4734_v45 = vpop.f32.mrf.mxu0 }
0x1461   :  { %v2198_v47 = vadd.f32 %v5212_v46, %v2190_v44  ;;  %v2209_v48 = vsel %vm516_vm2, %v2199_v57, -inf  ;;  %v2193_v50 = vmul.f32 0.35355338, %v4734_v45 }
0x1462   :  { %2210 = vmax.xlane.f32.xlu1 %v2209_v48  ;;  %v2161_v16 = vpop.f32.mrf.mxu0 }
0x1463   :  { %v2192_v51 = vmul.f32 0.35355338, %v2161_v16  ;;  %v2206_v53 = vsel %vm516_vm2, %v2198_v47, -inf  ;;  %v2201_v52 = vadd.f32 %v5214_v55, %v2193_v50 }
0x1464   :  { %2207 = vmax.xlane.f32.xlu0 %v2206_v53  ;;  %v4737_v54 = vpop.f32.mrf.mxu0 }
0x1465   :  { %v2200_v58 = vadd.f32 %v5213_v56, %v2192_v51  ;;  %v2195_v61 = vmul.f32 0.35355338, %v4737_v54  ;;  %v2215_v7 = vsel %vm516_vm2, %v2201_v52, -inf }
0x1466   :  { %v2171_v63 = vpop.f32.mrf.mxu0 }
0x1467   :  { %v2194_v0 = vmul.f32 0.35355338, %v2171_v63  ;;  %v2212_v49 = vsel %vm516_vm2, %v2200_v58, -inf  ;;  %v2203_v5 = vadd.f32 %v5216_v4, %v2195_v61 }
0x1468   :  { %2213 = vmax.xlane.f32.xlu0 %v2212_v49  ;;  %v4740_v1 = vpop.f32.mrf.mxu0 }
0x1469   :  { %v2202_v3 = vadd.f32 %v5215_v2, %v2194_v0  ;;  %v2197_v6 = vmul.f32 0.35355338, %v4740_v1  ;;  %v2221_v62 = vsel %vm516_vm2, %v2203_v5, -inf }
0x146a   :  { %v2181_v10 = vpop.f32.mrf.mxu0 }
0x146b   :  { %v2218_v59 = vsel %vm516_vm2, %v2202_v3, -inf  ;;  %v2205_v8 = vadd.f32 %v5217_v29, %v2197_v6  ;;  %v2196_v11 = vmul.f32 0.35355338, %v2181_v10 }
0x146c   :  { %2216 = vmax.xlane.f32.xlu0 %v2215_v7  ;;  %2219 = vmax.xlane.f32.xlu1 %v2218_v59 }
0x146d   :  { %v2227_v9 = vsel %vm516_vm2, %v2205_v8, -inf  ;;  %v5940_v13 = vadd.f32 %v5218_v12, %v2196_v11 }
0x146f   :  { %v2224_v14 = vsel %vm516_vm2, %v5940_v13, -inf }
0x1470   :  { %2222 = vmax.xlane.f32.xlu0 %v2221_v62 }
0x1474   :  { %2228 = vmax.xlane.f32.xlu0 %v2227_v9 }
0x147d   :  { %2308 = vrot.lane.b32.xlu1 %v5867_v22, %s5391_s18 }
0x1481   :  { %2304 = vrot.lane.b32.xlu1 %v5875_v24, %s5391_s18 }
0x148a   :  { %2306 = vrot.lane.b32.xlu0 %v5871_v23, %s5391_s18 }
0x148e   :  { %2300 = vrot.lane.b32.xlu0 %v5879_v27, %s5391_s18 }
0x14a5   :  { %2225 = vmax.xlane.f32.xlu1 %v2224_v14 }
0x14b6   :  { %2302 = vrot.lane.b32.xlu1 %v5881_v28, %s5391_s18 }
0x14ba   :  { %2298 = vrot.lane.b32.xlu1 %v5887_v30, %s5391_s18 }
0x14eb   :  { %v2211_v15 = vpop.xlane.xlu1 %2210 }
0x14ec   :  { %v2231_v26 = vsub.f32 %v2199_v57, %v2211_v15 }
0x14ed   :  { %v2208_v17 = vpop.xlane.xlu0 %2207 }
0x14ee   :  { %v2240_v18 = vmul.f32 1.442695, %v2231_v26  ;;  %v2230_v20 = vsub.f32 %v2198_v47, %v2208_v17 }
0x14f0   :  { %5134 = vpow2.f32 %v2240_v18  ;;  %v2238_v22 = vmul.f32 1.442695, %v2230_v20 }
0x14f1   :  { %v2214_v23 = vpop.xlane.xlu0 %2213 }
0x14f2   :  { %5136 = vpow2.f32 %v2238_v22  ;;  %v2232_v24 = vsub.f32 %v2200_v58, %v2214_v23 }
0x14f4   :  { %v2242_v27 = vmul.f32 1.442695, %v2232_v24 }
0x14f5   :  { %v2217_v32 = vpop.xlane.xlu0 %2216  ;;  %v2220_v33 = vpop.xlane.xlu1 %2219 }
0x14f6   :  { %5138 = vpow2.f32 %v2242_v27  ;;  %v2233_v34 = vsub.f32 %v2201_v52, %v2217_v32  ;;  %v2234_v36 = vsub.f32 %v2202_v3, %v2220_v33 }
0x14f8   :  { %v2244_v28 = vmul.f32 1.442695, %v2233_v34  ;;  %v2246_v38 = vmul.f32 1.442695, %v2234_v36  ;;  %v2480_v34 = vld [vmem:[#allocation7 + $0x428] sm:$0xff]  ;;  %v2479_v36 = vld [vmem:[#allocation7 + $0x420] sm:$0xff] }
0x14f9   :  { %v2223_v39 = vpop.xlane.xlu0 %2222  ;;  %v2309_v30 = vpop.permute.xlu1 %2308  ;;  %4769 = vmatprep.subr.mxu0 %v2480_v34 }
0x14fa   :  { %5140 = vpow2.f32 %v2244_v28  ;;  %v2235_v40 = vsub.f32 %v2203_v5, %v2223_v39  ;;  %4741 = vmatprep.subr.mxu1 %v2309_v30  ;;  %4770 = vmatpush3.msra.mxu0 %v2480_v34  ;;  %v2478_v28 = vld [vmem:[#allocation7 + $0x418] sm:$0xff]  ;;  %v2477_v39 = vld [vmem:[#allocation7 + $0x410] sm:$0xff] }
0x14fb   :  { %5142 = vpow2.f32 %v2246_v38  ;;  %4742 = vmatpush3.msra.mxu1 %v2309_v30  ;;  %4771 = vmatprep.subr.mxu0 %v2479_v36  ;;  %v3997_v34 = vld [vmem:[#allocation7 + $0x713] ss:$0 sm:$0xff] }
0x14fc   :  { %v2248_v35 = vmul.f32 1.442695, %v2235_v40  ;;  %4772 = vmatpush3.msra.mxu0 %v2479_v36 }
0x14fd   :  { %v5948_v42 = vpop.eup %5134  ;;  %v2229_v37 = vpop.xlane.xlu0 %2228  ;;  %4773 = vmatprep.subr.mxu0 %v2478_v28 }
0x14fe   :  { %5144 = vpow2.f32 %v2248_v35  ;;  %v2237_v43 = vsub.f32 %v2205_v8, %v2229_v37  ;;  %v2257_v60 = vsel %vm516_vm2, %v5948_v42, 0.0  ;;  %v2305_v48 = vpop.permute.xlu1 %2304  ;;  %4774 = vmatpush3.msra.mxu0 %v2478_v28 }
0x14ff   :  { %v5137_v57 = vpop.eup %5136  ;;  %2258 = vadd.xlane.f32.xlu0 %v2257_v60  ;;  %4775 = vmatprep.subr.mxu0 %v2477_v39 }
0x1500   :  { %v2252_v44 = vmul.f32 1.442695, %v2237_v43  ;;  %v2254_v45 = vsel %vm516_vm2, %v5137_v57, 0.0  ;;  %4776 = vmatpush3.msra.mxu0 %v2477_v39 }
0x1501   :  { %v2307_v46 = vpop.permute.xlu0 %2306  ;;  %2255 = vadd.xlane.f32.xlu1 %v2254_v45 }
0x1502   :  { %5146 = vpow2.f32 %v2252_v44  ;;  %4743 = vmatprep.subr.mxu1 %v2307_v46 }
0x1503   :  { %v5953_v47 = vpop.eup %5138  ;;  %4744 = vmatpush3.msra.mxu1 %v2307_v46 }
0x1504   :  { %4745 = vmatprep.subr.mxu1 %v2305_v48  ;;  %v2260_v16 = vsel %vm516_vm2, %v5953_v47, 0.0 }
0x1505   :  { %4746 = vmatpush3.msra.mxu1 %v2305_v48  ;;  %2261 = vadd.xlane.f32.xlu1 %v2260_v16  ;;  %v2301_v1 = vpop.permute.xlu0 %2300 }
0x1507   :  { %v5957_v50 = vpop.eup %5140 }
0x1508   :  { %v5959_v51 = vpop.eup %5142  ;;  %v2263_v53 = vsel %vm516_vm2, %v5957_v50, 0.0 }
0x1509   :  { %2264 = vadd.xlane.f32.xlu0 %v2263_v53  ;;  %v2266_v54 = vsel %vm516_vm2, %v5959_v51, 0.0 }
0x150a   :  { %2267 = vadd.xlane.f32.xlu1 %v2266_v54 }
0x150b   :  { %v5965_v56 = vpop.eup %5144 }
0x150c   :  { %v2269_v58 = vsel %vm516_vm2, %v5965_v56, 0.0 }
0x150d   :  { %2270 = vadd.xlane.f32.xlu0 %v2269_v58  ;;  %v5219_v58 = vld [vmem:[#allocation4] sm:$0xff] }
0x150f   :  { %v5969_v63 = vpop.eup %5146 }
0x1510   :  { %v2275_v55 = vsel %vm516_vm2, %v5969_v63, 0.0 }
0x1511   :  { %2276 = vadd.xlane.f32.xlu0 %v2275_v55  ;;  %v2705_v55 = vld [vmem:[#allocation7 + $0x520] sm:$0xff] }
0x1527   :  { %2296 = vrot.lane.b32.xlu0 %v5849_v19, %s5391_s18 }
0x152e   :  { %v2226_v52 = vpop.xlane.xlu1 %2225 }
0x152f   :  { %v2236_v61 = vsub.f32 %v5940_v13, %v2226_v52  ;;  %v2704_v52 = vld [vmem:[#allocation7 + $0x518] sm:$0xff] }
0x1531   :  { %v2250_v0 = vmul.f32 1.442695, %v2236_v61  ;;  %v2703_v61 = vld [vmem:[#allocation7 + $0x510] sm:$0xff] }
0x1532   :  { %v2303_v49 = vpop.permute.xlu1 %2302 }
0x1533   :  { %5148 = vpow2.f32 %v2250_v0  ;;  %4747 = vmatprep.subr.mxu1 %v2303_v49  ;;  %v5220_v0 = vld [vmem:[#allocation4 + $0x8] sm:$0xff] }
0x1534   :  { %4748 = vmatpush3.msra.mxu1 %v2303_v49  ;;  %v3991_v49 = vld [vmem:[#allocation7 + $0x711] ss:$0 sm:$0xff] }
0x1535   :  { %4749 = vmatprep.subr.mxu1 %v2301_v1 }
0x1536   :  { %4750 = vmatpush3.msra.mxu1 %v2301_v1  ;;  %v2299_v2 = vpop.permute.xlu1 %2298 }
0x1537   :  { %4751 = vmatprep.subr.mxu1 %v2299_v2 }
0x1538   :  { %4752 = vmatpush3.msra.mxu1 %v2299_v2 }
0x1540   :  { %v5149_v3 = vpop.eup %5148 }
0x1541   :  { %v2272_v4 = vsel %vm516_vm2, %v5149_v3, 0.0 }
0x1542   :  { %2273 = vadd.xlane.f32.xlu1 %v2272_v4 }
0x1553   :  { %2294 = vrot.lane.b32.xlu1 %v5851_v21, %s5391_s18 }
0x1588   :  { %v2259_v5 = vpop.xlane.xlu0 %2258 }
0x158a   :  { %v2256_v19 = vpop.xlane.xlu1 %2255 }
0x158b   :  { %5150 = vrcp.f32 %v2256_v19 }
0x158c   :  { %5152 = vrcp.f32 %v2259_v5 }
0x158e   :  { %v2262_v9 = vpop.xlane.xlu1 %2261 }
0x158f   :  { %5154 = vrcp.f32 %v2262_v9 }
0x1592   :  { %v2265_v6 = vpop.xlane.xlu0 %2264 }
0x1593   :  { %v2268_v10 = vpop.xlane.xlu1 %2267  ;;  %5156 = vrcp.f32 %v2265_v6  ;;  %v2622_v6 = vld [vmem:[#allocation7 + $0x508] sm:$0xff] }
0x1594   :  { %5158 = vrcp.f32 %v2268_v10 }
0x1596   :  { %v2271_v7 = vpop.xlane.xlu0 %2270 }
0x1597   :  { %5160 = vrcp.f32 %v2271_v7  ;;  %v2621_v7 = vld [vmem:[#allocation7 + $0x500] sm:$0xff] }
0x1598   :  { %v5151_v59 = vpop.eup %5150 }
0x1599   :  { %v2286_v29 = vmul.f32 %v5151_v59, %v5137_v57  ;;  %v5153_v11 = vpop.eup %5152 }
0x159a   :  { %v2277_v8 = vpop.xlane.xlu0 %2276  ;;  %v2287_v14 = vmul.f32 %v5153_v11, %v5948_v42 }
0x159b   :  { %4757 = vmatprep.mubr.msk.f32.mxu1 %vm516_vm2, %v2286_v29  ;;  %5162 = vrcp.f32 %v2277_v8 }
0x159c   :  { %v5155_v12 = vpop.eup %5154 }
0x159d   :  { %v2288_v26 = vmul.f32 %v5155_v12, %v5953_v47  ;;  %v2620_v12 = vld [vmem:[#allocation7 + $0x4f8] sm:$0xff] }
0x159e   :  { %v2297_v62 = vpop.permute.xlu0 %2296 }
0x159f   :  { %4753 = vmatprep.subr.mxu1 %v2297_v62 }
0x15a0   :  { %4754 = vmatpush3.msra.mxu1 %v2297_v62  ;;  %v5157_v15 = vpop.eup %5156 }
0x15a1   :  { %v5159_v17 = vpop.eup %5158  ;;  %v2289_v18 = vmul.f32 %v5157_v15, %v5957_v50  ;;  %v2617_v15 = vld [vmem:[#allocation7 + $0x4e0] sm:$0xff] }
0x15a2   :  { %v2290_v22 = vmul.f32 %v5159_v17, %v5959_v51  ;;  %v2614_v17 = vld [vmem:[#allocation7 + $0x4c8] sm:$0xff] }
0x15a4   :  { %v5161_v20 = vpop.eup %5160 }
0x15a5   :  { %v2291_v24 = vmul.f32 %v5161_v20, %v5965_v56  ;;  %v2612_v20 = vld [vmem:[#allocation7 + $0x4b8] sm:$0xff] }
0x15a8   :  { %v5163_v23 = vpop.eup %5162 }
0x15a9   :  { %v2293_v33 = vmul.f32 %v5163_v23, %v5969_v63  ;;  %v2706_v63 = vld [vmem:[#allocation7 + $0x528] sm:$0xff] }
0x15aa   :  { %4815 = vmatprep.subr.mxu0 %v2706_v63  ;;  %v2610_v23 = vld [vmem:[#allocation7 + $0x4a8] sm:$0xff] }
0x15cb   :  { %v2274_v21 = vpop.xlane.xlu1 %2273 }
0x15cc   :  { %5164 = vrcp.f32 %v2274_v21 }
0x15cf   :  { %v2295_v13 = vpop.permute.xlu1 %2294 }
0x15d0   :  { %4755 = vmatprep.subr.mxu1 %v2295_v13 }
0x15d1   :  { %4756 = vmatpush3.msra.mxu1 %v2295_v13  ;;  %v2619_v13 = vld [vmem:[#allocation7 + $0x4f0] sm:$0xff] }
0x15d2   :  { %4758 = vmatmul.mubr.msk.f32.vlgmr.msra.gmra.mxu1 %vm516_vm2, %v2287_v14  ;;  %4780 = vmatprep.subr.mxu1 %v2622_v6  ;;  %v2618_v14 = vld [vmem:[#allocation7 + $0x4e8] sm:$0xff] }
0x15d3   :  { %4760 = vmatprep.mubr.msk.f32.mxu1 %vm516_vm2, %v2288_v26  ;;  %4781 = vmatpush3.msra.mxu1 %v2622_v6  ;;  %v2615_v26 = vld [vmem:[#allocation7 + $0x4d0] sm:$0xff] }
0x15d4   :  { %4782 = vmatprep.subr.mxu1 %v2621_v7 }
0x15d5   :  { %4783 = vmatpush3.msra.mxu1 %v2621_v7 }
0x15d6   :  { %4761 = vmatmul.mubr.msk.f32.gmra.mxu1 %vm516_vm2, %v2289_v18  ;;  %4784 = vmatprep.subr.mxu1 %v2620_v12  ;;  %v2613_v18 = vld [vmem:[#allocation7 + $0x4c0] sm:$0xff] }
0x15d7   :  { %4763 = vmatprep.mubr.msk.f32.mxu1 %vm516_vm2, %v2290_v22  ;;  %4785 = vmatpush3.msra.mxu1 %v2620_v12  ;;  %v2611_v22 = vld [vmem:[#allocation7 + $0x4b0] sm:$0xff] }
0x15d8   :  { %4786 = vmatprep.subr.mxu1 %v2619_v13 }
0x15d9   :  { %v5165_v27 = vpop.eup %5164  ;;  %4787 = vmatpush3.msra.mxu1 %v2619_v13 }
0x15da   :  { %4764 = vmatmul.mubr.msk.f32.gmra.mxu1 %vm516_vm2, %v2291_v24  ;;  %v2292_v32 = vmul.f32 %v5165_v27, %v5149_v3  ;;  %4788 = vmatprep.subr.mxu1 %v2618_v14  ;;  %v2609_v24 = vld [vmem:[#allocation7 + $0x4a0] sm:$0xff]  ;;  %v2608_v27 = vld [vmem:[#allocation7 + $0x498] sm:$0xff] }
0x15db   :  { %4789 = vmatpush3.msra.mxu1 %v2618_v14 }
0x15dc   :  { %4766 = vmatprep.mubr.msk.f32.mxu1 %vm516_vm2, %v2292_v32  ;;  %4790 = vmatprep.subr.mxu1 %v2617_v15  ;;  %v2607_v32 = vld [vmem:[#allocation7 + $0x490] sm:$0xff] }
0x15dd   :  { %4791 = vmatpush3.msra.mxu1 %v2617_v15  ;;  %v5223_v15 = vld [vmem:[#allocation10 + $0x10] sm:$0xff] }
0x15de   :  { %4767 = vmatmul.mubr.msk.f32.gmra.mxu1 %vm516_vm2, %v2293_v33 }
0x1692   :  { %v4759_v38 = vpop.f32.mrf.mxu1 }
0x1694   :  { %v2408_v30 = vpop.f32.mrf.mxu1 }
0x1696   :  { %v4762_v40 = vpop.f32.mrf.mxu1 }
0x1697   :  { %2451 = vrot.lane.b32.xlu1 %v4762_v40, %s5381_s11 }
0x1698   :  { %v2418_v35 = vpop.f32.mrf.mxu1 }
0x1699   :  { %2449 = vrot.lane.b32.xlu0 %v2418_v35, %s5381_s11 }
0x169a   :  { %v4765_v42 = vpop.f32.mrf.mxu1 }
0x169b   :  { %2459 = vrot.lane.b32.xlu1 %v4765_v42, %s5392_s19 }
0x169c   :  { %v2428_v37 = vpop.f32.mrf.mxu1 }
0x169d   :  { %2457 = vrot.lane.b32.xlu0 %v2428_v37, %s5392_s19 }
0x169e   :  { %v4768_v43 = vpop.f32.mrf.mxu1 }
0x169f   :  { %2467 = vrot.lane.b32.xlu1 %v4768_v43, %s5393_s20 }
0x16a0   :  { %v2438_v60 = vpop.f32.mrf.mxu1 }
0x16a1   :  { %2465 = vrot.lane.b32.xlu0 %v2438_v60, %s5393_s20  ;;  %v3994_v60 = vld [vmem:[#allocation7 + $0x717] ss:$0 sm:$0xff] }
0x1709   :  { %v2452_v57 = vpop.permute.xlu1 %2451 }
0x170a   :  { %v2472_v16 = vsel %vm362_vm1, %v4759_v38, %v2452_v57 }
0x170b   :  { %v2450_v44 = vpop.permute.xlu0 %2449 }
0x170c   :  { %v2471_v47 = vsel %vm362_vm1, %v2408_v30, %v2450_v44 }
0x170d   :  { %v2460_v45 = vpop.permute.xlu1 %2459 }
0x170e   :  { %v2474_v53 = vsel %vm134_vm0, %v2472_v16, %v2460_v45  ;;  %v3995_v45 = vld [vmem:[#allocation7 + $0x718] ss:$0 sm:$0xff] }
0x170f   :  { %v2458_v46 = vpop.permute.xlu0 %2457 }
0x1710   :  { %v2473_v50 = vsel %vm134_vm0, %v2471_v47, %v2458_v46 }
0x1711   :  { %v2468_v48 = vpop.permute.xlu1 %2467 }
0x1712   :  { %v2476_v56 = vsel %vm786_vm3, %v2474_v53, %v2468_v48 }
0x1713   :  { %v2466_v51 = vpop.permute.xlu0 %2465 }
0x1714   :  { %v2475_v54 = vsel %vm786_vm3, %v2473_v50, %v2466_v51 }
0x1715   :  { %4777 = vmatprep.mubr.msk.f32.mxu0 %vm798_vm4, %v2475_v54 }
0x1716   :  { %4778 = vmatmul.mubr.msk.f32.vlgmr.msra.gmra.mxu0 %vm798_vm4, %v2476_v56 }
0x1717   :  { %4823 = vmatprep.mubr.msk.f32.mxu0 %vm798_vm4, %v5219_v58  ;;  %4816 = vmatpush3.msra.mxu0 %v2706_v63 }
0x1718   :  { %4817 = vmatprep.subr.mxu0 %v2705_v55 }
0x1719   :  { %4818 = vmatpush3.msra.mxu0 %v2705_v55  ;;  %v3996_v55 = vld [vmem:[#allocation7 + $0x712] ss:$0 sm:$0xff] }
0x171a   :  { %4819 = vmatprep.subr.mxu0 %v2704_v52 }
0x171b   :  { %4820 = vmatpush3.msra.mxu0 %v2704_v52 }
0x171c   :  { %4821 = vmatprep.subr.mxu0 %v2703_v61 }
0x171d   :  { %4822 = vmatpush3.msra.mxu0 %v2703_v61 }
0x171e   :  { %4824 = vmatmul.mubr.msk.f32.vlgmr.msra.gmra.mxu0 %vm798_vm4, %v5220_v0 }
0x17d6   :  { %v4779_v1 = vpop.f32.mrf.mxu0 }
0x17d7   :  { %v2564_v2 = vadd.f32 %v4779_v1, %v3991_v49 }
0x17d8   :  { %v2558_v3 = vpop.f32.mrf.mxu0 }
0x17d9   :  { %v2568_v4 = vadd.f32 %v2564_v2, %v5845_v31  ;;  %v2559_v19 = vadd.f32 %v3991_v49, %v2558_v3 }
0x17db   :  { %v2567_v5 = vadd.f32 %v2559_v19, %v5843_v25  ;;  %2573 = vadd.xlane.f32.xlu1 %v2568_v4 }
0x17dd   :  { %2571 = vadd.xlane.f32.xlu0 %v2567_v5 }
0x17de   :  { %v4825_v33 = vpop.f32.mrf.mxu0 }
0x17df   :  { %v6021_v36 = vadd.f32 %v4825_v33, %v3997_v34  ;;  %v5226_v33 = vld [vmem:[#allocation10 + $0x28] sm:$0xff] }
0x17e0   :  { %v2778_v28 = vpop.f32.mrf.mxu0 }
0x17e1   :  { %v6025_v38 = vadd.f32 %v3997_v34, %v2778_v28 }
0x17ec   :  { %2813 = vrot.lane.b32.xlu1 %v6021_v36, %s5388_s6 }
0x17f0   :  { %2809 = vrot.lane.b32.xlu1 %v6021_v36, %s5387_s4 }
0x17f4   :  { %2807 = vrot.lane.b32.xlu1 %v6025_v38, %s5387_s4 }
0x17f8   :  { %2803 = vrot.lane.b32.xlu1 %v6025_v38, %s5389_s10 }
0x1864   :  { %v2574_v59 = vpop.xlane.xlu1 %2573 }
0x1865   :  { %v2576_v29 = vmul.f32 0.03125, %v2574_v59 }
0x1866   :  { %v2572_v8 = vpop.xlane.xlu0 %2571 }
0x1867   :  { %v2575_v62 = vmul.f32 0.03125, %v2572_v8  ;;  %v2578_v9 = vsub.f32 %v2568_v4, %v2576_v29  ;;  %v5221_v29 = vld [vmem:[#allocation10 + $0x8] sm:$0xff] }
0x1868   :  { %v6037_v57 = vpop.permute.xlu1 %2813 }
0x1869   :  { %v2577_v10 = vsub.f32 %v2567_v5, %v2575_v62  ;;  %v6015_v31 = vmul.f32 %v5839_v41, %v2578_v9  ;;  %4826 = vmatprep.subr.msk.mxu0 %vm362_vm1, %v6037_v57  ;;  %v5222_v9 = vld [vmem:[#allocation10] sm:$0xff] }
0x186a   :  { %4827 = vmatpush3.xpose.msk.msra.mxu0 %vm362_vm1, %v6037_v57 }
0x186b   :  { %v6012_v21 = vmul.f32 %v5839_v41, %v2577_v10  ;;  %v2582_v11 = vmul.f32 %v6015_v31, %v6015_v31  ;;  %v2616_v41 = vld [vmem:[#allocation7 + $0x4d8] sm:$0xff] }
0x186c   :  { %4792 = vmatprep.subr.mxu1 %v2616_v41  ;;  %v6048_v16 = vpop.permute.xlu1 %2809 }
0x186d   :  { %v2581_v25 = vmul.f32 %v6012_v21, %v6012_v21  ;;  %4793 = vmatpush3.msra.mxu1 %v2616_v41 }
0x186e   :  { %4794 = vmatprep.subr.mxu1 %v2615_v26 }
0x186f   :  { %2583 = vadd.xlane.f32.xlu0 %v2581_v25  ;;  %4795 = vmatpush3.msra.mxu1 %v2615_v26 }
0x1870   :  { %4796 = vmatprep.subr.mxu1 %v2614_v17  ;;  %v6058_v54 = vpop.permute.xlu1 %2807 }
0x1871   :  { %4797 = vmatpush3.msra.mxu1 %v2614_v17  ;;  %v5224_v17 = vld [vmem:[#allocation10 + $0x18] sm:$0xff] }
0x1872   :  { %4798 = vmatprep.subr.mxu1 %v2613_v18 }
0x1873   :  { %2585 = vadd.xlane.f32.xlu0 %v2582_v11  ;;  %4799 = vmatpush3.msra.mxu1 %v2613_v18 }
0x1874   :  { %4800 = vmatprep.subr.mxu1 %v2612_v20  ;;  %v6073_v63 = vpop.permute.xlu1 %2803 }
0x1875   :  { %4801 = vmatpush3.msra.mxu1 %v2612_v20 }
0x1876   :  { %4802 = vmatprep.subr.mxu1 %v2611_v22 }
0x1877   :  { %4803 = vmatpush3.msra.mxu1 %v2611_v22 }
0x1878   :  { %4804 = vmatprep.subr.mxu1 %v2610_v23 }
0x1879   :  { %4805 = vmatpush3.msra.mxu1 %v2610_v23 }
0x187a   :  { %4806 = vmatprep.subr.mxu1 %v2609_v24 }
0x187b   :  { %4807 = vmatpush3.msra.mxu1 %v2609_v24 }
0x187c   :  { %4808 = vmatprep.subr.mxu1 %v2608_v27 }
0x187d   :  { %4809 = vmatpush3.msra.mxu1 %v2608_v27  ;;  %v5225_v27 = vld [vmem:[#allocation10 + $0x20] sm:$0xff] }
0x187e   :  { %4810 = vmatprep.subr.mxu1 %v2607_v32 }
0x187f   :  { %4811 = vmatpush3.msra.mxu1 %v2607_v32 }
0x1889   :  { %2811 = vrot.lane.b32.xlu0 %v6025_v38, %s5388_s6 }
0x188d   :  { %2805 = vrot.lane.b32.xlu0 %v6021_v36, %s5389_s10 }
0x18f8   :  { %v2584_v39 = vpop.xlane.xlu0 %2583 }
0x18f9   :  { %v2587_v30 = vmul.f32 0.03125, %v2584_v39 }
0x18fb   :  { %v2589_v40 = vadd.f32 1e-05, %v2587_v30 }
0x18fc   :  { %v2586_v35 = vpop.xlane.xlu0 %2585 }
0x18fd   :  { %5166 = vrsqrt.f32 %v2589_v40  ;;  %v2588_v42 = vmul.f32 0.03125, %v2586_v35  ;;  %v5227_v40 = vld [vmem:[#allocation10 + $0x38] sm:$0xff] }
0x18ff   :  { %v2590_v37 = vadd.f32 1e-05, %v2588_v42 }
0x1900   :  { %v6044_v46 = vpop.permute.xlu0 %2811 }
0x1901   :  { %5168 = vrsqrt.f32 %v2590_v37  ;;  %4828 = vmatprep.subr.msk.mxu0 %vm362_vm1, %v6044_v46 }
0x1902   :  { %4829 = vmatpush3.xpose.msk.msra.mxu0 %vm362_vm1, %v6044_v46 }
0x1903   :  { %4830 = vmatprep.subr.msk.mxu0 %vm362_vm1, %v6048_v16 }
0x1904   :  { %v6067_v58 = vpop.permute.xlu0 %2805 }
0x1906   :  { %4831 = vmatpush3.xpose.msk.msra.mxu0 %vm362_vm1, %v6048_v16 }
0x1907   :  { %4832 = vmatprep.subr.msk.mxu0 %vm362_vm1, %v6058_v54 }
0x190a   :  { %v5167_v43 = vpop.eup %5166  ;;  %4833 = vmatpush3.xpose.msk.msra.mxu0 %vm362_vm1, %v6058_v54 }
0x190b   :  { %v2593_v44 = vmul.f32 %v5167_v43, %v6012_v21  ;;  %4834 = vmatprep.subr.msk.mxu0 %vm362_vm1, %v6067_v58 }
0x190d   :  { %v2599_v47 = vmul.f32 %v3994_v60, %v2593_v44 }
0x190e   :  { %v5169_v48 = vpop.eup %5168  ;;  %4835 = vmatpush3.xpose.msk.msra.mxu0 %vm362_vm1, %v6067_v58 }
0x190f   :  { %v2594_v50 = vmul.f32 %v5169_v48, %v6015_v31  ;;  %v6051_v51 = vadd.f32 %v3995_v45, %v2599_v47  ;;  %4836 = vmatprep.subr.msk.mxu0 %vm362_vm1, %v6073_v63  ;;  %v5228_v48 = vld [vmem:[#allocation10 + $0x30] sm:$0xff] }
0x1911   :  { %v2600_v53 = vmul.f32 %v3994_v60, %v2594_v50  ;;  %4812 = vmatprep.mubr.f32.mxu1 %v6051_v51 }
0x1912   :  { %4837 = vmatpush3.xpose.msk.msra.mxu0 %vm362_vm1, %v6073_v63 }
0x1913   :  { %v6060_v56 = vadd.f32 %v3995_v45, %v2600_v53  ;;  %4838 = vmatprep.subr.msk.mxu0 %vm362_vm1, %v6021_v36 }
0x1915   :  { %4813 = vmatmul.mubr.f32.vlgmr.msra.gmra.mxu1 %v6060_v56 }
0x1916   :  { %4839 = vmatpush3.xpose.msk.msra.mxu0 %vm362_vm1, %v6021_v36 }
0x1917   :  { %4840 = vmatprep.subr.msk.mxu0 %vm362_vm1, %v6025_v38 }
0x191a   :  { %4841 = vmatpush3.xpose.msk.msra.mxu0 %vm362_vm1, %v6025_v38 }
0x19d5   :  { %v4814_v52 = vpop.f32.mrf.mxu1 }
0x19d6   :  { %v2700_v61 = vadd.f32 %v4814_v52, %v3996_v55 }
0x19d7   :  { %v2694_v0 = vpop.f32.mrf.mxu1 }
0x19d8   :  { %v2695_v49 = vadd.f32 %v3996_v55, %v2694_v0  ;;  %2791 = vrot.lane.b32.xlu1 %v2700_v61, %s5389_s10 }
0x19da   :  { %2789 = vrot.lane.b32.xlu0 %v2695_v49, %s5389_s10  ;;  %4842 = vmatprep.mubr.msk.f32.mxu0 %vm362_vm1, %v2695_v49 }
0x19db   :  { %4843 = vmatmul.mubr.msk.f32.vlgmr.msra.gmra.mxu0 %vm362_vm1, %v2700_v61 }
0x19dc   :  { %2795 = vrot.lane.b32.xlu1 %v2700_v61, %s5387_s4 }
0x19de   :  { %2793 = vrot.lane.b32.xlu0 %v2695_v49, %s5387_s4 }
0x19e0   :  { %2799 = vrot.lane.b32.xlu1 %v2700_v61, %s5388_s6 }
0x19e2   :  { %2797 = vrot.lane.b32.xlu0 %v2695_v49, %s5388_s6 }
0x1a4a   :  { %v2792_v1 = vpop.permute.xlu1 %2791 }
0x1a4c   :  { %v2790_v2 = vpop.permute.xlu0 %2789 }
0x1a4d   :  { %4845 = vmatprep.mubr.msk.f32.mxu0 %vm362_vm1, %v2790_v2 }
0x1a4e   :  { %4846 = vmatmul.mubr.msk.f32.gmra.mxu0 %vm362_vm1, %v2792_v1  ;;  %v2796_v3 = vpop.permute.xlu1 %2795 }
0x1a50   :  { %v2794_v4 = vpop.permute.xlu0 %2793 }
0x1a51   :  { %4848 = vmatprep.mubr.msk.f32.mxu0 %vm362_vm1, %v2794_v4 }
0x1a52   :  { %4849 = vmatmul.mubr.msk.f32.gmra.mxu0 %vm362_vm1, %v2796_v3  ;;  %v2800_v5 = vpop.permute.xlu1 %2799 }
0x1a54   :  { %v2798_v19 = vpop.permute.xlu0 %2797 }
0x1a55   :  { %4851 = vmatprep.mubr.msk.f32.mxu0 %vm362_vm1, %v2798_v19 }
0x1a56   :  { %4852 = vmatmul.mubr.msk.f32.gmra.mxu0 %vm362_vm1, %v2800_v5 }
0x1a9b   :  { %v4844_v6 = vpop.f32.mrf.mxu0 }
0x1a9c   :  { %v2953_v7 = vmul.f32 0.35355338, %v4844_v6 }
0x1a9d   :  { %v2913_v59 = vpop.f32.mrf.mxu0 }
0x1a9e   :  { %v2961_v8 = vadd.f32 %v5221_v29, %v2953_v7  ;;  %v2952_v62 = vmul.f32 0.35355338, %v2913_v59 }
0x1aa0   :  { %v2960_v10 = vadd.f32 %v5222_v9, %v2952_v62  ;;  %v2971_v21 = vsel %vm516_vm2, %v2961_v8, -inf }
0x1aa1   :  { %2972 = vmax.xlane.f32.xlu1 %v2971_v21 }
0x1aa2   :  { %v2968_v31 = vsel %vm516_vm2, %v2960_v10, -inf }
0x1aa3   :  { %2969 = vmax.xlane.f32.xlu0 %v2968_v31 }
0x1b0e   :  { %v4847_v25 = vpop.f32.mrf.mxu0 }
0x1b0f   :  { %v2955_v12 = vmul.f32 0.35355338, %v4847_v25 }
0x1b10   :  { %v2923_v11 = vpop.f32.mrf.mxu0 }
0x1b11   :  { %v2954_v13 = vmul.f32 0.35355338, %v2923_v11  ;;  %v2963_v18 = vadd.f32 %v5224_v17, %v2955_v12 }
0x1b12   :  { %v4850_v14 = vpop.f32.mrf.mxu0 }
0x1b13   :  { %v2962_v41 = vadd.f32 %v5223_v15, %v2954_v13  ;;  %v2957_v20 = vmul.f32 0.35355338, %v4850_v14  ;;  %v2977_v39 = vsel %vm516_vm2, %v2963_v18, -inf }
0x1b14   :  { %v2933_v26 = vpop.f32.mrf.mxu0 }
0x1b15   :  { %v2956_v22 = vmul.f32 0.35355338, %v2933_v26  ;;  %v2974_v23 = vsel %vm516_vm2, %v2962_v41, -inf  ;;  %v2965_v34 = vadd.f32 %v5226_v33, %v2957_v20 }
0x1b16   :  { %2975 = vmax.xlane.f32.xlu0 %v2974_v23  ;;  %v4853_v24 = vpop.f32.mrf.mxu0 }
0x1b17   :  { %v2964_v32 = vadd.f32 %v5225_v27, %v2956_v22  ;;  %v2959_v28 = vmul.f32 0.35355338, %v4853_v24  ;;  %v2983_v42 = vsel %vm516_vm2, %v2965_v34, -inf }
0x1b18   :  { %v2943_v45 = vpop.f32.mrf.mxu0 }
0x1b19   :  { %v2980_v30 = vsel %vm516_vm2, %v2964_v32, -inf  ;;  %v2967_v35 = vadd.f32 %v5227_v40, %v2959_v28  ;;  %v2958_v47 = vmul.f32 0.35355338, %v2943_v45 }
0x1b1a   :  { %2978 = vmax.xlane.f32.xlu0 %v2977_v39  ;;  %2981 = vmax.xlane.f32.xlu1 %v2980_v30 }
0x1b1b   :  { %v2989_v37 = vsel %vm516_vm2, %v2967_v35, -inf  ;;  %v2966_v50 = vadd.f32 %v5228_v48, %v2958_v47 }
0x1b1d   :  { %v2986_v53 = vsel %vm516_vm2, %v2966_v50, -inf }
0x1b1e   :  { %2984 = vmax.xlane.f32.xlu0 %v2983_v42 }
0x1b22   :  { %2990 = vmax.xlane.f32.xlu0 %v2989_v37 }
0x1b2a   :  { %v2973_v43 = vpop.xlane.xlu1 %2972 }
0x1b2b   :  { %3070 = vrot.lane.b32.xlu1 %v6037_v57, %s5390_s17  ;;  %v2993_v60 = vsub.f32 %v2961_v8, %v2973_v43 }
0x1b2d   :  { %v3002_v44 = vmul.f32 1.442695, %v2993_v60 }
0x1b2f   :  { %3066 = vrot.lane.b32.xlu1 %v6048_v16, %s5390_s17  ;;  %5170 = vpow2.f32 %v3002_v44 }
0x1b38   :  { %3068 = vrot.lane.b32.xlu0 %v6044_v46, %s5390_s17  ;;  %v2970_v46 = vpop.xlane.xlu0 %2969 }
0x1b3c   :  { %3062 = vrot.lane.b32.xlu0 %v6067_v58, %s5390_s17  ;;  %v6119_v57 = vpop.eup %5170  ;;  %v2992_v58 = vsub.f32 %v2960_v10, %v2970_v46 }
0x1b3d   :  { %v3019_v16 = vsel %vm516_vm2, %v6119_v57, 0.0 }
0x1b3e   :  { %v3000_v55 = vmul.f32 1.442695, %v2992_v58 }
0x1b40   :  { %5172 = vpow2.f32 %v3000_v55 }
0x1b4d   :  { %v6127_v52 = vpop.eup %5172 }
0x1b4e   :  { %v3016_v61 = vsel %vm516_vm2, %v6127_v52, 0.0 }
0x1b53   :  { %2987 = vmax.xlane.f32.xlu1 %v2986_v53 }
0x1b5b   :  { %3020 = vadd.xlane.f32.xlu0 %v3019_v16 }
0x1b64   :  { %3064 = vrot.lane.b32.xlu1 %v6058_v54, %s5390_s17 }
0x1b68   :  { %3060 = vrot.lane.b32.xlu1 %v6073_v63, %s5390_s17 }
0x1b8c   :  { %3017 = vadd.xlane.f32.xlu1 %v3016_v61 }
0x1b9f   :  { %v2976_v0 = vpop.xlane.xlu0 %2975 }
0x1ba0   :  { %v2994_v49 = vsub.f32 %v2962_v41, %v2976_v0 }
0x1ba2   :  { %v3004_v1 = vmul.f32 1.442695, %v2994_v49 }
0x1ba3   :  { %v2982_v2 = vpop.xlane.xlu1 %2981  ;;  %v2979_v3 = vpop.xlane.xlu0 %2978 }
0x1ba4   :  { %5174 = vpow2.f32 %v3004_v1  ;;  %v2996_v54 = vsub.f32 %v2964_v32, %v2982_v2  ;;  %v2995_v4 = vsub.f32 %v2963_v18, %v2979_v3 }
0x1ba6   :  { %v3008_v19 = vmul.f32 1.442695, %v2996_v54  ;;  %v3006_v63 = vmul.f32 1.442695, %v2995_v4 }
0x1ba7   :  { %v3071_v5 = vpop.permute.xlu1 %3070  ;;  %v2985_v6 = vpop.xlane.xlu0 %2984 }
0x1ba8   :  { %5176 = vpow2.f32 %v3008_v19  ;;  %v2997_v7 = vsub.f32 %v2965_v34, %v2985_v6  ;;  %4854 = vmatprep.subr.mxu1 %v3071_v5  ;;  %v3248_v6 = vld [vmem:[#allocation7 + $0x598] sm:$0xff] }
0x1ba9   :  { %5178 = vpow2.f32 %v3006_v63  ;;  %4855 = vmatpush3.msra.mxu1 %v3071_v5  ;;  %v3250_v63 = vld [vmem:[#allocation7 + $0x5a8] sm:$0xff]  ;;  %v3249_v5 = vld [vmem:[#allocation7 + $0x5a0] sm:$0xff] }
0x1baa   :  { %v3010_v59 = vmul.f32 1.442695, %v2997_v7 }
0x1bab   :  { %v2991_v29 = vpop.xlane.xlu0 %2990  ;;  %v3067_v21 = vpop.permute.xlu1 %3066 }
0x1bac   :  { %5180 = vpow2.f32 %v3010_v59  ;;  %v2999_v8 = vsub.f32 %v2967_v35, %v2991_v29  ;;  %v3247_v59 = vld [vmem:[#allocation7 + $0x590] sm:$0xff] }
0x1bae   :  { %v3014_v62 = vmul.f32 1.442695, %v2999_v8 }
0x1baf   :  { %v3069_v9 = vpop.permute.xlu0 %3068 }
0x1bb0   :  { %5182 = vpow2.f32 %v3014_v62  ;;  %4856 = vmatprep.subr.mxu1 %v3069_v9 }
0x1bb1   :  { %v5175_v10 = vpop.eup %5174  ;;  %4857 = vmatpush3.msra.mxu1 %v3069_v9 }
0x1bb2   :  { %4858 = vmatprep.subr.mxu1 %v3067_v21  ;;  %v3022_v31 = vsel %vm516_vm2, %v5175_v10, 0.0 }
0x1bb3   :  { %3023 = vadd.xlane.f32.xlu1 %v3022_v31  ;;  %4859 = vmatpush3.msra.mxu1 %v3067_v21  ;;  %v3063_v22 = vpop.permute.xlu0 %3062 }
0x1bb5   :  { %v5177_v25 = vpop.eup %5176 }
0x1bb6   :  { %v5179_v11 = vpop.eup %5178  ;;  %v3028_v12 = vsel %vm516_vm2, %v5177_v25, 0.0 }
0x1bb7   :  { %3029 = vadd.xlane.f32.xlu1 %v3028_v12  ;;  %v3025_v13 = vsel %vm516_vm2, %v5179_v11, 0.0 }
0x1bb8   :  { %3026 = vadd.xlane.f32.xlu0 %v3025_v13 }
0x1bb9   :  { %v6134_v14 = vpop.eup %5180 }
0x1bba   :  { %v3031_v15 = vsel %vm516_vm2, %v6134_v14, 0.0 }
0x1bbc   :  { %3032 = vadd.xlane.f32.xlu0 %v3031_v15 }
0x1bbd   :  { %v6138_v41 = vpop.eup %5182 }
0x1bbe   :  { %v3037_v26 = vsel %vm516_vm2, %v6138_v41, 0.0 }
0x1bc0   :  { %3038 = vadd.xlane.f32.xlu0 %v3037_v26 }
0x1bd6   :  { %3058 = vrot.lane.b32.xlu0 %v6021_v36, %s5390_s17 }
0x1bdc   :  { %v2988_v17 = vpop.xlane.xlu1 %2987 }
0x1bdd   :  { %v2998_v18 = vsub.f32 %v2966_v50, %v2988_v17 }
0x1bdf   :  { %v3012_v20 = vmul.f32 1.442695, %v2998_v18 }
0x1be0   :  { %v3065_v23 = vpop.permute.xlu1 %3064 }
0x1be1   :  { %5184 = vpow2.f32 %v3012_v20  ;;  %4860 = vmatprep.subr.mxu1 %v3065_v23 }
0x1be2   :  { %4861 = vmatpush3.msra.mxu1 %v3065_v23  ;;  %v4024_v23 = vld [vmem:[#allocation7 + $0x714] ss:$0 sm:$0xff] }
0x1be3   :  { %4862 = vmatprep.subr.mxu1 %v3063_v22 }
0x1be4   :  { %v3061_v24 = vpop.permute.xlu1 %3060  ;;  %4863 = vmatpush3.msra.mxu1 %v3063_v22  ;;  %v3021_v27 = vpop.xlane.xlu0 %3020 }
0x1be5   :  { %5186 = vrcp.f32 %v3021_v27  ;;  %4864 = vmatprep.subr.mxu1 %v3061_v24 }
0x1be6   :  { %4865 = vmatpush3.msra.mxu1 %v3061_v24 }
0x1bee   :  { %v5185_v32 = vpop.eup %5184 }
0x1bef   :  { %v3034_v33 = vsel %vm516_vm2, %v5185_v32, 0.0 }
0x1bf0   :  { %3035 = vadd.xlane.f32.xlu1 %v3034_v33 }
0x1bf2   :  { %v5187_v36 = vpop.eup %5186 }
0x1bf3   :  { %v3049_v34 = vmul.f32 %v5187_v36, %v6119_v57 }
0x1bf5   :  { %v3210_v28 = vsel %vm516_vm2, %v3049_v34, 0.0 }
0x1bf6   :  { %3614 = vst [vmem:[%s6254_s8 + $0x20] sm:$0xff] %v3210_v28  ;;  %v3392_v28 = vld [vmem:[#allocation7 + $0x688] sm:$0xff] }
0x1bf7   :  { %4893 = vmatprep.subr.mxu0 %v3392_v28 }
0x1bf8   :  { %4894 = vmatpush3.msra.mxu0 %v3392_v28 }
0x1c01   :  { %3056 = vrot.lane.b32.xlu1 %v6025_v38, %s5390_s17 }
0x1c15   :  { %v3018_v39 = vpop.xlane.xlu1 %3017 }
0x1c16   :  { %5188 = vrcp.f32 %v3018_v39  ;;  %v3391_v39 = vld [vmem:[#allocation7 + $0x680] sm:$0xff] }
0x1c17   :  { %4895 = vmatprep.subr.mxu0 %v3391_v39 }
0x1c18   :  { %4896 = vmatpush3.msra.mxu0 %v3391_v39 }
0x1c23   :  { %v5189_v30 = vpop.eup %5188 }
0x1c24   :  { %v3048_v40 = vmul.f32 %v5189_v30, %v6127_v52 }
0x1c26   :  { %4870 = vmatprep.mubr.msk.f32.mxu1 %vm516_vm2, %v3048_v40  ;;  %v3209_v35 = vsel %vm516_vm2, %v3048_v40, 0.0 }
0x1c27   :  { %3613 = vst [vmem:[%s6254_s8 + $0x18] sm:$0xff] %v3209_v35 }
0x1c3c   :  { %v3024_v42 = vpop.xlane.xlu1 %3023 }
0x1c3d   :  { %5190 = vrcp.f32 %v3024_v42 }
0x1c40   :  { %v3030_v37 = vpop.xlane.xlu1 %3029 }
0x1c41   :  { %5192 = vrcp.f32 %v3030_v37  ;;  %v3027_v43 = vpop.xlane.xlu0 %3026 }
0x1c42   :  { %5194 = vrcp.f32 %v3027_v43 }
0x1c45   :  { %v3033_v38 = vpop.xlane.xlu0 %3032 }
0x1c46   :  { %5196 = vrcp.f32 %v3033_v38  ;;  %v6207_v38 = vld [vmem:[#allocation6 + $0x182] ss:$0 sm:$0xff] }
0x1c49   :  { %v3039_v60 = vpop.xlane.xlu0 %3038 }
0x1c4a   :  { %v5191_v44 = vpop.eup %5190  ;;  %5198 = vrcp.f32 %v3039_v60 }
0x1c4b   :  { %v3050_v45 = vmul.f32 %v5191_v44, %v5175_v10 }
0x1c4d   :  { %v3059_v47 = vpop.permute.xlu0 %3058  ;;  %v3211_v48 = vsel %vm516_vm2, %v3050_v45, 0.0 }
0x1c4e   :  { %v5193_v50 = vpop.eup %5192  ;;  %4866 = vmatprep.subr.mxu1 %v3059_v47  ;;  %3615 = vst [vmem:[%s6254_s8 + $0x28] sm:$0xff] %v3211_v48  ;;  %v3388_v48 = vld [vmem:[#allocation7 + $0x668] sm:$0xff] }
0x1c4f   :  { %v5195_v53 = vpop.eup %5194  ;;  %4867 = vmatpush3.msra.mxu1 %v3059_v47  ;;  %v3052_v57 = vmul.f32 %v5193_v50, %v5177_v25  ;;  %v3389_v47 = vld [vmem:[#allocation7 + $0x670] sm:$0xff]  ;;  %v3387_v50 = vld [vmem:[#allocation7 + $0x660] sm:$0xff] }
0x1c50   :  { %v3051_v16 = vmul.f32 %v5195_v53, %v5179_v11  ;;  %v3386_v53 = vld [vmem:[#allocation7 + $0x658] sm:$0xff] }
0x1c51   :  { %v3213_v46 = vsel %vm516_vm2, %v3052_v57, 0.0 }
0x1c52   :  { %v3212_v58 = vsel %vm516_vm2, %v3051_v16, 0.0  ;;  %3617 = vst [vmem:[%s6254_s8 + $0x38] sm:$0xff] %v3213_v46  ;;  %v3383_v46 = vld [vmem:[#allocation7 + $0x640] sm:$0xff] }
0x1c53   :  { %v5197_v55 = vpop.eup %5196  ;;  %3616 = vst [vmem:[%s6254_s8 + $0x30] sm:$0xff] %v3212_v58  ;;  %v3382_v58 = vld [vmem:[#allocation7 + $0x638] sm:$0xff] }
0x1c54   :  { %v3053_v52 = vmul.f32 %v5197_v55, %v6134_v14  ;;  %v3381_v55 = vld [vmem:[#allocation7 + $0x630] sm:$0xff] }
0x1c56   :  { %v3214_v61 = vsel %vm516_vm2, %v3053_v52, 0.0 }
0x1c57   :  { %v5199_v0 = vpop.eup %5198  ;;  %3618 = vst [vmem:[%s6254_s8 + $0x40] sm:$0xff] %v3214_v61  ;;  %v3379_v61 = vld [vmem:[#allocation7 + $0x620] sm:$0xff] }
0x1c58   :  { %v3055_v49 = vmul.f32 %v5199_v0, %v6138_v41  ;;  %v3378_v0 = vld [vmem:[#allocation7 + $0x618] sm:$0xff] }
0x1c5a   :  { %v3216_v1 = vsel %vm516_vm2, %v3055_v49, 0.0 }
0x1c5b   :  { %3620 = vst [vmem:[%s6254_s8 + $0x50] sm:$0xff] %v3216_v1  ;;  %v3490_v1 = vld [vmem:[#allocation7 + $0x708] sm:$0xff] }
0x1c79   :  { %v3036_v2 = vpop.xlane.xlu1 %3035 }
0x1c7a   :  { %5200 = vrcp.f32 %v3036_v2  ;;  %v3489_v2 = vld [vmem:[#allocation7 + $0x700] sm:$0xff] }
0x1c7d   :  { %v3057_v3 = vpop.permute.xlu1 %3056 }
0x1c7e   :  { %4868 = vmatprep.subr.mxu1 %v3057_v3 }
0x1c7f   :  { %4869 = vmatpush3.msra.mxu1 %v3057_v3  ;;  %v3488_v3 = vld [vmem:[#allocation7 + $0x6f8] sm:$0xff] }
0x1c80   :  { %4871 = vmatmul.mubr.msk.f32.vlgmr.msra.gmra.mxu1 %vm516_vm2, %v3049_v34  ;;  %4882 = vmatprep.subr.mxu1 %v3250_v63 }
0x1c81   :  { %4873 = vmatprep.mubr.msk.f32.mxu1 %vm516_vm2, %v3050_v45  ;;  %4883 = vmatpush3.msra.mxu1 %v3250_v63  ;;  %v3390_v45 = vld [vmem:[#allocation7 + $0x678] sm:$0xff] }
0x1c82   :  { %4884 = vmatprep.subr.mxu1 %v3249_v5  ;;  %4897 = vmatprep.subr.mxu0 %v3390_v45  ;;  %v3484_v63 = vld [vmem:[#allocation7 + $0x6d8] sm:$0xff] }
0x1c83   :  { %4885 = vmatpush3.msra.mxu1 %v3249_v5  ;;  %4898 = vmatpush3.msra.mxu0 %v3390_v45  ;;  %v3483_v5 = vld [vmem:[#allocation7 + $0x6d0] sm:$0xff] }
0x1c84   :  { %4874 = vmatmul.mubr.msk.f32.gmra.mxu1 %vm516_vm2, %v3051_v16  ;;  %4886 = vmatprep.subr.mxu1 %v3248_v6  ;;  %v3384_v16 = vld [vmem:[#allocation7 + $0x648] sm:$0xff] }
0x1c85   :  { %4876 = vmatprep.mubr.msk.f32.mxu1 %vm516_vm2, %v3052_v57  ;;  %4887 = vmatpush3.msra.mxu1 %v3248_v6  ;;  %v3385_v57 = vld [vmem:[#allocation7 + $0x650] sm:$0xff]  ;;  %v3482_v6 = vld [vmem:[#allocation7 + $0x6c8] sm:$0xff] }
0x1c86   :  { %4888 = vmatprep.subr.mxu1 %v3247_v59  ;;  %4899 = vmatprep.subr.mxu0 %v3389_v47 }
0x1c87   :  { %v5201_v54 = vpop.eup %5200  ;;  %4889 = vmatpush3.msra.mxu1 %v3247_v59  ;;  %4900 = vmatpush3.msra.mxu0 %v3389_v47  ;;  %v3480_v59 = vld [vmem:[#allocation7 + $0x6b8] sm:$0xff] }
0x1c88   :  { %4877 = vmatmul.mubr.msk.f32.gmra.mxu1 %vm516_vm2, %v3053_v52  ;;  %v3054_v4 = vmul.f32 %v5201_v54, %v5185_v32  ;;  %4901 = vmatprep.subr.mxu0 %v3388_v48  ;;  %v3380_v52 = vld [vmem:[#allocation7 + $0x628] sm:$0xff]  ;;  %v3487_v54 = vld [vmem:[#allocation7 + $0x6f0] sm:$0xff] }
0x1c89   :  { %4902 = vmatpush3.msra.mxu0 %v3388_v48  ;;  %4928 = vmatprep.subr.mxu1 %v3490_v1 }
0x1c8a   :  { %4879 = vmatprep.mubr.msk.f32.mxu1 %vm516_vm2, %v3054_v4  ;;  %v3215_v19 = vsel %vm516_vm2, %v3054_v4, 0.0  ;;  %4903 = vmatprep.subr.mxu0 %v3387_v50  ;;  %v3486_v4 = vld [vmem:[#allocation7 + $0x6e8] sm:$0xff] }
0x1c8b   :  { %3619 = vst [vmem:[%s6254_s8 + $0x48] sm:$0xff] %v3215_v19  ;;  %4904 = vmatpush3.msra.mxu0 %v3387_v50  ;;  %v3485_v19 = vld [vmem:[#allocation7 + $0x6e0] sm:$0xff] }
0x1c8c   :  { %4880 = vmatmul.mubr.msk.f32.gmra.mxu1 %vm516_vm2, %v3055_v49  ;;  %4905 = vmatprep.subr.mxu0 %v3386_v53  ;;  %v3377_v49 = vld [vmem:[#allocation7 + $0x610] sm:$0xff] }
0x1c8d   :  { %4906 = vmatpush3.msra.mxu0 %v3386_v53 }
0x1c8e   :  { %4907 = vmatprep.subr.mxu0 %v3385_v57 }
0x1c8f   :  { %4908 = vmatpush3.msra.mxu0 %v3385_v57 }
0x1c90   :  { %4909 = vmatprep.subr.mxu0 %v3384_v16 }
0x1c91   :  { %4910 = vmatpush3.msra.mxu0 %v3384_v16 }
0x1c92   :  { %4911 = vmatprep.subr.mxu0 %v3383_v46 }
0x1c93   :  { %4912 = vmatpush3.msra.mxu0 %v3383_v46 }
0x1c94   :  { %4913 = vmatprep.subr.mxu0 %v3382_v58 }
0x1c95   :  { %4914 = vmatpush3.msra.mxu0 %v3382_v58 }
0x1c96   :  { %4915 = vmatprep.subr.mxu0 %v3381_v55 }
0x1c97   :  { %4916 = vmatpush3.msra.mxu0 %v3381_v55 }
0x1c98   :  { %4917 = vmatprep.subr.mxu0 %v3380_v52 }
0x1c99   :  { %4918 = vmatpush3.msra.mxu0 %v3380_v52  ;;  %v3633_v52 = vld [vmem:[#allocation6 + $0xe0] sm:$0xff] }
0x1c9a   :  { %4919 = vmatprep.subr.mxu0 %v3379_v61 }
0x1c9b   :  { %4920 = vmatpush3.msra.mxu0 %v3379_v61  ;;  %v3632_v61 = vld [vmem:[#allocation6 + $0xd8] sm:$0xff] }
0x1c9c   :  { %4921 = vmatprep.subr.mxu0 %v3378_v0 }
0x1c9d   :  { %4922 = vmatpush3.msra.mxu0 %v3378_v0  ;;  %v3631_v0 = vld [vmem:[#allocation6 + $0xd0] sm:$0xff] }
0x1c9e   :  { %4923 = vmatprep.subr.mxu0 %v3377_v49 }
0x1c9f   :  { %4924 = vmatpush3.msra.mxu0 %v3377_v49  ;;  %v3630_v49 = vld [vmem:[#allocation6 + $0xc8] sm:$0xff] }
0x1d40   :  { %v4872_v7 = vpop.f32.mrf.mxu1 }
0x1d42   :  { %v3170_v29 = vpop.f32.mrf.mxu1 }
0x1d44   :  { %v4875_v8 = vpop.f32.mrf.mxu1 }
0x1d45   :  { %3221 = vrot.lane.b32.xlu1 %v4875_v8, %s5381_s11 }
0x1d46   :  { %v3180_v62 = vpop.f32.mrf.mxu1 }
0x1d47   :  { %3219 = vrot.lane.b32.xlu0 %v3180_v62, %s5381_s11 }
0x1d48   :  { %v4878_v9 = vpop.f32.mrf.mxu1 }
0x1d49   :  { %3229 = vrot.lane.b32.xlu1 %v4878_v9, %s5392_s19 }
0x1d4a   :  { %v3190_v10 = vpop.f32.mrf.mxu1 }
0x1d4b   :  { %3227 = vrot.lane.b32.xlu0 %v3190_v10, %s5392_s19 }
0x1d4c   :  { %v4881_v21 = vpop.f32.mrf.mxu1 }
0x1d4d   :  { %3237 = vrot.lane.b32.xlu1 %v4881_v21, %s5393_s20 }
0x1d4e   :  { %v3200_v31 = vpop.f32.mrf.mxu1 }
0x1d4f   :  { %3235 = vrot.lane.b32.xlu0 %v3200_v31, %s5393_s20 }
0x1db7   :  { %v3222_v25 = vpop.permute.xlu1 %3221 }
0x1db8   :  { %v3242_v41 = vsel %vm362_vm1, %v4872_v7, %v3222_v25  ;;  %v3481_v7 = vld [vmem:[#allocation7 + $0x6c0] sm:$0xff] }
0x1db9   :  { %v3220_v11 = vpop.permute.xlu0 %3219 }
0x1dba   :  { %v3241_v14 = vsel %vm362_vm1, %v3170_v29, %v3220_v11  ;;  %v3479_v29 = vld [vmem:[#allocation7 + $0x6b0] sm:$0xff]  ;;  %v4027_v11 = vld [vmem:[#allocation7 + $0x719] ss:$0 sm:$0xff] }
0x1dbb   :  { %v3230_v12 = vpop.permute.xlu1 %3229 }
0x1dbc   :  { %v3244_v18 = vsel %vm134_vm0, %v3242_v41, %v3230_v12 }
0x1dbd   :  { %v3228_v13 = vpop.permute.xlu0 %3227 }
0x1dbe   :  { %v3243_v26 = vsel %vm134_vm0, %v3241_v14, %v3228_v13  ;;  %v4028_v13 = vld [vmem:[#allocation7 + $0x71a] ss:$0 sm:$0xff] }
0x1dbf   :  { %v3238_v15 = vpop.permute.xlu1 %3237 }
0x1dc0   :  { %v3246_v22 = vsel %vm786_vm3, %v3244_v18, %v3238_v15 }
0x1dc1   :  { %v3236_v17 = vpop.permute.xlu0 %3235 }
0x1dc2   :  { %v3245_v20 = vsel %vm786_vm3, %v3243_v26, %v3236_v17 }
0x1dc3   :  { %4890 = vmatprep.mubr.msk.f32.mxu1 %vm798_vm4, %v3245_v20  ;;  %v3478_v20 = vld [vmem:[#allocation7 + $0x6a8] sm:$0xff] }
0x1dc4   :  { %4891 = vmatmul.mubr.msk.f32.vlgmr.msra.gmra.mxu1 %vm798_vm4, %v3246_v22  ;;  %v3477_v22 = vld [vmem:[#allocation7 + $0x6a0] sm:$0xff] }
0x1dc5   :  { %4929 = vmatpush3.msra.mxu1 %v3490_v1  ;;  %v3628_v1 = vld [vmem:[#allocation6 + $0xb8] sm:$0xff] }
0x1dc6   :  { %4930 = vmatprep.subr.mxu1 %v3489_v2 }
0x1dc7   :  { %4931 = vmatpush3.msra.mxu1 %v3489_v2  ;;  %v3627_v2 = vld [vmem:[#allocation6 + $0xb0] sm:$0xff] }
0x1dc8   :  { %4932 = vmatprep.subr.mxu1 %v3488_v3 }
0x1dc9   :  { %4933 = vmatpush3.msra.mxu1 %v3488_v3  ;;  %v3626_v3 = vld [vmem:[#allocation6 + $0xa8] sm:$0xff] }
0x1dca   :  { %4934 = vmatprep.subr.mxu1 %v3487_v54 }
0x1dcb   :  { %4935 = vmatpush3.msra.mxu1 %v3487_v54  ;;  %v3625_v54 = vld [vmem:[#allocation6 + $0xa0] sm:$0xff] }
0x1dcc   :  { %4936 = vmatprep.subr.mxu1 %v3486_v4 }
0x1dcd   :  { %4937 = vmatpush3.msra.mxu1 %v3486_v4  ;;  %v3624_v4 = vld [vmem:[#allocation6 + $0x98] sm:$0xff] }
0x1dce   :  { %4938 = vmatprep.subr.mxu1 %v3485_v19 }
0x1dcf   :  { %4939 = vmatpush3.msra.mxu1 %v3485_v19  ;;  %v3623_v19 = vld [vmem:[#allocation6 + $0x90] sm:$0xff] }
0x1dd0   :  { %4940 = vmatprep.subr.mxu1 %v3484_v63 }
0x1dd1   :  { %4941 = vmatpush3.msra.mxu1 %v3484_v63  ;;  %v3622_v63 = vld [vmem:[#allocation6 + $0x88] sm:$0xff] }
0x1dd2   :  { %4942 = vmatprep.subr.mxu1 %v3483_v5 }
0x1dd3   :  { %4943 = vmatpush3.msra.mxu1 %v3483_v5  ;;  %v3621_v5 = vld [vmem:[#allocation6 + $0x80] sm:$0xff] }
0x1dd4   :  { %4944 = vmatprep.subr.mxu1 %v3482_v6 }
0x1dd5   :  { %4945 = vmatpush3.msra.mxu1 %v3482_v6  ;;  %v3731_v6 = vld [vmem:[#allocation6 + $0x178] sm:$0xff] }
0x1dd6   :  { %4946 = vmatprep.subr.mxu1 %v3481_v7 }
0x1dd7   :  { %4947 = vmatpush3.msra.mxu1 %v3481_v7  ;;  %v3730_v7 = vld [vmem:[#allocation6 + $0x170] sm:$0xff] }
0x1dd8   :  { %4948 = vmatprep.subr.mxu1 %v3480_v59 }
0x1dd9   :  { %4949 = vmatpush3.msra.mxu1 %v3480_v59  ;;  %v3729_v59 = vld [vmem:[#allocation6 + $0x168] sm:$0xff] }
0x1dda   :  { %4950 = vmatprep.subr.mxu1 %v3479_v29 }
0x1ddb   :  { %4951 = vmatpush3.msra.mxu1 %v3479_v29  ;;  %v3728_v29 = vld [vmem:[#allocation6 + $0x160] sm:$0xff] }
0x1ddc   :  { %4952 = vmatprep.subr.mxu1 %v3478_v20 }
0x1ddd   :  { %4953 = vmatpush3.msra.mxu1 %v3478_v20  ;;  %v4031_v20 = vld [vmem:[#allocation7 + $0x71b] ss:$0 sm:$0xff] }
0x1dde   :  { %4954 = vmatprep.subr.mxu1 %v3477_v22 }
0x1ddf   :  { %4955 = vmatpush3.msra.mxu1 %v3477_v22 }
0x1e84   :  { %v4892_v24 = vpop.f32.mrf.mxu1 }
0x1e85   :  { %v3334_v27 = vadd.f32 %v4892_v24, %v4024_v23  ;;  %v3475_v24 = vld [vmem:[#allocation7 + $0x690] sm:$0xff] }
0x1e86   :  { %v3328_v32 = vpop.f32.mrf.mxu1 }
0x1e87   :  { %v3338_v33 = vadd.f32 %v3334_v27, %v6060_v56  ;;  %v3329_v36 = vadd.f32 %v4024_v23, %v3328_v32  ;;  %v3476_v23 = vld [vmem:[#allocation7 + $0x698] sm:$0xff]  ;;  %v4029_v27 = vld [vmem:[#allocation7 + $0x715] ss:$0 sm:$0xff] }
0x1e88   :  { %4956 = vmatprep.subr.mxu1 %v3476_v23 }
0x1e89   :  { %v3337_v34 = vadd.f32 %v3329_v36, %v6051_v51  ;;  %3343 = vadd.xlane.f32.xlu1 %v3338_v33  ;;  %4957 = vmatpush3.msra.mxu1 %v3476_v23 }
0x1e8a   :  { %4958 = vmatprep.subr.mxu1 %v3475_v24 }
0x1e8b   :  { %3341 = vadd.xlane.f32.xlu0 %v3337_v34  ;;  %4959 = vmatpush3.msra.mxu1 %v3475_v24  ;;  %v4032_v24 = vld [vmem:[#allocation7 + $0x71c] ss:$0 sm:$0xff] }
0x1e8c   :  { %4998 = vmatprep.subr.mxu1 %v3731_v6 }
0x1f12   :  { %v3344_v30 = vpop.xlane.xlu1 %3343 }
0x1f13   :  { %v3346_v40 = vmul.f32 0.03125, %v3344_v30  ;;  %v4030_v30 = vld [vmem:[#allocation7 + $0x716] ss:$0 sm:$0xff] }
0x1f14   :  { %v3342_v35 = vpop.xlane.xlu0 %3341 }
0x1f15   :  { %v3345_v42 = vmul.f32 0.03125, %v3342_v35  ;;  %v3348_v37 = vsub.f32 %v3338_v33, %v3346_v40 }
0x1f17   :  { %v3347_v43 = vsub.f32 %v3337_v34, %v3345_v42  ;;  %v6213_v51 = vmul.f32 %v6207_v38, %v3348_v37 }
0x1f19   :  { %v6210_v56 = vmul.f32 %v6207_v38, %v3347_v43  ;;  %v3352_v44 = vmul.f32 %v6213_v51, %v6213_v51 }
0x1f1b   :  { %v3351_v60 = vmul.f32 %v6210_v56, %v6210_v56 }
0x1f1d   :  { %3353 = vadd.xlane.f32.xlu0 %v3351_v60  ;;  %v3635_v60 = vld [vmem:[#allocation6 + $0xf0] sm:$0xff] }
0x1f21   :  { %3355 = vadd.xlane.f32.xlu0 %v3352_v44  ;;  %v3634_v44 = vld [vmem:[#allocation6 + $0xe8] sm:$0xff] }
0x1fa6   :  { %v3354_v8 = vpop.xlane.xlu0 %3353 }
0x1fa7   :  { %v3357_v62 = vmul.f32 0.03125, %v3354_v8  ;;  %v3727_v8 = vld [vmem:[#allocation6 + $0x158] sm:$0xff] }
0x1fa9   :  { %v3359_v9 = vadd.f32 1e-05, %v3357_v62  ;;  %v3726_v62 = vld [vmem:[#allocation6 + $0x150] sm:$0xff] }
0x1faa   :  { %v3356_v10 = vpop.xlane.xlu0 %3355 }
0x1fab   :  { %5202 = vrsqrt.f32 %v3359_v9  ;;  %v3358_v21 = vmul.f32 0.03125, %v3356_v10  ;;  %v3725_v9 = vld [vmem:[#allocation6 + $0x148] sm:$0xff]  ;;  %v3724_v10 = vld [vmem:[#allocation6 + $0x140] sm:$0xff] }
0x1fad   :  { %v3360_v31 = vadd.f32 1e-05, %v3358_v21  ;;  %v3723_v21 = vld [vmem:[#allocation6 + $0x138] sm:$0xff] }
0x1faf   :  { %5204 = vrsqrt.f32 %v3360_v31  ;;  %v3722_v31 = vld [vmem:[#allocation6 + $0x130] sm:$0xff] }
0x1fb8   :  { %v5203_v25 = vpop.eup %5202 }
0x1fb9   :  { %v3363_v12 = vmul.f32 %v5203_v25, %v6210_v56  ;;  %v3721_v25 = vld [vmem:[#allocation6 + $0x128] sm:$0xff] }
0x1fbb   :  { %v3369_v14 = vmul.f32 %v4027_v11, %v3363_v12  ;;  %v3719_v12 = vld [vmem:[#allocation6 + $0x118] sm:$0xff] }
0x1fbc   :  { %v5205_v15 = vpop.eup %5204 }
0x1fbd   :  { %v3364_v41 = vmul.f32 %v5205_v15, %v6213_v51  ;;  %v3375_v26 = vadd.f32 %v4028_v13, %v3369_v14  ;;  %v3636_v51 = vld [vmem:[#allocation6 + $0xf8] sm:$0xff] }
0x1fbe   :  { %4963 = vmatprep.subr.mxu0 %v3636_v51 }
0x1fbf   :  { %v3370_v17 = vmul.f32 %v4027_v11, %v3364_v41  ;;  %4925 = vmatprep.mubr.f32.mxu0 %v3375_v26  ;;  %v3720_v11 = vld [vmem:[#allocation6 + $0x120] sm:$0xff] }
0x1fc1   :  { %v3376_v18 = vadd.f32 %v4028_v13, %v3370_v17 }
0x1fc3   :  { %4926 = vmatmul.mubr.f32.vlgmr.msra.gmra.mxu0 %v3376_v18 }
0x1fc4   :  { %4964 = vmatpush3.msra.mxu0 %v3636_v51  ;;  %v5394_v51 = vmov 0.0  }
0x1fc5   :  { %4965 = vmatprep.subr.mxu0 %v3635_v60 }
0x1fc6   :  { %4966 = vmatpush3.msra.mxu0 %v3635_v60 }
0x1fc7   :  { %4967 = vmatprep.subr.mxu0 %v3634_v44 }
0x1fc8   :  { %4968 = vmatpush3.msra.mxu0 %v3634_v44  ;;  %v3808_v44 = vld [vmem:[%s6253_s7] sm:$0x3] }
0x1fc9   :  { %4969 = vmatprep.subr.mxu0 %v3633_v52 }
0x1fca   :  { %4970 = vmatpush3.msra.mxu0 %v3633_v52 }
0x1fcb   :  { %4971 = vmatprep.subr.mxu0 %v3632_v61 }
0x1fcc   :  { %4972 = vmatpush3.msra.mxu0 %v3632_v61 }
0x1fcd   :  { %4973 = vmatprep.subr.mxu0 %v3631_v0 }
0x1fce   :  { %4974 = vmatpush3.msra.mxu0 %v3631_v0 }
0x1fcf   :  { %4975 = vmatprep.subr.mxu0 %v3630_v49 }
0x1fd0   :  { %4976 = vmatpush3.msra.mxu0 %v3630_v49 }
0x2083   :  { %v4927_v32 = vpop.f32.mrf.mxu0 }
0x2084   :  { %v3470_v33 = vadd.f32 %v4927_v32, %v4029_v27 }
0x2085   :  { %v3464_v36 = vpop.f32.mrf.mxu0 }
0x2086   :  { %v3465_v34 = vadd.f32 %v4029_v27, %v3464_v36  ;;  %v3474_v39 = vmax.f32 %v3470_v33, 0.0 }
0x2088   :  { %v3473_v28 = vmax.f32 %v3465_v34, 0.0 }
0x208a   :  { %4960 = vmatprep.mubr.f32.mxu1 %v3473_v28  ;;  %v3718_v28 = vld [vmem:[#allocation6 + $0x110] sm:$0xff] }
0x208b   :  { %4961 = vmatmul.mubr.f32.vlgmr.msra.gmra.mxu1 %v3474_v39  ;;  %v3717_v39 = vld [vmem:[#allocation6 + $0x108] sm:$0xff] }
0x208c   :  { %4999 = vmatpush3.msra.mxu1 %v3731_v6 }
0x208d   :  { %5000 = vmatprep.subr.mxu1 %v3730_v7 }
0x208e   :  { %5001 = vmatpush3.msra.mxu1 %v3730_v7 }
0x208f   :  { %5002 = vmatprep.subr.mxu1 %v3729_v59 }
0x2090   :  { %5003 = vmatpush3.msra.mxu1 %v3729_v59 }
0x2091   :  { %5004 = vmatprep.subr.mxu1 %v3728_v29 }
0x2092   :  { %5005 = vmatpush3.msra.mxu1 %v3728_v29 }
0x2093   :  { %5006 = vmatprep.subr.mxu1 %v3727_v8 }
0x2094   :  { %5007 = vmatpush3.msra.mxu1 %v3727_v8 }
0x2095   :  { %5008 = vmatprep.subr.mxu1 %v3726_v62 }
0x2096   :  { %5009 = vmatpush3.msra.mxu1 %v3726_v62 }
0x2097   :  { %5010 = vmatprep.subr.mxu1 %v3725_v9 }
0x2098   :  { %5011 = vmatpush3.msra.mxu1 %v3725_v9 }
0x2099   :  { %5012 = vmatprep.subr.mxu1 %v3724_v10 }
0x209a   :  { %5013 = vmatpush3.msra.mxu1 %v3724_v10 }
0x209b   :  { %5014 = vmatprep.subr.mxu1 %v3723_v21 }
0x209c   :  { %5015 = vmatpush3.msra.mxu1 %v3723_v21 }
0x209d   :  { %5016 = vmatprep.subr.mxu1 %v3722_v31 }
0x209e   :  { %5017 = vmatpush3.msra.mxu1 %v3722_v31 }
0x209f   :  { %5018 = vmatprep.subr.mxu1 %v3721_v25 }
0x20a0   :  { %5019 = vmatpush3.msra.mxu1 %v3721_v25 }
0x20a1   :  { %5020 = vmatprep.subr.mxu1 %v3720_v11 }
0x20a2   :  { %5021 = vmatpush3.msra.mxu1 %v3720_v11 }
0x20a3   :  { %5022 = vmatprep.subr.mxu1 %v3719_v12 }
0x20a4   :  { %5023 = vmatpush3.msra.mxu1 %v3719_v12 }
0x20a5   :  { %5024 = vmatprep.subr.mxu1 %v3718_v28 }
0x20a6   :  { %5025 = vmatpush3.msra.mxu1 %v3718_v28 }
0x20a7   :  { %5026 = vmatprep.subr.mxu1 %v3717_v39 }
0x20a8   :  { %5027 = vmatpush3.msra.mxu1 %v3717_v39 }
0x214b   :  { %v4962_v40 = vpop.f32.mrf.mxu1 }
0x214c   :  { %v3568_v35 = vadd.f32 %v4962_v40, %v4030_v30 }
0x214d   :  { %v3562_v42 = vpop.f32.mrf.mxu1 }
0x214e   :  { %v3572_v37 = vadd.f32 %v3568_v35, %v3376_v18  ;;  %v3563_v43 = vadd.f32 %v4030_v30, %v3562_v42  ;;  %v3716_v30 = vld [vmem:[#allocation6 + $0x100] sm:$0xff]  ;;  %v3712_v35 = vld [vmem:[#allocation12] sm:$0xff]  ;;  %v3713_v42 = vld [vmem:[#allocation12 + $0x8] sm:$0xff] }
0x214f   :  { %5028 = vmatprep.subr.mxu1 %v3716_v30 }
0x2150   :  { %v3571_v56 = vadd.f32 %v3563_v43, %v3375_v26  ;;  %3577 = vadd.xlane.f32.xlu0 %v3572_v37  ;;  %5029 = vmatpush3.msra.mxu1 %v3716_v30 }
0x2152   :  { %3575 = vadd.xlane.f32.xlu1 %v3571_v56 }
0x21d9   :  { %v3578_v45 = vpop.xlane.xlu0 %3577 }
0x21da   :  { %v3580_v47 = vmul.f32 0.03125, %v3578_v45 }
0x21db   :  { %v3576_v48 = vpop.xlane.xlu1 %3575 }
0x21dc   :  { %v3582_v50 = vsub.f32 %v3572_v37, %v3580_v47  ;;  %v3579_v53 = vmul.f32 0.03125, %v3576_v48  ;;  %v4033_v47 = vld [vmem:[#allocation6 + $0x181] ss:$0 sm:$0xff] }
0x21de   :  { %v6222_v57 = vmul.f32 %v6207_v38, %v3582_v50  ;;  %v3581_v16 = vsub.f32 %v3571_v56, %v3579_v53 }
0x21e0   :  { %v6225_v46 = vmul.f32 %v6207_v38, %v3581_v16  ;;  %v3586_v58 = vmul.f32 %v6222_v57, %v6222_v57  ;;  %v3629_v38 = vld [vmem:[#allocation6 + $0xc0] sm:$0xff] }
0x21e1   :  { %4977 = vmatprep.subr.mxu0 %v3629_v38 }
0x21e2   :  { %3589 = vadd.xlane.f32.xlu0 %v3586_v58  ;;  %v3585_v55 = vmul.f32 %v6225_v46, %v6225_v46  ;;  %4978 = vmatpush3.msra.mxu0 %v3629_v38 }
0x21e3   :  { %4979 = vmatprep.subr.mxu0 %v3628_v1 }
0x21e4   :  { %3587 = vadd.xlane.f32.xlu1 %v3585_v55  ;;  %4980 = vmatpush3.msra.mxu0 %v3628_v1 }
0x21e5   :  { %4981 = vmatprep.subr.mxu0 %v3627_v2 }
0x21e6   :  { %4982 = vmatpush3.msra.mxu0 %v3627_v2 }
0x21e7   :  { %4983 = vmatprep.subr.mxu0 %v3626_v3 }
0x21e8   :  { %4984 = vmatpush3.msra.mxu0 %v3626_v3 }
0x21e9   :  { %4985 = vmatprep.subr.mxu0 %v3625_v54 }
0x21ea   :  { %4986 = vmatpush3.msra.mxu0 %v3625_v54 }
0x21eb   :  { %4987 = vmatprep.subr.mxu0 %v3624_v4 }
0x21ec   :  { %4988 = vmatpush3.msra.mxu0 %v3624_v4 }
0x21ed   :  { %4989 = vmatprep.subr.mxu0 %v3623_v19 }
0x21ee   :  { %4990 = vmatpush3.msra.mxu0 %v3623_v19 }
0x21ef   :  { %4991 = vmatprep.subr.mxu0 %v3622_v63 }
0x21f0   :  { %4992 = vmatpush3.msra.mxu0 %v3622_v63 }
0x21f1   :  { %4993 = vmatprep.subr.mxu0 %v3621_v5 }
0x21f2   :  { %4994 = vmatpush3.msra.mxu0 %v3621_v5 }
0x21f3   :  { %5033 = vmatprep.subr.mxu0 %v5394_v51 }
0x226b   :  { %v3590_v13 = vpop.xlane.xlu0 %3589 }
0x226c   :  { %v3592_v14 = vmul.f32 0.03125, %v3590_v13 }
0x226d   :  { %v3588_v15 = vpop.xlane.xlu1 %3587 }
0x226e   :  { %v3594_v41 = vadd.f32 1e-05, %v3592_v14  ;;  %v3591_v26 = vmul.f32 0.03125, %v3588_v15 }
0x2270   :  { %5206 = vrsqrt.f32 %v3594_v41  ;;  %v3593_v17 = vadd.f32 1e-05, %v3591_v26 }
0x2272   :  { %5208 = vrsqrt.f32 %v3593_v17 }
0x227d   :  { %v5207_v18 = vpop.eup %5206 }
0x227e   :  { %v3598_v22 = vmul.f32 %v5207_v18, %v6222_v57 }
0x227f   :  { %v5209_v23 = vpop.eup %5208 }
0x2280   :  { %v3597_v27 = vmul.f32 %v5209_v23, %v6225_v46  ;;  %v3604_v32 = vmul.f32 %v4031_v20, %v3598_v22 }
0x2282   :  { %v3603_v33 = vmul.f32 %v4031_v20, %v3597_v27  ;;  %v3610_v36 = vadd.f32 %v4032_v24, %v3604_v32 }
0x2284   :  { %v3609_v34 = vadd.f32 %v4032_v24, %v3603_v33  ;;  %3612 = vst [vmem:[%s6254_s8 + $0x10] sm:$0xff] %v3610_v36 }
0x2286   :  { %3611 = vst [vmem:[%s6254_s8 + $0x8] sm:$0xff] %v3609_v34  ;;  %4995 = vmatprep.mubr.f32.mxu0 %v3609_v34 }
0x2287   :  { %4996 = vmatmul.mubr.f32.vlgmr.msra.gmra.mxu0 %v3610_v36 }
0x2288   :  { %5037 = vmatprep.mubr.msk.f32.mxu0 %vm5395_vm5, %v5394_v51 }
0x2347   :  { %v4997_v40 = vpop.f32.mrf.mxu0 }
0x2348   :  { %v3715_v56 = vmul.f32 %v4997_v40, %v3713_v42 }
0x2349   :  { %v3703_v37 = vpop.f32.mrf.mxu0 }
0x234a   :  { %v3714_v43 = vmul.f32 %v3712_v35, %v3703_v37 }
0x234c   :  { %5030 = vmatprep.mubr.f32.mxu1 %v3714_v43 }
0x234d   :  { %5031 = vmatmul.mubr.f32.vlgmr.msra.gmra.mxu1 %v3715_v56 }
0x240d   :  { %v5032_v60 = vpop.f32.mrf.mxu1 }
0x240e   :  { %5034 = vmatpush3.msra.mxu0 %v5032_v60 }
0x240f   :  { %v3798_v45 = vpop.f32.mrf.mxu1  ;;  %5035 = vmatprep.subr.mxu0 %v5394_v51 }
0x2410   :  { %5036 = vmatpush3.msra.mxu0 %v3798_v45 }
0x2411   :  { %5038 = vmatmul.mubr.msk.f32.vlgmr.msra.gmra.mxu0 %vm134_vm0, %v3808_v44 }
0x24d1   :  { %v3882_v48 = vpop.f32.mrf.mxu0 }
0x24d2   :  { %v3883_v50 = vadd.f32 %v4033_v47, %v3882_v48 }
0x24d3   :  { %v5039_v53 = vpop.f32.mrf.mxu0 }
0x24d4   :  { %3886 = vst [vmem:[%s6254_s8] sm:$0x3] %v3883_v50 }
0x24d5   :  { %3891 = vsyncpa [#allocation3], 1 }
0x24d6   :  { %3892 = vsyncpa [#allocation5], 1 }
0x24d7   :  { %3893 = vsyncpa [#allocation8], 1 }
0x24d8   :  { %3894 = vsyncpa [#allocation11], 1 }

</bundles_post_ra>
